<compile_context>
chip_gen: v7x
topology: tpu7x:2x2x1
jax: 0.10.0
libtpu: 0.0.40
codegen_flags: <defaults>
</compile_context>

<pallas_src>
import functools
import math

import jax
import jax.numpy as jnp
from jax import lax
from jax.experimental import pallas as pl
from jax.experimental.pallas import tpu as pltpu


def _fused_attention_kernel(q_ref, k_ref, v_ref, mask_ref,
                            wq_ref, wk_ref, wv_ref, wo_ref, b_ref,
                            o_ref, ctx_sc, *, heads, head_dim, scale):
    """One grid step == one batch element.

    q/k/v_ref: (1, L, embed)   mask_ref: (1, q_len, k_len) int32
    wq/wk/wv_ref: (hd, hd) pre-transposed (y = x @ W_t)
    wo_ref: (embed, embed) pre-transposed, b_ref: (1, embed)
    o_ref: (1, q_len, embed)   ctx_sc: VMEM scratch (q_len, embed) f32
    """
    hd = head_dim
    cdt = jnp.bfloat16  # MXU compute dtype (f32 accumulation)

    q_all = q_ref[0].astype(cdt)          # (q_len, embed)
    k_all = k_ref[0].astype(cdt)          # (k_len, embed)
    v_all = v_ref[0].astype(cdt)          # (v_len, embed)
    mask = mask_ref[0]                    # (q_len, k_len)

    wq = wq_ref[...].astype(cdt)
    wk = wk_ref[...].astype(cdt)
    wv = wv_ref[...].astype(cdt)

    for h in range(heads):                # heads is small & static -> unrolled
        sl = slice(h * hd, (h + 1) * hd)

        # Per-head shared projections (PyTorch Linear, bias=False): x @ W.T == x @ W_t.
        # Fold the 1/sqrt(embed_size) softmax scale into the projected Q.
        qp = jnp.dot(q_all[:, sl], wq, preferred_element_type=jnp.float32) * scale
        kp = jnp.dot(k_all[:, sl], wk, preferred_element_type=jnp.float32)
        vp = jnp.dot(v_all[:, sl], wv, preferred_element_type=jnp.float32)

        # energy[q, k] = sum_d qp[q, d] * kp[k, d]  ("NT" dot_general, no transpose).
        energy = lax.dot_general(
            qp.astype(cdt), kp.astype(cdt),
            dimension_numbers=(((1,), (1,)), ((), ())),
            preferred_element_type=jnp.float32)        # (q_len, k_len)

        energy = jnp.where(mask == 0, jnp.float32(-1e20), energy)

        # Numerically-stable softmax in f32; denominator via EUP approx reciprocal.
        m = jnp.max(energy, axis=-1, keepdims=True)
        p = jnp.exp(energy - m)
        attn = p * pl.reciprocal(jnp.sum(p, axis=-1, keepdims=True), approx=True)

        # Per-head context written into the lane slice of a (q_len, embed) scratch.
        ctx_sc[:, sl] = jnp.dot(attn.astype(cdt), vp.astype(cdt),
                                preferred_element_type=jnp.float32)

    # Fused output projection: lane-dense (q_len, embed) matmul + bias, single store.
    y = jnp.dot(ctx_sc[...].astype(cdt), wo_ref[...].astype(cdt),
                preferred_element_type=jnp.float32) + b_ref[...]
    o_ref[0] = y.astype(o_ref.dtype)


def self_attention_pallas(values, keys, query, mask, params, *, embed_size, heads):
    N, q_len, _ = query.shape
    k_len = keys.shape[1]
    v_len = values.shape[1]
    hd = embed_size // heads

    # One-time host-side pre-transposes (PyTorch Linear stores W as (out, in)).
    wq_t = params["wq"].T
    wk_t = params["wk"].T
    wv_t = params["wv"].T
    wo_t = params["w_out"].T
    b_out = params["b_out"]

    kernel = functools.partial(_fused_attention_kernel,
                               heads=heads, head_dim=hd,
                               scale=1.0 / math.sqrt(embed_size))

    return pl.pallas_call(
        kernel,
        out_shape=jax.ShapeDtypeStruct((N, q_len, embed_size), jnp.float32),
        grid=(N,),
        in_specs=[
            pl.BlockSpec((1, q_len, embed_size), lambda n: (n, 0, 0)),   # query
            pl.BlockSpec((1, k_len, embed_size), lambda n: (n, 0, 0)),   # keys
            pl.BlockSpec((1, v_len, embed_size), lambda n: (n, 0, 0)),   # values
            pl.BlockSpec((1, q_len, k_len), lambda n: (n, 0, 0)),        # mask (per batch)
            pl.BlockSpec((hd, hd), lambda n: (0, 0)),                    # wq_t
            pl.BlockSpec((hd, hd), lambda n: (0, 0)),                    # wk_t
            pl.BlockSpec((hd, hd), lambda n: (0, 0)),                    # wv_t
            pl.BlockSpec((embed_size, embed_size), lambda n: (0, 0)),    # wo_t
            pl.BlockSpec((1, embed_size), lambda n: (0, 0)),             # b_out
        ],
        out_specs=pl.BlockSpec((1, q_len, embed_size), lambda n: (n, 0, 0)),
        scratch_shapes=[pltpu.VMEM((q_len, embed_size), jnp.float32)],
        compiler_params=pltpu.CompilerParams(
            dimension_semantics=("parallel",)),
    )(query, keys, values, mask, wq_t, wk_t, wv_t, wo_t, b_out)


def self_attention_ref(values, keys, query, mask, params, *, embed_size, heads):
    """Pure-JAX f32 reference mirroring the PyTorch forward exactly."""
    N, q_len, _ = query.shape
    k_len = keys.shape[1]
    v_len = values.shape[1]
    hd = embed_size // heads
    v = values.reshape(N, v_len, heads, hd) @ params["wv"].T
    k = keys.reshape(N, k_len, heads, hd) @ params["wk"].T
    q = query.reshape(N, q_len, heads, hd) @ params["wq"].T
    energy = jnp.einsum("nqhd,nkhd->nhqk", q, k)
    energy = jnp.where(mask[:, None, :, :] == 0, -1e20, energy)
    attn = jax.nn.softmax(energy / math.sqrt(embed_size), axis=3)
    out = jnp.einsum("nhql,nlhd->nqhd", attn, v).reshape(N, q_len, heads * hd)
    return out @ params["w_out"].T + params["b_out"][0]


if __name__ == "__main__":
    # Small but layout-friendly shapes (lane dim = 128, head_dim = 32).
    N, seq, embed_size, heads = 2, 128, 128, 4
    hd = embed_size // heads

    key = jax.random.PRNGKey(0)
    kv, kk, kq, kwv, kwk, kwq, kwo, kbo = jax.random.split(key, 8)

    values = jax.random.normal(kv, (N, seq, embed_size), dtype=jnp.float32)
    keys_in = jax.random.normal(kk, (N, seq, embed_size), dtype=jnp.float32)
    query = jax.random.normal(kq, (N, seq, embed_size), dtype=jnp.float32)

    # Causal mask (exercises the masked_fill path); broadcast over heads.
    mask = jnp.tril(jnp.ones((seq, seq), dtype=jnp.int32))[None].repeat(N, axis=0)

    # Deterministic parameters (PyTorch Linear stores W as (out, in)).
    params = {
        "wv": jax.random.normal(kwv, (hd, hd), dtype=jnp.float32) * (1.0 / math.sqrt(hd)),
        "wk": jax.random.normal(kwk, (hd, hd), dtype=jnp.float32) * (1.0 / math.sqrt(hd)),
        "wq": jax.random.normal(kwq, (hd, hd), dtype=jnp.float32) * (1.0 / math.sqrt(hd)),
        "w_out": jax.random.normal(kwo, (embed_size, embed_size), dtype=jnp.float32)
                 * (1.0 / math.sqrt(embed_size)),
        "b_out": jax.random.normal(kbo, (1, embed_size), dtype=jnp.float32) * 0.1,
    }

    out = self_attention_pallas(values, keys_in, query, mask, params,
                                embed_size=embed_size, heads=heads)
    out = jax.block_until_ready(out)

    ref = self_attention_ref(values, keys_in, query, mask, params,
                             embed_size=embed_size, heads=heads)
    assert out.shape == (N, seq, embed_size)
    # Tolerance accounts for intentional bf16 MXU matmuls + approx reciprocal.
    assert jnp.allclose(out, ref, atol=2e-2, rtol=2e-2), "mismatch vs JAX reference"

    print("KERNEL_OK")
</pallas_src>

<mosaic_0001>
module attributes {stable_mosaic.version = 11 : i64} {
  func.func @_fused_attention_kernel(%arg0: i32, %arg1: memref<1x128x128xf32, #tpu.memory_space<vmem>>, %arg2: memref<1x128x128xf32, #tpu.memory_space<vmem>>, %arg3: memref<1x128x128xf32, #tpu.memory_space<vmem>>, %arg4: memref<1x128x128xi32, #tpu.memory_space<vmem>>, %arg5: memref<32x32xf32, #tpu.memory_space<vmem>>, %arg6: memref<32x32xf32, #tpu.memory_space<vmem>>, %arg7: memref<32x32xf32, #tpu.memory_space<vmem>>, %arg8: memref<128x128xf32, #tpu.memory_space<vmem>>, %arg9: memref<1x128xf32, #tpu.memory_space<vmem>>, %arg10: memref<1x128x128xf32, #tpu.memory_space<vmem>>, %arg11: memref<128x128xf32, #tpu.memory_space<vmem>>) attributes {dimension_semantics = [#tpu.dimension_semantics<parallel>], iteration_bounds = array<i64: 2>, scalar_prefetch = 0 : i64, scratch_operands = 1 : i64, tpu.core_type = #tpu.core_type<tc>, window_params = [{transform_indices = @transform_0, window_bounds = array<i64: 1, 128, 128>}, {transform_indices = @transform_1, window_bounds = array<i64: 1, 128, 128>}, {transform_indices = @transform_2, window_bounds = array<i64: 1, 128, 128>}, {transform_indices = @transform_3, window_bounds = array<i64: 1, 128, 128>}, {pipeline_mode = #tpu.pipeline_mode<synchronous>, transform_indices = @transform_4, window_bounds = array<i64: 32, 32>}, {pipeline_mode = #tpu.pipeline_mode<synchronous>, transform_indices = @transform_5, window_bounds = array<i64: 32, 32>}, {pipeline_mode = #tpu.pipeline_mode<synchronous>, transform_indices = @transform_6, window_bounds = array<i64: 32, 32>}, {pipeline_mode = #tpu.pipeline_mode<synchronous>, transform_indices = @transform_7, window_bounds = array<i64: 128, 128>}, {pipeline_mode = #tpu.pipeline_mode<synchronous>, transform_indices = @transform_8, window_bounds = array<i64: 1, 128>}, {transform_indices = @transform_9, window_bounds = array<i64: 1, 128, 128>}]} {
    %c0 = arith.constant 0 : index
    %c0_0 = arith.constant 0 : index
    %c0_1 = arith.constant 0 : index
    %0 = vector.load %arg1[%c0, %c0_0, %c0_1] : memref<1x128x128xf32, #tpu.memory_space<vmem>>, vector<1x128x128xf32>
    %1 = vector.shape_cast %0 : vector<1x128x128xf32> to vector<128x128xf32>
    %2 = arith.truncf %1 : vector<128x128xf32> to vector<128x128xbf16>
    %c0_2 = arith.constant 0 : index
    %c0_3 = arith.constant 0 : index
    %c0_4 = arith.constant 0 : index
    %3 = vector.load %arg2[%c0_2, %c0_3, %c0_4] : memref<1x128x128xf32, #tpu.memory_space<vmem>>, vector<1x128x128xf32>
    %4 = vector.shape_cast %3 : vector<1x128x128xf32> to vector<128x128xf32>
    %5 = arith.truncf %4 : vector<128x128xf32> to vector<128x128xbf16>
    %c0_5 = arith.constant 0 : index
    %c0_6 = arith.constant 0 : index
    %c0_7 = arith.constant 0 : index
    %6 = vector.load %arg3[%c0_5, %c0_6, %c0_7] : memref<1x128x128xf32, #tpu.memory_space<vmem>>, vector<1x128x128xf32>
    %7 = vector.shape_cast %6 : vector<1x128x128xf32> to vector<128x128xf32>
    %8 = arith.truncf %7 : vector<128x128xf32> to vector<128x128xbf16>
    %c0_8 = arith.constant 0 : index
    %c0_9 = arith.constant 0 : index
    %c0_10 = arith.constant 0 : index
    %9 = vector.load %arg4[%c0_8, %c0_9, %c0_10] : memref<1x128x128xi32, #tpu.memory_space<vmem>>, vector<1x128x128xi32>
    %10 = vector.shape_cast %9 : vector<1x128x128xi32> to vector<128x128xi32>
    %c0_11 = arith.constant 0 : index
    %c0_12 = arith.constant 0 : index
    %11 = vector.load %arg5[%c0_11, %c0_12] : memref<32x32xf32, #tpu.memory_space<vmem>>, vector<32x32xf32>
    %12 = arith.truncf %11 : vector<32x32xf32> to vector<32x32xbf16>
    %c0_13 = arith.constant 0 : index
    %c0_14 = arith.constant 0 : index
    %13 = vector.load %arg6[%c0_13, %c0_14] : memref<32x32xf32, #tpu.memory_space<vmem>>, vector<32x32xf32>
    %14 = arith.truncf %13 : vector<32x32xf32> to vector<32x32xbf16>
    %c0_15 = arith.constant 0 : index
    %c0_16 = arith.constant 0 : index
    %15 = vector.load %arg7[%c0_15, %c0_16] : memref<32x32xf32, #tpu.memory_space<vmem>>, vector<32x32xf32>
    %16 = arith.truncf %15 : vector<32x32xf32> to vector<32x32xbf16>
    %17 = vector.extract_strided_slice %2 {offsets = [0, 0], sizes = [128, 32], strides = [1, 1]} : vector<128x128xbf16> to vector<128x32xbf16>
    %cst = arith.constant dense<0.000000e+00> : vector<128x32xf32>
    %18 = tpu.matmul %17, %12, %cst {dimension_numbers = #tpu.dot_dimension_numbers<[1], [0], [0], [1], [0, 0, 1, 1], [], []>} : vector<128x32xbf16>, vector<32x32xbf16>, vector<128x32xf32> -> vector<128x32xf32>
    %cst_17 = arith.constant 0.0883883461 : f32
    %19 = vector.broadcast %cst_17 : f32 to vector<128x32xf32>
    %20 = arith.mulf %18, %19 : vector<128x32xf32>
    %21 = vector.extract_strided_slice %5 {offsets = [0, 0], sizes = [128, 32], strides = [1, 1]} : vector<128x128xbf16> to vector<128x32xbf16>
    %cst_18 = arith.constant dense<0.000000e+00> : vector<128x32xf32>
    %22 = tpu.matmul %21, %14, %cst_18 {dimension_numbers = #tpu.dot_dimension_numbers<[1], [0], [0], [1], [0, 0, 1, 1], [], []>} : vector<128x32xbf16>, vector<32x32xbf16>, vector<128x32xf32> -> vector<128x32xf32>
    %23 = vector.extract_strided_slice %8 {offsets = [0, 0], sizes = [128, 32], strides = [1, 1]} : vector<128x128xbf16> to vector<128x32xbf16>
    %cst_19 = arith.constant dense<0.000000e+00> : vector<128x32xf32>
    %24 = tpu.matmul %23, %16, %cst_19 {dimension_numbers = #tpu.dot_dimension_numbers<[1], [0], [0], [1], [0, 0, 1, 1], [], []>} : vector<128x32xbf16>, vector<32x32xbf16>, vector<128x32xf32> -> vector<128x32xf32>
    %25 = arith.truncf %20 : vector<128x32xf32> to vector<128x32xbf16>
    %26 = arith.truncf %22 : vector<128x32xf32> to vector<128x32xbf16>
    %cst_20 = arith.constant dense<0.000000e+00> : vector<128x128xf32>
    %27 = tpu.matmul %25, %26, %cst_20 {dimension_numbers = #tpu.dot_dimension_numbers<[1], [1], [0], [0], [0, 0, 1, 0], [], []>} : vector<128x32xbf16>, vector<128x32xbf16>, vector<128x128xf32> -> vector<128x128xf32>
    %c0_i32 = arith.constant 0 : i32
    %28 = vector.broadcast %c0_i32 : i32 to vector<128x128xi32>
    %29 = arith.cmpi eq, %10, %28 : vector<128x128xi32>
    %cst_21 = arith.constant -1.000000e+20 : f32
    %30 = vector.broadcast %cst_21 : f32 to vector<128x128xf32>
    %31 = arith.select %29, %30, %27 : vector<128x128xi1>, vector<128x128xf32>
    %cst_22 = arith.constant dense<0xFF800000> : vector<128xf32>
    %32 = vector.multi_reduction <maximumf>, %31, %cst_22 [1] : vector<128x128xf32> to vector<128xf32>
    %33 = vector.shape_cast %32 : vector<128xf32> to vector<128x1xf32>
    %34 = vector.broadcast %33 : vector<128x1xf32> to vector<128x128xf32>
    %35 = arith.subf %31, %34 : vector<128x128xf32>
    %36 = math.exp %35 : vector<128x128xf32>
    %cst_23 = arith.constant dense<0.000000e+00> : vector<128xf32>
    %37 = vector.multi_reduction <add>, %36, %cst_23 [1] : vector<128x128xf32> to vector<128xf32>
    %38 = vector.shape_cast %37 : vector<128xf32> to vector<128x1xf32>
    %39 = tpu.reciprocal %38 {approx = true} : vector<128x1xf32> -> vector<128x1xf32>
    %40 = vector.broadcast %39 : vector<128x1xf32> to vector<128x128xf32>
    %41 = arith.mulf %36, %40 : vector<128x128xf32>
    %42 = arith.truncf %41 : vector<128x128xf32> to vector<128x128xbf16>
    %43 = arith.truncf %24 : vector<128x32xf32> to vector<128x32xbf16>
    %cst_24 = arith.constant dense<0.000000e+00> : vector<128x32xf32>
    %44 = tpu.matmul %42, %43, %cst_24 {dimension_numbers = #tpu.dot_dimension_numbers<[1], [0], [0], [1], [0, 0, 1, 1], [], []>} : vector<128x128xbf16>, vector<128x32xbf16>, vector<128x32xf32> -> vector<128x32xf32>
    %c0_25 = arith.constant 0 : index
    %c0_26 = arith.constant 0 : index
    %45 = vector.load %arg11[%c0_25, %c0_26] : memref<128x128xf32, #tpu.memory_space<vmem>>, vector<128x32xf32>
    tpu.vector_store %arg11[%c0_25, %c0_26], %44 {strides = array<i32>} : memref<128x128xf32, #tpu.memory_space<vmem>>, vector<128x32xf32>,
    %46 = vector.extract_strided_slice %2 {offsets = [0, 32], sizes = [128, 32], strides = [1, 1]} : vector<128x128xbf16> to vector<128x32xbf16>
    %cst_27 = arith.constant dense<0.000000e+00> : vector<128x32xf32>
    %47 = tpu.matmul %46, %12, %cst_27 {dimension_numbers = #tpu.dot_dimension_numbers<[1], [0], [0], [1], [0, 0, 1, 1], [], []>} : vector<128x32xbf16>, vector<32x32xbf16>, vector<128x32xf32> -> vector<128x32xf32>
    %cst_28 = arith.constant 0.0883883461 : f32
    %48 = vector.broadcast %cst_28 : f32 to vector<128x32xf32>
    %49 = arith.mulf %47, %48 : vector<128x32xf32>
    %50 = vector.extract_strided_slice %5 {offsets = [0, 32], sizes = [128, 32], strides = [1, 1]} : vector<128x128xbf16> to vector<128x32xbf16>
    %cst_29 = arith.constant dense<0.000000e+00> : vector<128x32xf32>
    %51 = tpu.matmul %50, %14, %cst_29 {dimension_numbers = #tpu.dot_dimension_numbers<[1], [0], [0], [1], [0, 0, 1, 1], [], []>} : vector<128x32xbf16>, vector<32x32xbf16>, vector<128x32xf32> -> vector<128x32xf32>
    %52 = vector.extract_strided_slice %8 {offsets = [0, 32], sizes = [128, 32], strides = [1, 1]} : vector<128x128xbf16> to vector<128x32xbf16>
    %cst_30 = arith.constant dense<0.000000e+00> : vector<128x32xf32>
    %53 = tpu.matmul %52, %16, %cst_30 {dimension_numbers = #tpu.dot_dimension_numbers<[1], [0], [0], [1], [0, 0, 1, 1], [], []>} : vector<128x32xbf16>, vector<32x32xbf16>, vector<128x32xf32> -> vector<128x32xf32>
    %54 = arith.truncf %49 : vector<128x32xf32> to vector<128x32xbf16>
    %55 = arith.truncf %51 : vector<128x32xf32> to vector<128x32xbf16>
    %cst_31 = arith.constant dense<0.000000e+00> : vector<128x128xf32>
    %56 = tpu.matmul %54, %55, %cst_31 {dimension_numbers = #tpu.dot_dimension_numbers<[1], [1], [0], [0], [0, 0, 1, 0], [], []>} : vector<128x32xbf16>, vector<128x32xbf16>, vector<128x128xf32> -> vector<128x128xf32>
    %c0_i32_32 = arith.constant 0 : i32
    %57 = vector.broadcast %c0_i32_32 : i32 to vector<128x128xi32>
    %58 = arith.cmpi eq, %10, %57 : vector<128x128xi32>
    %cst_33 = arith.constant -1.000000e+20 : f32
    %59 = vector.broadcast %cst_33 : f32 to vector<128x128xf32>
    %60 = arith.select %58, %59, %56 : vector<128x128xi1>, vector<128x128xf32>
    %cst_34 = arith.constant dense<0xFF800000> : vector<128xf32>
    %61 = vector.multi_reduction <maximumf>, %60, %cst_34 [1] : vector<128x128xf32> to vector<128xf32>
    %62 = vector.shape_cast %61 : vector<128xf32> to vector<128x1xf32>
    %63 = vector.broadcast %62 : vector<128x1xf32> to vector<128x128xf32>
    %64 = arith.subf %60, %63 : vector<128x128xf32>
    %65 = math.exp %64 : vector<128x128xf32>
    %cst_35 = arith.constant dense<0.000000e+00> : vector<128xf32>
    %66 = vector.multi_reduction <add>, %65, %cst_35 [1] : vector<128x128xf32> to vector<128xf32>
    %67 = vector.shape_cast %66 : vector<128xf32> to vector<128x1xf32>
    %68 = tpu.reciprocal %67 {approx = true} : vector<128x1xf32> -> vector<128x1xf32>
    %69 = vector.broadcast %68 : vector<128x1xf32> to vector<128x128xf32>
    %70 = arith.mulf %65, %69 : vector<128x128xf32>
    %71 = arith.truncf %70 : vector<128x128xf32> to vector<128x128xbf16>
    %72 = arith.truncf %53 : vector<128x32xf32> to vector<128x32xbf16>
    %cst_36 = arith.constant dense<0.000000e+00> : vector<128x32xf32>
    %73 = tpu.matmul %71, %72, %cst_36 {dimension_numbers = #tpu.dot_dimension_numbers<[1], [0], [0], [1], [0, 0, 1, 1], [], []>} : vector<128x128xbf16>, vector<128x32xbf16>, vector<128x32xf32> -> vector<128x32xf32>
    %c0_37 = arith.constant 0 : index
    %c32 = arith.constant 32 : index
    %74 = vector.load %arg11[%c0_37, %c32] : memref<128x128xf32, #tpu.memory_space<vmem>>, vector<128x32xf32>
    tpu.vector_store %arg11[%c0_37, %c32], %73 {strides = array<i32>} : memref<128x128xf32, #tpu.memory_space<vmem>>, vector<128x32xf32>,
    %75 = vector.extract_strided_slice %2 {offsets = [0, 64], sizes = [128, 32], strides = [1, 1]} : vector<128x128xbf16> to vector<128x32xbf16>
    %cst_38 = arith.constant dense<0.000000e+00> : vector<128x32xf32>
    %76 = tpu.matmul %75, %12, %cst_38 {dimension_numbers = #tpu.dot_dimension_numbers<[1], [0], [0], [1], [0, 0, 1, 1], [], []>} : vector<128x32xbf16>, vector<32x32xbf16>, vector<128x32xf32> -> vector<128x32xf32>
    %cst_39 = arith.constant 0.0883883461 : f32
    %77 = vector.broadcast %cst_39 : f32 to vector<128x32xf32>
    %78 = arith.mulf %76, %77 : vector<128x32xf32>
    %79 = vector.extract_strided_slice %5 {offsets = [0, 64], sizes = [128, 32], strides = [1, 1]} : vector<128x128xbf16> to vector<128x32xbf16>
    %cst_40 = arith.constant dense<0.000000e+00> : vector<128x32xf32>
    %80 = tpu.matmul %79, %14, %cst_40 {dimension_numbers = #tpu.dot_dimension_numbers<[1], [0], [0], [1], [0, 0, 1, 1], [], []>} : vector<128x32xbf16>, vector<32x32xbf16>, vector<128x32xf32> -> vector<128x32xf32>
    %81 = vector.extract_strided_slice %8 {offsets = [0, 64], sizes = [128, 32], strides = [1, 1]} : vector<128x128xbf16> to vector<128x32xbf16>
    %cst_41 = arith.constant dense<0.000000e+00> : vector<128x32xf32>
    %82 = tpu.matmul %81, %16, %cst_41 {dimension_numbers = #tpu.dot_dimension_numbers<[1], [0], [0], [1], [0, 0, 1, 1], [], []>} : vector<128x32xbf16>, vector<32x32xbf16>, vector<128x32xf32> -> vector<128x32xf32>
    %83 = arith.truncf %78 : vector<128x32xf32> to vector<128x32xbf16>
    %84 = arith.truncf %80 : vector<128x32xf32> to vector<128x32xbf16>
    %cst_42 = arith.constant dense<0.000000e+00> : vector<128x128xf32>
    %85 = tpu.matmul %83, %84, %cst_42 {dimension_numbers = #tpu.dot_dimension_numbers<[1], [1], [0], [0], [0, 0, 1, 0], [], []>} : vector<128x32xbf16>, vector<128x32xbf16>, vector<128x128xf32> -> vector<128x128xf32>
    %c0_i32_43 = arith.constant 0 : i32
    %86 = vector.broadcast %c0_i32_43 : i32 to vector<128x128xi32>
    %87 = arith.cmpi eq, %10, %86 : vector<128x128xi32>
    %cst_44 = arith.constant -1.000000e+20 : f32
    %88 = vector.broadcast %cst_44 : f32 to vector<128x128xf32>
    %89 = arith.select %87, %88, %85 : vector<128x128xi1>, vector<128x128xf32>
    %cst_45 = arith.constant dense<0xFF800000> : vector<128xf32>
    %90 = vector.multi_reduction <maximumf>, %89, %cst_45 [1] : vector<128x128xf32> to vector<128xf32>
    %91 = vector.shape_cast %90 : vector<128xf32> to vector<128x1xf32>
    %92 = vector.broadcast %91 : vector<128x1xf32> to vector<128x128xf32>
    %93 = arith.subf %89, %92 : vector<128x128xf32>
    %94 = math.exp %93 : vector<128x128xf32>
    %cst_46 = arith.constant dense<0.000000e+00> : vector<128xf32>
    %95 = vector.multi_reduction <add>, %94, %cst_46 [1] : vector<128x128xf32> to vector<128xf32>
    %96 = vector.shape_cast %95 : vector<128xf32> to vector<128x1xf32>
    %97 = tpu.reciprocal %96 {approx = true} : vector<128x1xf32> -> vector<128x1xf32>
    %98 = vector.broadcast %97 : vector<128x1xf32> to vector<128x128xf32>
    %99 = arith.mulf %94, %98 : vector<128x128xf32>
    %100 = arith.truncf %99 : vector<128x128xf32> to vector<128x128xbf16>
    %101 = arith.truncf %82 : vector<128x32xf32> to vector<128x32xbf16>
    %cst_47 = arith.constant dense<0.000000e+00> : vector<128x32xf32>
    %102 = tpu.matmul %100, %101, %cst_47 {dimension_numbers = #tpu.dot_dimension_numbers<[1], [0], [0], [1], [0, 0, 1, 1], [], []>} : vector<128x128xbf16>, vector<128x32xbf16>, vector<128x32xf32> -> vector<128x32xf32>
    %c0_48 = arith.constant 0 : index
    %c64 = arith.constant 64 : index
    %103 = vector.load %arg11[%c0_48, %c64] : memref<128x128xf32, #tpu.memory_space<vmem>>, vector<128x32xf32>
    tpu.vector_store %arg11[%c0_48, %c64], %102 {strides = array<i32>} : memref<128x128xf32, #tpu.memory_space<vmem>>, vector<128x32xf32>,
    %104 = vector.extract_strided_slice %2 {offsets = [0, 96], sizes = [128, 32], strides = [1, 1]} : vector<128x128xbf16> to vector<128x32xbf16>
    %cst_49 = arith.constant dense<0.000000e+00> : vector<128x32xf32>
    %105 = tpu.matmul %104, %12, %cst_49 {dimension_numbers = #tpu.dot_dimension_numbers<[1], [0], [0], [1], [0, 0, 1, 1], [], []>} : vector<128x32xbf16>, vector<32x32xbf16>, vector<128x32xf32> -> vector<128x32xf32>
    %cst_50 = arith.constant 0.0883883461 : f32
    %106 = vector.broadcast %cst_50 : f32 to vector<128x32xf32>
    %107 = arith.mulf %105, %106 : vector<128x32xf32>
    %108 = vector.extract_strided_slice %5 {offsets = [0, 96], sizes = [128, 32], strides = [1, 1]} : vector<128x128xbf16> to vector<128x32xbf16>
    %cst_51 = arith.constant dense<0.000000e+00> : vector<128x32xf32>
    %109 = tpu.matmul %108, %14, %cst_51 {dimension_numbers = #tpu.dot_dimension_numbers<[1], [0], [0], [1], [0, 0, 1, 1], [], []>} : vector<128x32xbf16>, vector<32x32xbf16>, vector<128x32xf32> -> vector<128x32xf32>
    %110 = vector.extract_strided_slice %8 {offsets = [0, 96], sizes = [128, 32], strides = [1, 1]} : vector<128x128xbf16> to vector<128x32xbf16>
    %cst_52 = arith.constant dense<0.000000e+00> : vector<128x32xf32>
    %111 = tpu.matmul %110, %16, %cst_52 {dimension_numbers = #tpu.dot_dimension_numbers<[1], [0], [0], [1], [0, 0, 1, 1], [], []>} : vector<128x32xbf16>, vector<32x32xbf16>, vector<128x32xf32> -> vector<128x32xf32>
    %112 = arith.truncf %107 : vector<128x32xf32> to vector<128x32xbf16>
    %113 = arith.truncf %109 : vector<128x32xf32> to vector<128x32xbf16>
    %cst_53 = arith.constant dense<0.000000e+00> : vector<128x128xf32>
    %114 = tpu.matmul %112, %113, %cst_53 {dimension_numbers = #tpu.dot_dimension_numbers<[1], [1], [0], [0], [0, 0, 1, 0], [], []>} : vector<128x32xbf16>, vector<128x32xbf16>, vector<128x128xf32> -> vector<128x128xf32>
    %c0_i32_54 = arith.constant 0 : i32
    %115 = vector.broadcast %c0_i32_54 : i32 to vector<128x128xi32>
    %116 = arith.cmpi eq, %10, %115 : vector<128x128xi32>
    %cst_55 = arith.constant -1.000000e+20 : f32
    %117 = vector.broadcast %cst_55 : f32 to vector<128x128xf32>
    %118 = arith.select %116, %117, %114 : vector<128x128xi1>, vector<128x128xf32>
    %cst_56 = arith.constant dense<0xFF800000> : vector<128xf32>
    %119 = vector.multi_reduction <maximumf>, %118, %cst_56 [1] : vector<128x128xf32> to vector<128xf32>
    %120 = vector.shape_cast %119 : vector<128xf32> to vector<128x1xf32>
    %121 = vector.broadcast %120 : vector<128x1xf32> to vector<128x128xf32>
    %122 = arith.subf %118, %121 : vector<128x128xf32>
    %123 = math.exp %122 : vector<128x128xf32>
    %cst_57 = arith.constant dense<0.000000e+00> : vector<128xf32>
    %124 = vector.multi_reduction <add>, %123, %cst_57 [1] : vector<128x128xf32> to vector<128xf32>
    %125 = vector.shape_cast %124 : vector<128xf32> to vector<128x1xf32>
    %126 = tpu.reciprocal %125 {approx = true} : vector<128x1xf32> -> vector<128x1xf32>
    %127 = vector.broadcast %126 : vector<128x1xf32> to vector<128x128xf32>
    %128 = arith.mulf %123, %127 : vector<128x128xf32>
    %129 = arith.truncf %128 : vector<128x128xf32> to vector<128x128xbf16>
    %130 = arith.truncf %111 : vector<128x32xf32> to vector<128x32xbf16>
    %cst_58 = arith.constant dense<0.000000e+00> : vector<128x32xf32>
    %131 = tpu.matmul %129, %130, %cst_58 {dimension_numbers = #tpu.dot_dimension_numbers<[1], [0], [0], [1], [0, 0, 1, 1], [], []>} : vector<128x128xbf16>, vector<128x32xbf16>, vector<128x32xf32> -> vector<128x32xf32>
    %c0_59 = arith.constant 0 : index
    %c96 = arith.constant 96 : index
    %132 = vector.load %arg11[%c0_59, %c96] : memref<128x128xf32, #tpu.memory_space<vmem>>, vector<128x32xf32>
    tpu.vector_store %arg11[%c0_59, %c96], %131 {strides = array<i32>} : memref<128x128xf32, #tpu.memory_space<vmem>>, vector<128x32xf32>,
    %c0_60 = arith.constant 0 : index
    %c0_61 = arith.constant 0 : index
    %133 = vector.load %arg11[%c0_60, %c0_61] : memref<128x128xf32, #tpu.memory_space<vmem>>, vector<128x128xf32>
    %134 = arith.truncf %133 : vector<128x128xf32> to vector<128x128xbf16>
    %c0_62 = arith.constant 0 : index
    %c0_63 = arith.constant 0 : index
    %135 = vector.load %arg8[%c0_62, %c0_63] : memref<128x128xf32, #tpu.memory_space<vmem>>, vector<128x128xf32>
    %136 = arith.truncf %135 : vector<128x128xf32> to vector<128x128xbf16>
    %cst_64 = arith.constant dense<0.000000e+00> : vector<128x128xf32>
    %137 = tpu.matmul %134, %136, %cst_64 {dimension_numbers = #tpu.dot_dimension_numbers<[1], [0], [0], [1], [0, 0, 1, 1], [], []>} : vector<128x128xbf16>, vector<128x128xbf16>, vector<128x128xf32> -> vector<128x128xf32>
    %c0_65 = arith.constant 0 : index
    %c0_66 = arith.constant 0 : index
    %138 = vector.load %arg9[%c0_65, %c0_66] : memref<1x128xf32, #tpu.memory_space<vmem>>, vector<1x128xf32>
    %139 = vector.broadcast %138 : vector<1x128xf32> to vector<128x128xf32>
    %140 = arith.addf %137, %139 : vector<128x128xf32>
    %c0_67 = arith.constant 0 : index
    %c0_68 = arith.constant 0 : index
    %c0_69 = arith.constant 0 : index
    %141 = vector.load %arg10[%c0_67, %c0_68, %c0_69] : memref<1x128x128xf32, #tpu.memory_space<vmem>>, vector<1x128x128xf32>
    %142 = vector.shape_cast %141 : vector<1x128x128xf32> to vector<128x128xf32>
    %143 = vector.shape_cast %140 : vector<128x128xf32> to vector<1x128x128xf32>
    tpu.vector_store %arg10[%c0_67, %c0_68, %c0_69], %143 {strides = array<i32>} : memref<1x128x128xf32, #tpu.memory_space<vmem>>, vector<1x128x128xf32>,
    return
  }
  func.func @transform_0(%arg0: i32) -> (i32, i32, i32) {
    %c0_i32 = arith.constant 0 : i32
    %c0_i32_0 = arith.constant 0 : i32
    %c0_i32_1 = arith.constant 0 : i32
    return %arg0, %c0_i32, %c0_i32_0 : i32, i32, i32
  }
  func.func @transform_1(%arg0: i32) -> (i32, i32, i32) {
    %c0_i32 = arith.constant 0 : i32
    %c0_i32_0 = arith.constant 0 : i32
    %c0_i32_1 = arith.constant 0 : i32
    return %arg0, %c0_i32, %c0_i32_0 : i32, i32, i32
  }
  func.func @transform_2(%arg0: i32) -> (i32, i32, i32) {
    %c0_i32 = arith.constant 0 : i32
    %c0_i32_0 = arith.constant 0 : i32
    %c0_i32_1 = arith.constant 0 : i32
    return %arg0, %c0_i32, %c0_i32_0 : i32, i32, i32
  }
  func.func @transform_3(%arg0: i32) -> (i32, i32, i32) {
    %c0_i32 = arith.constant 0 : i32
    %c0_i32_0 = arith.constant 0 : i32
    %c0_i32_1 = arith.constant 0 : i32
    return %arg0, %c0_i32, %c0_i32_0 : i32, i32, i32
  }
  func.func @transform_4(%arg0: i32) -> (i32, i32) {
    %c0_i32 = arith.constant 0 : i32
    %c0_i32_0 = arith.constant 0 : i32
    %c0_i32_1 = arith.constant 0 : i32
    return %c0_i32, %c0_i32_0 : i32, i32
  }
  func.func @transform_5(%arg0: i32) -> (i32, i32) {
    %c0_i32 = arith.constant 0 : i32
    %c0_i32_0 = arith.constant 0 : i32
    %c0_i32_1 = arith.constant 0 : i32
    return %c0_i32, %c0_i32_0 : i32, i32
  }
  func.func @transform_6(%arg0: i32) -> (i32, i32) {
    %c0_i32 = arith.constant 0 : i32
    %c0_i32_0 = arith.constant 0 : i32
    %c0_i32_1 = arith.constant 0 : i32
    return %c0_i32, %c0_i32_0 : i32, i32
  }
  func.func @transform_7(%arg0: i32) -> (i32, i32) {
    %c0_i32 = arith.constant 0 : i32
    %c0_i32_0 = arith.constant 0 : i32
    %c0_i32_1 = arith.constant 0 : i32
    return %c0_i32, %c0_i32_0 : i32, i32
  }
  func.func @transform_8(%arg0: i32) -> (i32, i32) {
    %c0_i32 = arith.constant 0 : i32
    %c0_i32_0 = arith.constant 0 : i32
    %c0_i32_1 = arith.constant 0 : i32
    return %c0_i32, %c0_i32_0 : i32, i32
  }
  func.func @transform_9(%arg0: i32) -> (i32, i32, i32) {
    %c0_i32 = arith.constant 0 : i32
    %c0_i32_0 = arith.constant 0 : i32
    %c0_i32_1 = arith.constant 0 : i32
    return %arg0, %c0_i32, %c0_i32_0 : i32, i32, i32
  }
}

</mosaic_0001>

<bundles_post_ra>
// kernel: tpu_custom_call.1
= control target key start
LH: loop header
LB: loop body
LE: loop exit
PB: predicated region body
PF: predicated region fallthrough
CT: control target
= control target key end

     0   :  { %s8381_s0 = inlined_call_operand.hbm [shape: f32[2,128,128], index: 0, kind: input, shape index: {}]   ;;  %s8382_s1 = inlined_call_operand.hbm [shape: f32[2,128,128], index: 1, kind: input, shape index: {}]   ;;  %s8383_s2 = inlined_call_operand.hbm [shape: f32[2,128,128], index: 2, kind: input, shape index: {}]   ;;  %s8384_s3 = inlined_call_operand.hbm [shape: s32[2,128,128], index: 3, kind: input, shape index: {}]   ;;  %s8385_s4 = inlined_call_operand.hbm [shape: f32[32,32], index: 4, kind: input, shape index: {}]   ;;  %s8386_s5 = inlined_call_operand.hbm [shape: f32[32,32], index: 5, kind: input, shape index: {}]   ;;  %s8387_s6 = inlined_call_operand.hbm [shape: f32[32,32], index: 6, kind: input, shape index: {}]   ;;  %s8388_s7 = inlined_call_operand.hbm [shape: f32[128,128], index: 7, kind: input, shape index: {}]   ;;  %s8389_s8 = inlined_call_operand.vmem [shape: f32[1,128], index: 8, kind: input, shape index: {}]   ;;  %s8390_s9 = inlined_call_operand.hbm [shape: f32[2,128,128], index: 9, kind: output, shape index: {}]  }
   0x1   :  { %8458 = sst [smem:[#allocation65_spill]] %s8382_s1 }
   0x2   :  { %8459 = sst [smem:[#allocation66_spill]] %s8385_s4 }
   0x3   :  { %8460 = sst [smem:[#allocation67_spill]] %s8386_s5 }
   0x4   :  { %8461 = sst [smem:[#allocation68_spill]] %s8389_s8 }
   0x5   :  { %8462 = sst [smem:[#allocation69_spill]] %s8390_s9 }
   0x6   :  { %14 = vsyncpa [#allocation4], 0 }
   0x7   :  { %16 = vsyncpa [#allocation4 + $0x1], 0 }
   0x8   :  { %17 = vsyncpa [#allocation7], 0 }
   0x9   :  { %19 = vsyncpa [#allocation7 + $0x1], 0 }
   0xa   :  { %20 = vsyncpa [#allocation10], 0 }
   0xb   :  { %22 = vsyncpa [#allocation10 + $0x1], 0 }
   0xc   :  { %23 = vsyncpa [#allocation13], 0 }
   0xd   :  { %24 = vsyncpa [#allocation16], 0 }
   0xe   :  { %25 = vsyncpa [#allocation5], 0 }
   0xf   :  { %27 = vsyncpa [#allocation5 + $0x1], 0  ;;  %s6435_s30 = smov 0   ;;  %s6437_s10 = smov 0  }
  0x10   :  { %s6439_s11 = smov 0   ;;  %s6441_s12 = smov 0  }
  0x11 LB: > { %8463 = sst [smem:[#allocation25_spill]] %s6355_s30  ;;  %s6456_s13 = sadd.s32 4294967295, %s6367_s12   ;;  %s6367_s12 = sphi %s6441_s12, %s8607_s12   ;;  %s6363_s11 = sphi %s6439_s11, %s8611_s11   ;;  %s6359_s10 = sphi %s6437_s10, %s8610_s10   ;;  %s6355_s30 = sphi %s6435_s30, %s8609_s30  }
  0x12   : > { %8464 = sst [smem:[#allocation26_spill]] %s6456_s13  ;;  %s4688_s14 = sadd.s32 4294967294, %s6367_s12  }
  0x13   : > { %p53_p0 = scmp.ne.s32.totalorder %s6359_s10, %s6355_s30  ;;  %p8391_p1 = scmp.eq.s32.totalorder %s6456_s13, 0 }
  0x14   : > { %p266_p3 = scmp.eq.s32.totalorder %s4688_s14, 1  ;;  %p4689_p5 = scmp.ge.s32.totalorder %s6367_s12, 1 }
  0x15   : > { %p6465_p4 = por %p8391_p1, %p53_p0  ;;  %p273_p7 = scmp.lt.s32.totalorder %s6367_s12, 3 }
  0x16   : > { %p6470_p6 = por %p266_p3, %p53_p0  ;;  %s6369_s18 = smov [#allocation11]  }
  0x17   : > { %s8465_s15 = scalar_select %p6465_p4, 1, 0 }
  0x18   : > { %s8467_s16 = scalar_select %p6470_p6, 1, 0 }
  0x19   : > { %8466 = sst [smem:[#allocation27_spill]] %s8465_s15  ;;  %p6475_p8 = pnand %p4689_p5, %p273_p7 }
  0x1a   : > { %8468 = sst [smem:[#allocation28_spill]] %s8467_s16  ;;  %s285_s19 = sshll.u32 %s6369_s18, 4  ;;  %s6479_s19 = int_to_ptr.vmem [resolvable:$true] %s285_s19 }
  0x1b   : > { %s8469_s17 = scalar_select %p6475_p8, 1, 0 }
  0x1c   : > { %p5710_p9 = pneg %p6475_p8  ;;  %s6370_s21 = smov [#allocation12]  }
  0x1d   : > { %s298_s22 = sshll.u32 %s6370_s21, 4  ;;  %s8471_s4 = sld [smem:[#allocation66_spill]]  ;;  %s6490_s22 = int_to_ptr.vmem [resolvable:$true] %s298_s22 }
  0x1e   : > { %p6486_p11 = pnand %p5710_p9, %p8391_p1 }
  0x20   : > { %s8470_s20 = scalar_select %p6486_p11, 1, 0 }
  0x21   : > { %p6500_p13 = pneg %p6486_p11 }
  0x23   : > { %s6049_s25 = scalar_lea.hbm %s8471_s4, 512 }
  0x24   : > { %p6050_p12 = scmp.ne.s32.totalorder %s8471_s4, %s6049_s25  ;;  %p6056_p5 = scmp.lt.u32.totalorder %s6049_s25, %s8471_s4 }
  0x25   : > { %s8472_s28 = scalar_select %p6500_p13, 1, 0 }
  0x26   : > { %p6052_p0 = pnand %p6500_p13, %p6050_p12 }
  0x28   : > { %p6053_p3 = pneg %p6052_p0 }
  0x2a   : > { %p6058_p7 = pnand %p6056_p5, %p6053_p3 }
  0x2c   : > { %6061 = shalt.err (!%p6058_p7)
}
  0x2d   : > { %s6062_s18 = scalar_lea.vmem %s6479_s19, 512  ;;  %p6070_p2 = scmp.lt.s32.totalorder %s6479_s19, %s6479_s19 }
  0x2e   : > { %p6063_p9 = scmp.ne.s32.totalorder %s6479_s19, %s6062_s18  ;;  %p6071_p6 = scmp.lt.s32.totalorder %s6062_s18, %s6062_s18 }
  0x30   : > { %p6065_p10 = pnand %p6063_p9, %p6500_p13  ;;  %p6072_p12 = por %p6071_p6, %p6070_p2 }
  0x32   : > { %p6066_p1 = pneg %p6065_p10 }
  0x34   : > { %p6073_p0 = pnand %p6072_p12, %p6066_p1 }
  0x36   : > { %6076 = shalt.err (!%p6073_p0)
}
  0x37   : > { %s8395_s21 = smov 128   ;;  %s8397_s23 = smov 8  }
  0x38   : > { %5713 = dma.hbm_to_vmem [thread:$0]  (!%p6486_p11), %s8471_s4, 512, %s6479_s19, [#allocation10], %s8395_s21, %s8395_s21, %s8397_s23  }
  0x39   : > { %s8473_s5 = sld [smem:[#allocation67_spill]] }
  0x3f   : > { %s6077_s29 = scalar_lea.hbm %s8473_s5, 512 }
  0x40   : > { %p6078_p1 = scmp.ne.s32.totalorder %s8473_s5, %s6077_s29  ;;  %p6084_p10 = scmp.lt.u32.totalorder %s6077_s29, %s8473_s5 }
  0x42   : > { %p6080_p2 = pnand %p6078_p1, %p6500_p13 }
  0x44   : > { %p6081_p6 = pneg %p6080_p2 }
  0x46   : > { %p6086_p3 = pnand %p6084_p10, %p6081_p6 }
  0x48   : > { %6089 = shalt.err (!%p6086_p3)
}
  0x49   : > { %s6090_s19 = scalar_lea.vmem %s6490_s22, 512  ;;  %p6098_p12 = scmp.lt.s32.totalorder %s6490_s22, %s6490_s22 }
  0x4a   : > { %p6091_p5 = scmp.ne.s32.totalorder %s6490_s22, %s6090_s19  ;;  %p6099_p0 = scmp.lt.s32.totalorder %s6090_s19, %s6090_s19 }
  0x4c   : > { %p6093_p7 = pnand %p6091_p5, %p6500_p13  ;;  %p6100_p1 = por %p6099_p0, %p6098_p12 }
  0x4e   : > { %p6094_p9 = pneg %p6093_p7 }
  0x50   : > { %p6101_p2 = pnand %p6100_p1, %p6094_p9 }
  0x52   : > { %6104 = shalt.err (!%p6101_p2)
}
  0x53   : > { %5716 = dma.hbm_to_vmem [thread:$0]  (!%p6486_p11), %s8473_s5, 512, %s6490_s22, [#allocation13], %s8395_s21, %s8395_s21, %s8397_s23  }
  0x54   : > { %s6551_s24 = sadd.s32 1, %s6367_s12   ;;  %s40_s25 = sadd.s32 1, %s6363_s11 }
  0x55   : > { %8474 = sst [smem:[#allocation29_spill]] %s6551_s24  ;;  %s37_s26 = ssub.s32 %s6367_s12, %s6551_s24 }
  0x56   : > { %p47_p6 = scmp.ne.s32.totalorder %s6363_s11, %s6359_s10  ;;  %p38_p10 = scmp.eq.s32.totalorder %s37_s26, 0 }
  0x57   : > { %p48_p3 = scmp.eq.s32.totalorder %s6367_s12, 0  ;;  %p8475_p5 = scmp.eq.s32.totalorder %s6456_s13, 1 }
  0x58   : > { %p5744_p9 = scmp.lt.s32.totalorder %s6367_s12, 2  ;;  %s8394_s14 = sand.u32 1, %s6363_s11  }
  0x59   : > { %p6561_p7 = por %p8475_p5, %p47_p6  ;;  %p49_p12 = por %p48_p3, %p47_p6 }
  0x5a   : > { %s6567_s29 = scalar_select %p38_p10, %s6363_s11, %s40_s25  }
  0x5b   : > { %s8476_s27 = scalar_select %p6561_p7, 1, 0 }
  0x5c   : > { %8478 = sst [smem:[#allocation31_spill]] %s6567_s29  ;;  %s6572_s22 = sshll.u32 %s8394_s14, 7 }
  0x5d   : > { %8477 = sst [smem:[#allocation30_spill]] %s8476_s27  ;;  %s6575_s18 = sshll.u32 %s6367_s12, 11 }
  0x5e   : > { %p6577_p0 = pnand %p5744_p9, %p49_p12  ;;  %s8403_s30 = sand.u32 1, %s6367_s12  }
  0x5f   : > { %s8480_s1 = sld [smem:[#allocation65_spill]]  ;;  %s366_s14 = scalar_lea.vmem [#allocation6], %s6572_s22 }
  0x60   : > { %s8479_s19 = scalar_select %p6577_p0, 1, 0 }
  0x61   : > { %s373_s21 = sshll.u32 %s366_s14, 4  ;;  %s6593_s23 = scalar_lea.sflag [#allocation7], %s8403_s30  ;;  %s6589_s21 = int_to_ptr.vmem [resolvable:$true] %s373_s21 }
  0x62   : > { %p6599_p2 = pneg %p6577_p0 }
  0x64   : > { %s8481_s5 = scalar_select %p6599_p2, 1, 0 }
  0x65   : > { %s6586_s25 = scalar_lea.hbm %s8480_s1, %s6575_s18  ;;  %s6110_s14 = scalar_lea.hbm %s8480_s1, 4096 }
  0x66   : > { %s6105_s4 = scalar_lea.hbm %s6586_s25, 2048  ;;  %p6111_p3 = scmp.lt.u32.totalorder %s6586_s25, %s8480_s1 }
  0x67   : > { %p6106_p1 = scmp.ne.s32.totalorder %s6586_s25, %s6105_s4  ;;  %p6112_p5 = scmp.lt.u32.totalorder %s6110_s14, %s6105_s4 }
  0x68   : > { %p6114_p12 = scmp.lt.u32.totalorder %s6105_s4, %s6586_s25 }
  0x69   : > { %p6108_p6 = pnand %p6599_p2, %p6106_p1  ;;  %p6113_p9 = por %p6112_p5, %p6111_p3 }
  0x6b   : > { %p6109_p10 = pneg %p6108_p6  ;;  %p6115_p7 = por %p6114_p12, %p6113_p9 }
  0x6d   : > { %p6116_p4 = pnand %p6115_p7, %p6109_p10 }
  0x6f   : > { %6119 = shalt.err (!%p6116_p4)
}
  0x70   : > { %s6120_s30 = scalar_lea.vmem %s6589_s21, 2048  ;;  %s6373_s16 = smov [#allocation6]  }
  0x71   : > { %p6121_p1 = scmp.ne.s32.totalorder %s6589_s21, %s6120_s30  ;;  %s6125_s26 = sshll.u32 %s6373_s16, 4  ;;  %s6126_s26 = int_to_ptr.vmem [resolvable:$false] %s6125_s26 }
  0x72   : > { %s6127_s24 = scalar_lea.vmem %s6126_s26, 4096  ;;  %p6128_p11 = scmp.lt.s32.totalorder %s6589_s21, %s6126_s26 }
  0x73   : > { %p6123_p6 = pnand %p6121_p1, %p6599_p2  ;;  %p6129_p13 = scmp.lt.s32.totalorder %s6127_s24, %s6120_s30 }
  0x75   : > { %p6124_p8 = pneg %p6123_p6  ;;  %p6130_p3 = por %p6129_p13, %p6128_p11 }
  0x77   : > { %p6131_p5 = pnand %p6130_p3, %p6124_p8 }
  0x79   : > { %6134 = shalt.err (!%p6131_p5)
}
  0x7a   : > { %s8482_s4 = smov 8   ;;  %s8483_s29 = smov 128  }
  0x7b   : > { %5729 = dma.hbm_to_vmem [thread:$0]  (!%p6577_p0), %s6586_s25, 2048, %s6589_s21, %s6593_s23, %s8483_s29, %s8483_s29, %s8482_s4  }
  0x7c   : > { %s6374_s14 = smov [#allocation14]   ;;  %s6375_s16 = smov [#allocation15]  }
  0x7d   : > { %s311_s1 = sshll.u32 %s6374_s14, 4  ;;  %s324_s9 = sshll.u32 %s6375_s16, 4  ;;  %s312_s1 = int_to_ptr.vmem [resolvable:$true] %s311_s1  ;;  %s325_s9 = int_to_ptr.vmem [resolvable:$true] %s324_s9 }
  0x7e   : > { %s6135_s24 = scalar_lea.hbm %s8387_s6, 512  ;;  %p8484_p8 = scmp.ne.s32.totalorder %s8472_s28, 0 }
  0x7f   : > { %p6136_p4 = scmp.ne.s32.totalorder %s8387_s6, %s6135_s24  ;;  %p6142_p7 = scmp.lt.u32.totalorder %s6135_s24, %s8387_s6 }
  0x81   : > { %p6138_p11 = pnand %p6136_p4, %p8484_p8 }
  0x83   : > { %p6139_p13 = pneg %p6138_p11 }
  0x85   : > { %p6144_p10 = pnand %p6142_p7, %p6139_p13 }
  0x87   : > { %6147 = shalt.err (!%p6144_p10)
}
  0x88   : > { %s6148_s21 = scalar_lea.vmem %s312_s1, 512  ;;  %p6156_p6 = scmp.lt.s32.totalorder %s312_s1, %s312_s1 }
  0x89   : > { %p6149_p9 = scmp.ne.s32.totalorder %s312_s1, %s6148_s21  ;;  %p6157_p3 = scmp.lt.s32.totalorder %s6148_s21, %s6148_s21 }
  0x8b   : > { %p6151_p12 = pnand %p6149_p9, %p8484_p8  ;;  %p6158_p5 = por %p6157_p3, %p6156_p6 }
  0x8d   : > { %p6152_p1 = pneg %p6151_p12 }
  0x8f   : > { %p6159_p0 = pnand %p6158_p5, %p6152_p1 }
  0x91   : > { %6162 = shalt.err (!%p6159_p0)
}
  0x92   : > { %p8485_p4 = scmp.ne.s32.totalorder %s8470_s20, 0  ;;  %s6163_s25 = scalar_lea.hbm %s8388_s7, 2048 }
  0x93   : > { %p6164_p11 = scmp.ne.s32.totalorder %s8388_s7, %s6163_s25  ;;  %p6170_p7 = scmp.lt.u32.totalorder %s6163_s25, %s8388_s7 }
  0x94   : > { %5719 = dma.hbm_to_vmem [thread:$0]  (!%p8485_p4), %s8387_s6, 512, %s312_s1, [#allocation13], %s8483_s29, %s8483_s29, %s8482_s4  }
  0x95   : > { %p6166_p0 = pnand %p6164_p11, %p8484_p8 }
  0x97   : > { %p6167_p13 = pneg %p6166_p0 }
  0x99   : > { %p6172_p10 = pnand %p6170_p7, %p6167_p13 }
  0x9b   : > { %6175 = shalt.err (!%p6172_p10)
}
  0x9c   : > { %s6176_s24 = scalar_lea.vmem %s325_s9, 2048  ;;  %p6184_p6 = scmp.lt.s32.totalorder %s325_s9, %s325_s9 }
  0x9d   : > { %p6177_p9 = scmp.ne.s32.totalorder %s325_s9, %s6176_s24  ;;  %p6185_p3 = scmp.lt.s32.totalorder %s6176_s24, %s6176_s24 }
  0x9f   : > { %p6179_p12 = pnand %p6177_p9, %p8484_p8  ;;  %p6186_p5 = por %p6185_p3, %p6184_p6 }
  0xa1   : > { %p6180_p1 = pneg %p6179_p12 }
  0xa3   : > { %p6187_p2 = pnand %p6186_p5, %p6180_p1 }
  0xa5   : > { %6190 = shalt.err (!%p6187_p2)
}
  0xa6   : > { %5722 = dma.hbm_to_vmem [thread:$0]  (!%p8485_p4), %s8388_s7, 2048, %s325_s9, [#allocation16], %s8483_s29, %s8483_s29, %s8482_s4  }
  0xa7   : > { %s6672_s13 = scalar_lea.hbm %s8381_s0, %s6575_s18  ;;  %s345_s20 = scalar_lea.vmem [#allocation3], %s6572_s22 }
  0xa8   : > { %s352_s15 = sshll.u32 %s345_s20, 4  ;;  %s6681_s14 = scalar_lea.hbm %s8383_s2, %s6575_s18  ;;  %s6675_s15 = int_to_ptr.vmem [resolvable:$true] %s352_s15 }
  0xa9   : > { %s8486_s16 = sand.u32 1, %s6363_s11   ;;  %s6191_s26 = scalar_lea.hbm %s6672_s13, 2048 }
  0xaa   : > { %s6685_s9 = scalar_lea.sflag [#allocation4], %s8486_s16  ;;  %p6192_p2 = scmp.ne.s32.totalorder %s6672_s13, %s6191_s26 }
  0xab   : > { %p8487_p8 = scmp.ne.s32.totalorder %s8481_s5, 0  ;;  %s6196_s1 = scalar_lea.hbm %s8381_s0, 4096 }
  0xac   : > { %p6197_p0 = scmp.lt.u32.totalorder %s6672_s13, %s8381_s0  ;;  %p6198_p13 = scmp.lt.u32.totalorder %s6196_s1, %s6191_s26 }
  0xad   : > { %p6194_p4 = pnand %p6192_p2, %p8487_p8  ;;  %p6200_p10 = scmp.lt.u32.totalorder %s6191_s26, %s6672_s13 }
  0xae   : > { %p6199_p7 = por %p6198_p13, %p6197_p0 }
  0xaf   : > { %p6195_p11 = pneg %p6194_p4 }
  0xb0   : > { %p6201_p9 = por %p6200_p10, %p6199_p7 }
  0xb2   : > { %p6202_p12 = pnand %p6201_p9, %p6195_p11 }
  0xb4   : > { %6205 = shalt.err (!%p6202_p12)
}
  0xb5   : > { %s6206_s8 = scalar_lea.vmem %s6675_s15, 2048  ;;  %s6376_s20 = smov [#allocation3]  }
  0xb6   : > { %p6207_p1 = scmp.ne.s32.totalorder %s6675_s15, %s6206_s8  ;;  %s6211_s27 = sshll.u32 %s6376_s20, 4  ;;  %s6212_s27 = int_to_ptr.vmem [resolvable:$false] %s6211_s27 }
  0xb7   : > { %s6213_s25 = scalar_lea.vmem %s6212_s27, 4096  ;;  %p6214_p5 = scmp.lt.s32.totalorder %s6675_s15, %s6212_s27 }
  0xb8   : > { %p6209_p6 = pnand %p6207_p1, %p8487_p8  ;;  %p6215_p2 = scmp.lt.s32.totalorder %s6213_s25, %s6206_s8 }
  0xba   : > { %p6210_p3 = pneg %p6209_p6  ;;  %p6216_p4 = por %p6215_p2, %p6214_p5 }
  0xbc   : > { %p6217_p0 = pnand %p6216_p4, %p6210_p3 }
  0xbe   : > { %6220 = shalt.err (!%p6217_p0)
}
  0xbf   : > { %p8488_p11 = scmp.ne.s32.totalorder %s8479_s19, 0  ;;  %s387_s16 = scalar_lea.vmem [#allocation8], %s6572_s22 }
  0xc0   : > { %s394_s26 = sshll.u32 %s387_s16, 4  ;;  %s6719_s1 = scalar_lea.hbm %s8384_s3, %s6575_s18  ;;  %s6713_s26 = int_to_ptr.vmem [resolvable:$true] %s394_s26 }
  0xc1   : > { %5726 = dma.hbm_to_vmem [thread:$0]  (!%p8488_p11), %s6672_s13, 2048, %s6675_s15, %s6685_s9, %s8483_s29, %s8483_s29, %s8482_s4  }
  0xc2   : > { %s6221_s21 = scalar_lea.hbm %s6681_s14, 2048  ;;  %s6226_s20 = scalar_lea.hbm %s8383_s2, 4096 }
  0xc3   : > { %p6222_p13 = scmp.ne.s32.totalorder %s6681_s14, %s6221_s21  ;;  %p6227_p9 = scmp.lt.u32.totalorder %s6681_s14, %s8383_s2 }
  0xc4   : > { %p6228_p12 = scmp.lt.u32.totalorder %s6226_s20, %s6221_s21  ;;  %p6230_p6 = scmp.lt.u32.totalorder %s6221_s21, %s6681_s14 }
  0xc5   : > { %p6224_p7 = pnand %p6222_p13, %p8487_p8 }
  0xc6   : > { %p6229_p1 = por %p6228_p12, %p6227_p9 }
  0xc7   : > { %p6225_p10 = pneg %p6224_p7 }
  0xc8   : > { %p6231_p3 = por %p6230_p6, %p6229_p1 }
  0xca   : > { %p6232_p5 = pnand %p6231_p3, %p6225_p10 }
  0xcc   : > { %6235 = shalt.err (!%p6232_p5)
}
  0xcd   : > { %s6236_s18 = scalar_lea.vmem %s6713_s26, 2048  ;;  %s6377_s15 = smov [#allocation8]  }
  0xce   : > { %p6237_p2 = scmp.ne.s32.totalorder %s6713_s26, %s6236_s18  ;;  %s6241_s9 = sshll.u32 %s6377_s15, 4  ;;  %s6242_s9 = int_to_ptr.vmem [resolvable:$false] %s6241_s9 }
  0xcf   : > { %s6243_s25 = scalar_lea.vmem %s6242_s9, 4096  ;;  %p6244_p13 = scmp.lt.s32.totalorder %s6713_s26, %s6242_s9 }
  0xd0   : > { %p6239_p4 = pnand %p6237_p2, %p8487_p8  ;;  %p6245_p7 = scmp.lt.s32.totalorder %s6243_s25, %s6236_s18 }
  0xd2   : > { %p6240_p0 = pneg %p6239_p4  ;;  %p6246_p9 = por %p6245_p7, %p6244_p13 }
  0xd4   : > { %p6247_p12 = pnand %p6246_p9, %p6240_p0 }
  0xd6   : > { %6250 = shalt.err (!%p6247_p12)
}
  0xd7   : > { %5732 = dma.hbm_to_vmem [thread:$0]  (!%p8488_p11), %s6681_s14, 2048, %s6713_s26, %s6593_s23, %s8483_s29, %s8483_s29, %s8482_s4  }
  0xd8   : > { %s408_s16 = scalar_lea.vmem [#allocation9], %s6572_s22  ;;  %s8489_s24 = sand.u32 1, %s6367_s12  }
  0xd9   : > { %s415_s30 = sshll.u32 %s408_s16, 4  ;;  %s6751_s21 = scalar_lea.sflag [#allocation10], %s8489_s24  ;;  %s6747_s30 = int_to_ptr.vmem [resolvable:$true] %s415_s30 }
  0xda   : > { %s6251_s28 = scalar_lea.hbm %s6719_s1, 2048  ;;  %s6256_s27 = scalar_lea.hbm %s8384_s3, 4096 }
  0xdb   : > { %p6252_p10 = scmp.ne.s32.totalorder %s6719_s1, %s6251_s28  ;;  %p6257_p3 = scmp.lt.u32.totalorder %s6719_s1, %s8384_s3 }
  0xdc   : > { %p6258_p5 = scmp.lt.u32.totalorder %s6256_s27, %s6251_s28  ;;  %p6260_p4 = scmp.lt.u32.totalorder %s6251_s28, %s6719_s1 }
  0xdd   : > { %p6254_p1 = pnand %p6252_p10, %p8487_p8 }
  0xde   : > { %p6259_p2 = por %p6258_p5, %p6257_p3 }
  0xdf   : > { %p6255_p6 = pneg %p6254_p1 }
  0xe0   : > { %p6261_p0 = por %p6260_p4, %p6259_p2 }
  0xe2   : > { %p6262_p13 = pnand %p6261_p0, %p6255_p6 }
  0xe4   : > { %6265 = shalt.err (!%p6262_p13)
}
  0xe5   : > { %s6266_s23 = scalar_lea.vmem %s6747_s30, 2048  ;;  %s6378_s22 = smov [#allocation9]  }
  0xe6   : > { %p6267_p7 = scmp.ne.s32.totalorder %s6747_s30, %s6266_s23  ;;  %s6271_s14 = sshll.u32 %s6378_s22, 4  ;;  %s6272_s14 = int_to_ptr.vmem [resolvable:$false] %s6271_s14 }
  0xe7   : > { %s6273_s26 = scalar_lea.vmem %s6272_s14, 4096  ;;  %p6274_p10 = scmp.lt.s32.totalorder %s6747_s30, %s6272_s14 }
  0xe8   : > { %p6269_p9 = pnand %p6267_p7, %p8487_p8  ;;  %p6275_p1 = scmp.lt.s32.totalorder %s6273_s26, %s6266_s23 }
  0xea   : > { %p6270_p12 = pneg %p6269_p9  ;;  %p6276_p3 = por %p6275_p1, %p6274_p10 }
  0xec   : > { %p6277_p5 = pnand %p6276_p3, %p6270_p12 }
  0xee   : > { %6280 = shalt.err (!%p6277_p5)
}
  0xef   : > { %5735 = dma.hbm_to_vmem [thread:$0]  (!%p8488_p11), %s6719_s1, 2048, %s6747_s30, %s6751_s21, %s8483_s29, %s8483_s29, %s8482_s4  }
  0xf0   : > { %p8490_p8 = scmp.ne.s32.totalorder %s8469_s17, 0 }
  0xf2   : > { %427 = sbr.rel (%p8490_p8) target bundleno = 4251 (0x109b), region = 56 }
  0xf9   : > { %s8491_s5 = sld [smem:[#allocation27_spill]]  ;;  %s6781_s15 = sand.u32 1, %s6359_s10  }
  0xfa   : > { %s6784_s9 = sshll.u32 %s6781_s15, 7  ;;  %s430_s19 = scalar_lea.sflag [#allocation4], %s6781_s15 }
  0xfb   : > { %s6788_s25 = scalar_lea.vmem [#allocation3], %s6784_s9 }
  0xff   : > { %p8492_p6 = scmp.ne.s32.totalorder %s8491_s5, 0 }
 0x101   : > { %6326 = dma.done.wait (%p8492_p6), %s430_s19, 2048  }
 0x102   : > { %6328 = vsyncadd (%p8492_p6), %s430_s19, 4294965248  ;;  %s8493_s4 = sld [smem:[#allocation26_spill]]  ;;  %s6796_s1 = scalar_lea.vmem [#allocation6], %s6784_s9 }
 0x108   : > { %s438_s17 = sand.u32 1, %s8493_s4  }
 0x109   : > { %s439_s29 = scalar_lea.sflag [#allocation7], %s438_s17 }
 0x10a   : > { %6330 = dma.done.wait (%p8492_p6), %s439_s29, 4096  }
 0x10b   : > { %6332 = vsyncadd (%p8492_p6), %s439_s29, 4294963200  ;;  %s6803_s16 = scalar_lea.vmem [#allocation8], %s6784_s9  ;;  %s457_s30 = scalar_lea.sflag [#allocation10], %s438_s17 }
 0x10c   : > { %s6806_s24 = scalar_lea.vmem [#allocation9], %s6784_s9 }
 0x10d   : > { %6334 = dma.done.wait (%p8492_p6), %s457_s30, 2048  }
 0x10e   : > { %6336 = vsyncadd (%p8492_p6), %s457_s30, 4294965248  ;;  %p8494_p11 = scmp.eq.s32.totalorder %s8493_s4, 0 }
 0x110   : > { %6338 = dma.done.wait (%p8494_p11), [#allocation10], 512   ;;  %p8495_p2 = pmov %p8494_p11 }
 0x112   : > { %6340 = vsyncadd (%p8495_p2), [#allocation10], 4294966784  ;;  %p8496_p4 = pmov %p8495_p2 }
 0x113   : > { %p8497_p0 = pmov %p8495_p2 }
 0x114   : > { %6342 = dma.done.wait (%p8496_p4), [#allocation13], 1024  }
 0x115   : > { %6344 = vsyncadd (%p8497_p0), [#allocation13], 4294966272  ;;  %p8498_p13 = pmov %p8497_p0 }
 0x116   : > { %p8499_p7 = pmov %p8497_p0 }
 0x117   : > { %6346 = dma.done.wait (%p8498_p13), [#allocation16], 2048  }
 0x118   : > { %6348 = vsyncadd (%p8499_p7), [#allocation16], 4294965248  ;;  %v615_v0 = vld [vmem:[#allocation11] sm:$0xff]  ;;  %v616_v1 = vld [vmem:[#allocation11 + $0x8] sm:$0xff]  ;;  %vm633_vm0 = vcmask 261120   ;;  %s6379_s21 = smov 96  }
 0x119   : > { %v617_v2 = vld [vmem:[#allocation11 + $0x10] sm:$0xff]  ;;  %v6824_v3 = vpack.c.bf16 %v616_v1, %v615_v0  ;;  %v618_v4 = vld [vmem:[#allocation11 + $0x18] sm:$0xff]  ;;  %v535_v5 = vld [vmem:[%s6788_s25 + $0x40] sm:$0xff]  ;;  %s6380_s28 = smov 64   ;;  %s6381_s8 = smov 32  }
 0x11a   : > { %v536_v6 = vld [vmem:[%s6788_s25 + $0x48] sm:$0xff]  ;;  %v6828_v7 = vpack.c.bf16 %v618_v4, %v617_v2  ;;  %v621_v9 = vld [vmem:[#allocation12] sm:$0xff]  ;;  %v537_v11 = vld [vmem:[%s6788_s25 + $0x50] sm:$0xff]  ;;  %s8599_s13 = sld [smem:[#allocation68_spill]]  ;;  %s8312_s18 = scalar_lea.vmem [#allocation17], %s6784_s9 }
 0x11b   : > { %v6830_v8 = vpack.c.bf16 %v536_v6, %v535_v5  ;;  %5648 = vmatprep.subr.bf16.mxu1 %v6824_v3  ;;  %v622_v10 = vld [vmem:[#allocation12 + $0x8] sm:$0xff]  ;;  %5120 = vmatprep.subr.bf16.mxu0 %v6824_v3  ;;  %v538_v12 = vld [vmem:[%s6788_s25 + $0x58] sm:$0xff]  ;;  %v539_v14 = vld [vmem:[%s6788_s25 + $0x60] sm:$0xff]  ;;  %s4855_s23 = sshll.u32 %s8493_s4, 11  ;;  %s4511_s22 = sshll.u32 %s8312_s18, 4  ;;  %s8334_s22 = int_to_ptr.vmem [resolvable:$true] %s4511_s22 }
 0x11c   : > { %5650 = vmatpush3.bf16.msra.mxu1 %v6824_v3  ;;  %v6840_v13 = vpack.c.bf16 %v622_v10, %v621_v9  ;;  %v540_v15 = vld [vmem:[%s6788_s25 + $0x68] sm:$0xff]  ;;  %5121 = vmatpush3.bf16.msra.mxu0 %v6824_v3  ;;  %v623_v16 = vld [vmem:[#allocation12 + $0x10] sm:$0xff]  ;;  %v624_v17 = vld [vmem:[#allocation12 + $0x18] sm:$0xff]  ;;  %v6846_v18 = vpack.c.bf16 %v538_v12, %v537_v11  ;;  %s8600_s14 = sld [smem:[#allocation30_spill]]  ;;  %s8601_s9 = sld [smem:[#allocation69_spill]] }
 0x11d   : > { %5132 = vmatprep.mubr.msk.bf16.mxu1 %vm633_vm0, %v6830_v8  ;;  %5649 = vmatprep.subr.bf16.mxu1 %v6828_v7  ;;  %v6849_v19 = vpack.c.bf16 %v540_v15, %v539_v14  ;;  %v6852_v20 = vpack.c.bf16 %v624_v17, %v623_v16  ;;  %v541_v21 = vld [vmem:[%s6788_s25 + $0x70] sm:$0xff]  ;;  %v527_v22 = vld [vmem:[%s6788_s25] sm:$0xff]  ;;  %v528_v23 = vld [vmem:[%s6788_s25 + $0x8] sm:$0xff]  ;;  %s6281_s4 = scalar_lea.vmem %s8334_s22, 2048  ;;  %s6382_s17 = smov [#allocation17]  }
 0x11e   : > { %5122 = vmatprep.subr.bf16.mxu0 %v6828_v7  ;;  %v529_v24 = vld [vmem:[%s6788_s25 + $0x10] sm:$0xff]  ;;  %v530_v25 = vld [vmem:[%s6788_s25 + $0x18] sm:$0xff]  ;;  %v6866_v27 = vpack.c.bf16 %v528_v23, %v527_v22  ;;  %v531_v29 = vld [vmem:[%s6788_s25 + $0x20] sm:$0xff]  ;;  %p6282_p9 = scmp.ne.s32.totalorder %s8334_s22, %s6281_s4  ;;  %s6285_s29 = sshll.u32 %s6382_s17, 4  ;;  %s6286_s29 = int_to_ptr.vmem [resolvable:$false] %s6285_s29 }
 0x11f   : > { %v542_v26 = vld [vmem:[%s6788_s25 + $0x78] sm:$0xff]  ;;  %v6868_v28 = vpack.c.bf16 %v530_v25, %v529_v24  ;;  %v532_v30 = vld [vmem:[%s6788_s25 + $0x28] sm:$0xff]  ;;  %v551_v31 = vld [vmem:[%s6796_s1] sm:$0xff]  ;;  %p6288_p3 = scmp.lt.s32.totalorder %s8334_s22, %s6286_s29 }
 0x120   : > { %5651 = vmatpush3.bf16.msra.mxu1 %v6828_v7  ;;  %5123 = vmatpush3.bf16.msra.mxu0 %v6828_v7  ;;  %v552_v32 = vld [vmem:[%s6796_s1 + $0x8] sm:$0xff]  ;;  %v6875_v33 = vpack.c.bf16 %v532_v30, %v531_v29  ;;  %v6879_v34 = vpack.c.bf16 %v542_v26, %v541_v21  ;;  %v533_v36 = vld [vmem:[%s6788_s25 + $0x30] sm:$0xff]  ;;  %v534_v37 = vld [vmem:[%s6788_s25 + $0x38] sm:$0xff]  ;;  %s4498_s25 = scalar_lea.sflag [#allocation5], %s6781_s15 }
 0x121   : > { %5140 = vmatprep.subr.bf16.mxu1 %v6840_v13  ;;  %5124 = vmatprep.mubr.msk.bf16.mxu0 %vm633_vm0, %v6866_v27  ;;  %v6884_v35 = vpack.c.bf16 %v552_v32, %v551_v31  ;;  %v6892_v38 = vpack.c.bf16 %v534_v37, %v533_v36  ;;  %v553_v39 = vld [vmem:[%s6796_s1 + $0x10] sm:$0xff]  ;;  %v554_v40 = vld [vmem:[%s6796_s1 + $0x18] sm:$0xff]  ;;  %v555_v41 = vld [vmem:[%s6796_s1 + $0x20] sm:$0xff] }
 0x122   : > { %v556_v42 = vld [vmem:[%s6796_s1 + $0x28] sm:$0xff]  ;;  %v6900_v43 = vpack.c.bf16 %v554_v40, %v553_v39  ;;  %v557_v45 = vld [vmem:[%s6796_s1 + $0x30] sm:$0xff]  ;;  %v558_v46 = vld [vmem:[%s6796_s1 + $0x38] sm:$0xff]  ;;  %s8332_s19 = scalar_lea.hbm %s8601_s9, %s4855_s23  ;;  %p8602_p12 = scmp.ne.s32.totalorder %s8600_s14, 0 }
 0x123   : > { %5133 = vmatmul.mubr.msk.bf16.vlgmr.msra.gmra.mrb[0].mxu1 %vm633_vm0, %v6846_v18  ;;  %5125 = vmatmul.mubr.msk.bf16.vlgmr.msra.gmra.mrb[0].mxu0 %vm633_vm0, %v6868_v28  ;;  %v6904_v44 = vpack.c.bf16 %v556_v42, %v555_v41  ;;  %v559_v47 = vld [vmem:[%s6796_s1 + $0x40] sm:$0xff]  ;;  %v560_v48 = vld [vmem:[%s6796_s1 + $0x48] sm:$0xff]  ;;  %v6914_v49 = vpack.c.bf16 %v558_v46, %v557_v45  ;;  %v561_v51 = vld [vmem:[%s6796_s1 + $0x50] sm:$0xff] }
 0x124   : > { %5141 = vmatpush3.bf16.msra.mxu1 %v6840_v13  ;;  %5136 = vmatprep.mubr.msk.bf16.mxu1 %vm633_vm0, %v6849_v19  ;;  %v6916_v50 = vpack.c.bf16 %v560_v48, %v559_v47  ;;  %v562_v52 = vld [vmem:[%s6796_s1 + $0x58] sm:$0xff]  ;;  %v563_v53 = vld [vmem:[%s6796_s1 + $0x60] sm:$0xff]  ;;  %v564_v54 = vld [vmem:[%s6796_s1 + $0x68] sm:$0xff]  ;;  %p6283_p10 = pnand %p6282_p9, %p8602_p12 }
 0x125   : > { %5142 = vmatprep.subr.bf16.mxu1 %v6852_v20  ;;  %5128 = vmatprep.mubr.msk.bf16.mxu0 %vm633_vm0, %v6875_v33  ;;  %8500 = vst [vmem:[#allocation32_spill] sm:$0xff] %v6904_v44  ;;  %8501 = vst [vmem:[#allocation33_spill] sm:$0xff] %v6914_v49  ;;  %v6926_v55 = vpack.c.bf16 %v562_v52, %v561_v51  ;;  %v6928_v56 = vpack.c.bf16 %v564_v54, %v563_v53  ;;  %v565_v57 = vld [vmem:[%s6796_s1 + $0x70] sm:$0xff]  ;;  %v566_v58 = vld [vmem:[%s6796_s1 + $0x78] sm:$0xff]  ;;  %s6287_s1 = scalar_lea.vmem %s6286_s29, 4096 }
 0x126   : > { %v6936_v59 = vpack.c.bf16 %v566_v58, %v565_v57  ;;  %1648 = vrot.lane.b32.xlu0 %v6884_v35, %s6379_s21  ;;  %1650 = vrot.lane.b32.xlu1 %v6900_v43, %s6379_s21  ;;  %p6284_p1 = pneg %p6283_p10  ;;  %p6289_p5 = scmp.lt.s32.totalorder %s6287_s1, %s6281_s4 }
 0x128   : > { %5143 = vmatpush3.bf16.msra.mxu1 %v6852_v20  ;;  %p6290_p8 = por %p6289_p5, %p6288_p3 }
 0x12a   : > { %p6291_p6 = pnand %p6290_p8, %p6284_p1 }
 0x12b   : > { %5137 = vmatmul.mubr.msk.bf16.gmra.mrb[4].mxu1 %vm633_vm0, %v6879_v34  ;;  %5129 = vmatmul.mubr.msk.bf16.gmra.mrb[4].mxu0 %vm633_vm0, %v6892_v38 }
 0x12c   : > { %5144 = vmatprep.mubr.msk.bf16.mxu1 %vm633_vm0, %v6884_v35 }
 0x133   : > { %5145 = vmatmul.mubr.msk.bf16.vlgmr.msra.gmra.mrb[8].mxu1 %vm633_vm0, %v6900_v43 }
 0x134   : > { %5148 = vmatprep.mubr.msk.bf16.mxu1 %vm633_vm0, %v6904_v44 }
 0x13b   : > { %5149 = vmatmul.mubr.msk.bf16.gmra.mrb[12].mxu1 %vm633_vm0, %v6914_v49 }
 0x13c   : > { %5152 = vmatprep.mubr.msk.bf16.mxu1 %vm633_vm0, %v6916_v50 }
 0x143   : > { %5153 = vmatmul.mubr.msk.bf16.gmra.mrb[16].mxu1 %vm633_vm0, %v6926_v55 }
 0x144   : > { %5156 = vmatprep.mubr.msk.bf16.mxu1 %vm633_vm0, %v6928_v56 }
 0x14b   : > { %5157 = vmatmul.mubr.msk.bf16.gmra.mrb[20].mxu1 %vm633_vm0, %v6936_v59 }
 0x1f6   : > { %v5134_v60 = vpop.f32.mrb[0].mxu1  ;;  %v5126_v5 = vpop.f32.mrb[0].mxu0 }
 0x1f7   : > { %v724_v61 = vpop.f32.mrb[1].mxu1  ;;  %v6944_v63 = vmul.f32 0.088388346, %v5134_v60  ;;  %v6954_v9 = vmul.f32 0.088388346, %v5126_v5  ;;  %v692_v10 = vpop.f32.mrb[1].mxu0 }
 0x1f8   : > { %v5135_v62 = vpop.f32.mrb[2].mxu1  ;;  %v6948_v2 = vmul.f32 0.088388346, %v724_v61  ;;  %v755_v12 = vmul.f32 0.088388346, %v692_v10  ;;  %v5127_v14 = vpop.f32.mrb[2].mxu0 }
 0x1f9   : > { %v6946_v0 = vmul.f32 0.088388346, %v5135_v62  ;;  %v727_v1 = vpop.f32.mrb[3].mxu1  ;;  %v6958_v15 = vmul.f32 0.088388346, %v5127_v14  ;;  %v695_v16 = vpop.f32.mrb[3].mxu0 }
 0x1fa   : > { %v6950_v4 = vmul.f32 0.088388346, %v727_v1  ;;  %v756_v21 = vmul.f32 0.088388346, %v695_v16 }
 0x1fb   : > { %v1018_v6 = vpack.c.bf16 %v6946_v0, %v6944_v63  ;;  %v1014_v23 = vpack.c.bf16 %v6958_v15, %v6954_v9  ;;  %v627_v9 = vld [vmem:[#allocation14] sm:$0xff]  ;;  %v629_v15 = vld [vmem:[#allocation14 + $0x10] sm:$0xff]  ;;  %v630_v0 = vld [vmem:[#allocation14 + $0x18] sm:$0xff] }
 0x1fc   : > { %v1017_v11 = vpack.c.bf16 %v6950_v4, %v6948_v2  ;;  %v1013_v25 = vpack.c.bf16 %v756_v21, %v755_v12  ;;  %v628_v2 = vld [vmem:[#allocation14 + $0x8] sm:$0xff]  ;;  %v1649_v4 = vpop.permute.xlu0 %1648 }
 0x1fd   : > { %v7020_v63 = vpack.c.bf16 %v628_v2, %v627_v9  ;;  %v7112_v9 = vld [vmem:[%s6806_s24 + $0x38] sm:$0xff] }
 0x1fe   : > { %v5138_v17 = vpop.f32.mrb[4].mxu1  ;;  %v5130_v36 = vpop.f32.mrb[4].mxu0  ;;  %5196 = vmatprep.mubr.msk.bf16.mxu1 %vm633_vm0, %v1013_v25  ;;  %8507 = vst [vmem:[#allocation39_spill] sm:$0xff] %v7112_v9  ;;  %vm1181_vm6 = vcmp.eq.s32.totalorder %v7112_v9, 0 }
 0x1ff   : > { %v740_v22 = vpop.f32.mrb[5].mxu1  ;;  %v6962_v26 = vmul.f32 0.088388346, %v5138_v17  ;;  %v6973_v39 = vmul.f32 0.088388346, %v5130_v36  ;;  %v708_v40 = vpop.f32.mrb[5].mxu0  ;;  %5160 = vmatprep.subr.bf16.mxu0 %v7020_v63 }
 0x200   : > { %v5139_v24 = vpop.f32.mrb[6].mxu1  ;;  %v6966_v31 = vmul.f32 0.088388346, %v740_v22  ;;  %v759_v42 = vmul.f32 0.088388346, %v708_v40  ;;  %v5131_v45 = vpop.f32.mrb[6].mxu0  ;;  %5161 = vmatpush3.bf16.msra.mxu0 %v7020_v63 }
 0x201   : > { %v6964_v29 = vmul.f32 0.088388346, %v5139_v24  ;;  %v743_v30 = vpop.f32.mrb[7].mxu1  ;;  %v762_v46 = vmul.f32 0.088388346, %v5131_v45  ;;  %v711_v47 = vpop.f32.mrb[7].mxu0 }
 0x202   : > { %v6968_v32 = vmul.f32 0.088388346, %v743_v30  ;;  %v760_v51 = vmul.f32 0.088388346, %v711_v47 }
 0x203   : > { %v1020_v37 = vpack.c.bf16 %v6964_v29, %v6962_v26  ;;  %v1016_v53 = vpack.c.bf16 %v762_v46, %v6973_v39  ;;  %v7025_v26 = vpack.c.bf16 %v630_v0, %v629_v15 }
 0x204   : > { %v1019_v41 = vpack.c.bf16 %v6968_v32, %v6966_v31  ;;  %v1015_v57 = vpack.c.bf16 %v760_v51, %v759_v42  ;;  %v577_v31 = vld [vmem:[%s6803_s16 + $0x10] sm:$0xff]  ;;  %v578_v32 = vld [vmem:[%s6803_s16 + $0x18] sm:$0xff] }
 0x205   : > { %5162 = vmatprep.subr.bf16.mxu0 %v7025_v26 }
 0x206   : > { %v5146_v48 = vpop.f32.mrb[8].mxu1  ;;  %5163 = vmatpush3.bf16.msra.mxu0 %v7025_v26 }
 0x207   : > { %v829_v52 = vpop.f32.mrb[9].mxu1 }
 0x208   : > { %v5147_v54 = vpop.f32.mrb[10].mxu1 }
 0x209   : > { %v1022_v58 = vpack.c.bf16 %v5147_v54, %v5146_v48  ;;  %v832_v60 = vpop.f32.mrb[11].mxu1 }
 0x20a   : > { %v1021_v61 = vpack.c.bf16 %v832_v60, %v829_v52 }
 0x20b   : > { %v1057_v17 = vsel %vm633_vm0, %v1022_v58, 0 }
 0x20c   : > { %v1054_v62 = vsel %vm633_vm0, %v1021_v61, 0  ;;  %5652 = vmatprep.subr.msk.bf16.mxu1 %vm633_vm0, %v1021_v61  ;;  %v581_v61 = vld [vmem:[%s6803_s16 + $0x30] sm:$0xff] }
 0x20d   : > { %5181 = vmatpush3.bf16.xpose.msra.mxu1 %v1054_v62  ;;  %v582_v62 = vld [vmem:[%s6803_s16 + $0x38] sm:$0xff] }
 0x20e   : > { %5653 = vmatprep.subr.msk.bf16.mxu1 %vm633_vm0, %v1022_v58  ;;  %v5150_v1 = vpop.f32.mrb[12].mxu1 }
 0x20f   : > { %v845_v5 = vpop.f32.mrb[13].mxu1 }
 0x210   : > { %v5151_v10 = vpop.f32.mrb[14].mxu1 }
 0x211   : > { %v1024_v12 = vpack.c.bf16 %v5151_v10, %v5150_v1  ;;  %v848_v14 = vpop.f32.mrb[15].mxu1  ;;  %v583_v1 = vld [vmem:[%s6803_s16 + $0x40] sm:$0xff]  ;;  %v584_v10 = vld [vmem:[%s6803_s16 + $0x48] sm:$0xff] }
 0x212   : > { %v1023_v16 = vpack.c.bf16 %v848_v14, %v845_v5  ;;  %v7049_v5 = vpack.c.bf16 %v582_v62, %v581_v61  ;;  %v585_v14 = vld [vmem:[%s6803_s16 + $0x50] sm:$0xff] }
 0x213   : > { %v1063_v51 = vsel %vm633_vm0, %v1024_v12, 0 }
 0x214   : > { %v1060_v39 = vsel %vm633_vm0, %v1023_v16, 0 }
 0x215   : > { %5183 = vmatpush3.bf16.xpose.msra.mxu1 %v1057_v17  ;;  %v587_v17 = vld [vmem:[%s6803_s16 + $0x60] sm:$0xff] }
 0x216   : > { %5654 = vmatprep.subr.msk.bf16.mxu1 %vm633_vm0, %v1023_v16  ;;  %v5154_v21 = vpop.f32.mrb[16].mxu1  ;;  %v586_v16 = vld [vmem:[%s6803_s16 + $0x58] sm:$0xff] }
 0x217   : > { %v861_v22 = vpop.f32.mrb[17].mxu1 }
 0x218   : > { %v5155_v24 = vpop.f32.mrb[18].mxu1 }
 0x219   : > { %v1026_v25 = vpack.c.bf16 %v5155_v24, %v5154_v21  ;;  %v864_v30 = vpop.f32.mrb[19].mxu1  ;;  %v588_v21 = vld [vmem:[%s6803_s16 + $0x68] sm:$0xff] }
 0x21a   : > { %v1025_v36 = vpack.c.bf16 %v864_v30, %v861_v22  ;;  %v7064_v22 = vpack.c.bf16 %v586_v16, %v585_v14  ;;  %v7066_v24 = vpack.c.bf16 %v588_v21, %v587_v17  ;;  %v590_v30 = vld [vmem:[%s6803_s16 + $0x78] sm:$0xff]  ;;  %v7166_v17 = vld [vmem:[%s6806_s24 + $0x48] sm:$0xff] }
 0x21b   : > { %v1069_v54 = vsel %vm633_vm0, %v1026_v25, 0  ;;  %8513 = vst [vmem:[#allocation45_spill] sm:$0xff] %v7166_v17  ;;  %vm8451_vm12 = vcmp.eq.s32.totalorder %v7166_v17, 0 }
 0x21c   : > { %v1066_v52 = vsel %vm633_vm0, %v1025_v36, 0 }
 0x21d   : > { %5185 = vmatpush3.bf16.xpose.msra.mxu1 %v1060_v39  ;;  %v7079_v39 = vld [vmem:[%s6806_s24 + $0x10] sm:$0xff] }
 0x21e   : > { %5655 = vmatprep.subr.msk.bf16.mxu1 %vm633_vm0, %v1024_v12  ;;  %v5158_v40 = vpop.f32.mrb[20].mxu1  ;;  %v7054_v12 = vpack.c.bf16 %v584_v10, %v583_v1  ;;  %vm1176_vm1 = vcmp.eq.s32.totalorder %v7079_v39, 0  ;;  %v7159_v10 = vld [vmem:[%s6806_s24 + $0x40] sm:$0xff] }
 0x21f   : > { %v877_v42 = vpop.f32.mrb[21].mxu1  ;;  %8512 = vst [vmem:[#allocation44_spill] sm:$0xff] %v7159_v10  ;;  %vm1182_vm11 = vcmp.eq.s32.totalorder %v7159_v10, 0 }
 0x220   : > { %v5159_v45 = vpop.f32.mrb[22].mxu1 }
 0x221   : > { %v1028_v46 = vpack.c.bf16 %v5159_v45, %v5158_v40  ;;  %v880_v47 = vpop.f32.mrb[23].mxu1  ;;  %v7082_v40 = vld [vmem:[%s6806_s24] sm:$0xff] }
 0x222   : > { %v1027_v48 = vpack.c.bf16 %v880_v47, %v877_v42  ;;  %8503 = vst [vmem:[#allocation35_spill] sm:$0xff] %v7082_v40  ;;  %vm1174_vm2 = vcmp.eq.s32.totalorder %v7082_v40, 0  ;;  %v7087_v42 = vld [vmem:[%s6806_s24 + $0x18] sm:$0xff] }
 0x223   : > { %v1075_v60 = vsel %vm633_vm0, %v1028_v46, 0  ;;  %8504 = vst [vmem:[#allocation36_spill] sm:$0xff] %v7087_v42  ;;  %vm1177_vm3 = vcmp.eq.s32.totalorder %v7087_v42, 0 }
 0x224   : > { %v1072_v58 = vsel %vm633_vm0, %v1027_v48, 0 }
 0x225   : > { %5187 = vmatpush3.bf16.xpose.msra.mxu1 %v1063_v51 }
 0x226   : > { %5656 = vmatprep.subr.msk.bf16.mxu1 %vm633_vm0, %v1025_v36 }
 0x22d   : > { %5189 = vmatpush3.bf16.xpose.msra.mxu1 %v1066_v52 }
 0x22e   : > { %5657 = vmatprep.subr.msk.bf16.mxu1 %vm633_vm0, %v1026_v25  ;;  %v589_v25 = vld [vmem:[%s6803_s16 + $0x70] sm:$0xff] }
 0x22f   : > { %v7074_v36 = vpack.c.bf16 %v590_v30, %v589_v25 }
 0x231   : > { %8502 = vst [vmem:[#allocation34_spill] sm:$0xff] %v7074_v36 }
 0x235   : > { %5191 = vmatpush3.bf16.xpose.msra.mxu1 %v1069_v54 }
 0x236   : > { %5658 = vmatprep.subr.msk.bf16.mxu1 %vm633_vm0, %v1027_v48 }
 0x23d   : > { %5193 = vmatpush3.bf16.xpose.msra.mxu1 %v1072_v58  ;;  %v7105_v58 = vld [vmem:[%s6806_s24 + $0x30] sm:$0xff] }
 0x23e   : > { %5659 = vmatprep.subr.msk.bf16.mxu1 %vm633_vm0, %v1028_v46  ;;  %v7090_v46 = vld [vmem:[%s6806_s24 + $0x8] sm:$0xff]  ;;  %8506 = vst [vmem:[#allocation38_spill] sm:$0xff] %v7105_v58  ;;  %vm1180_vm5 = vcmp.eq.s32.totalorder %v7105_v58, 0 }
 0x23f   : > { %8505 = vst [vmem:[#allocation37_spill] sm:$0xff] %v7090_v46  ;;  %vm1175_vm4 = vcmp.eq.s32.totalorder %v7090_v46, 0 }
 0x245   : > { %5195 = vmatpush3.bf16.xpose.msra.mxu1 %v1075_v60 }
 0x246   : > { %5264 = vmatprep.subr.bf16.mxu1 %v6840_v13 }
 0x24c   : > { %5197 = vmatmul.mubr.msk.bf16.vlgmr.msra.gmra.mrb[24].mxu1 %vm633_vm0, %v1014_v23  ;;  %v576_v23 = vld [vmem:[%s6803_s16 + $0x8] sm:$0xff] }
 0x24d   : > { %5200 = vmatprep.mubr.msk.bf16.mxu1 %vm633_vm0, %v1015_v57  ;;  %5265 = vmatpush3.bf16.msra.mxu1 %v6840_v13 }
 0x24e   : > { %5266 = vmatprep.subr.bf16.mxu1 %v6852_v20 }
 0x251   : > { %5267 = vmatpush3.bf16.msra.mxu1 %v6852_v20 }
 0x254   : > { %5201 = vmatmul.mubr.msk.bf16.gmra.mrb[28].mxu1 %vm633_vm0, %v1016_v53  ;;  %v580_v53 = vld [vmem:[%s6803_s16 + $0x28] sm:$0xff] }
 0x255   : > { %5204 = vmatprep.mubr.msk.bf16.mxu1 %vm633_vm0, %v1017_v11  ;;  %v1651_v11 = vpop.permute.xlu1 %1650 }
 0x25c   : > { %5205 = vmatmul.mubr.msk.bf16.gmra.mrb[32].mxu1 %vm633_vm0, %v1018_v6  ;;  %v575_v6 = vld [vmem:[%s6803_s16] sm:$0xff] }
 0x25d   : > { %5208 = vmatprep.mubr.msk.bf16.mxu1 %vm633_vm0, %v1019_v41  ;;  %v7028_v29 = vpack.c.bf16 %v576_v23, %v575_v6  ;;  %v579_v41 = vld [vmem:[%s6803_s16 + $0x20] sm:$0xff]  ;;  %v7130_v6 = vld [vmem:[%s6806_s24 + $0x28] sm:$0xff] }
 0x25e   : > { %v7044_v57 = vpack.c.bf16 %v580_v53, %v579_v41  ;;  %8509 = vst [vmem:[#allocation41_spill] sm:$0xff] %v7130_v6  ;;  %v7139_v41 = vld [vmem:[%s6806_s24 + $0x50] sm:$0xff]  ;;  %vm1179_vm8 = vcmp.eq.s32.totalorder %v7130_v6, 0  ;;  %v7144_v53 = vld [vmem:[%s6806_s24 + $0x58] sm:$0xff] }
 0x25f   : > { %5164 = vmatprep.mubr.msk.bf16.mxu0 %vm633_vm0, %v7028_v29  ;;  %8510 = vst [vmem:[#allocation42_spill] sm:$0xff] %v7139_v41  ;;  %8511 = vst [vmem:[#allocation43_spill] sm:$0xff] %v7144_v53  ;;  %vm1184_vm9 = vcmp.eq.s32.totalorder %v7139_v41, 0  ;;  %vm1185_vm10 = vcmp.eq.s32.totalorder %v7144_v53, 0 }
 0x264   : > { %5209 = vmatmul.mubr.msk.bf16.gmra.mrb[36].mxu1 %vm633_vm0, %v1020_v37  ;;  %v7037_v37 = vpack.c.bf16 %v578_v32, %v577_v31 }
 0x265   : > { %5268 = vmatprep.mubr.msk.bf16.mxu1 %vm633_vm0, %v1649_v4 }
 0x266   : > { %5165 = vmatmul.mubr.msk.bf16.vlgmr.msra.gmra.mrb[8].mxu0 %vm633_vm0, %v7037_v37 }
 0x267   : > { %5168 = vmatprep.mubr.msk.bf16.mxu0 %vm633_vm0, %v7044_v57 }
 0x26c   : > { %5269 = vmatmul.mubr.msk.bf16.vlgmr.msra.gmra.mrb[40].mxu1 %vm633_vm0, %v1651_v11  ;;  %v7123_v11 = vld [vmem:[%s6806_s24 + $0x20] sm:$0xff] }
 0x26d   : > { %8508 = vst [vmem:[#allocation40_spill] sm:$0xff] %v7123_v11  ;;  %vm1178_vm7 = vcmp.eq.s32.totalorder %v7123_v11, 0 }
 0x26e   : > { %5169 = vmatmul.mubr.msk.bf16.gmra.mrb[12].mxu0 %vm633_vm0, %v7049_v5 }
 0x26f   : > { %5172 = vmatprep.mubr.msk.bf16.mxu0 %vm633_vm0, %v7054_v12 }
 0x276   : > { %5173 = vmatmul.mubr.msk.bf16.gmra.mrb[16].mxu0 %vm633_vm0, %v7064_v22 }
 0x277   : > { %5176 = vmatprep.mubr.msk.bf16.mxu0 %vm633_vm0, %v7066_v24 }
 0x27e   : > { %5177 = vmatmul.mubr.msk.bf16.gmra.mrb[20].mxu0 %vm633_vm0, %v7074_v36 }
 0x31f   : > { %v5198_v45 = vpop.f32.mrb[24].mxu1 }
 0x320   : > { %v1111_v47 = vpop.f32.mrb[25].mxu1  ;;  %v7094_v48 = vsel %vm1176_vm1, -1e+20, %v5198_v45  ;;  %v7175_v45 = vld [vmem:[%s6806_s24 + $0x70] sm:$0xff] }
 0x321   : > { %1210 = vmax.xlane.f32.xlu1 %v7094_v48  ;;  %v5199_v51 = vpop.f32.mrb[26].mxu1  ;;  %v7099_v52 = vsel %vm1174_vm2, -1e+20, %v1111_v47  ;;  %8514 = vst [vmem:[#allocation46_spill] sm:$0xff] %v7175_v45  ;;  %vm1188_vm13 = vcmp.eq.s32.totalorder %v7175_v45, 0 }
 0x322   : > { %1206 = vmax.xlane.f32.xlu0 %v7099_v52  ;;  %v1114_v54 = vpop.f32.mrb[27].mxu1  ;;  %v7109_v60 = vsel %vm1177_vm3, -1e+20, %v5199_v51 }
 0x323   : > { %v7117_v2 = vsel %vm1175_vm4, -1e+20, %v1114_v54 }
 0x325   : > { %1212 = vmax.xlane.f32.xlu1 %v7109_v60 }
 0x326   : > { %1208 = vmax.xlane.f32.xlu0 %v7117_v2 }
 0x327   : > { %v5202_v4 = vpop.f32.mrb[28].mxu1 }
 0x328   : > { %v1127_v15 = vpop.f32.mrb[29].mxu1  ;;  %v7127_v0 = vsel %vm1180_vm5, -1e+20, %v5202_v4  ;;  %v7191_v4 = vld [vmem:[%s6806_s24 + $0x60] sm:$0xff] }
 0x329   : > { %v5203_v23 = vpop.f32.mrb[30].mxu1  ;;  %v7148_v61 = vsel %vm1178_vm7, -1e+20, %v1127_v15  ;;  %8515 = vst [vmem:[#allocation47_spill] sm:$0xff] %v7191_v4  ;;  %vm8420_vm14 = vcmp.eq.s32.totalorder %v7191_v4, 0 }
 0x32a   : > { %1218 = vmax.xlane.f32.xlu0 %v7127_v0  ;;  %v1130_v31 = vpop.f32.mrb[31].mxu1  ;;  %v7135_v32 = vsel %vm1181_vm6, -1e+20, %v5203_v23 }
 0x32b   : > { %1220 = vmax.xlane.f32.xlu1 %v7135_v32  ;;  %v7154_v62 = vsel %vm1179_vm8, -1e+20, %v1130_v31 }
 0x32e   : > { %1214 = vmax.xlane.f32.xlu0 %v7148_v61 }
 0x32f   : > { %1216 = vmax.xlane.f32.xlu1 %v7154_v62  ;;  %v5206_v1 = vpop.f32.mrb[32].mxu1 }
 0x330   : > { %v1143_v14 = vpop.f32.mrb[33].mxu1  ;;  %v7163_v16 = vsel %vm1184_vm9, -1e+20, %v5206_v1 }
 0x331   : > { %v5207_v21 = vpop.f32.mrb[34].mxu1  ;;  %v7181_v47 = vsel %vm1182_vm11, -1e+20, %v1143_v14 }
 0x332   : > { %1226 = vmax.xlane.f32.xlu0 %v7163_v16  ;;  %v1146_v25 = vpop.f32.mrb[35].mxu1  ;;  %v7171_v30 = vsel %vm1185_vm10, -1e+20, %v5207_v21  ;;  %v7209_v21 = vld [vmem:[%s6806_s24 + $0x78] sm:$0xff] }
 0x333   : > { %1228 = vmax.xlane.f32.xlu1 %v7171_v30  ;;  %v7187_v51 = vsel %vm8451_vm12, -1e+20, %v1146_v25  ;;  %8516 = vst [vmem:[#allocation48_spill] sm:$0xff] %v7209_v21  ;;  %vm1189_vm15 = vcmp.eq.s32.totalorder %v7209_v21, 0  ;;  %v7213_v25 = vld [vmem:[%s6806_s24 + $0x68] sm:$0xff] }
 0x334   : > { %8517 = vst [vmem:[#allocation49_spill] sm:$0xff] %v7213_v25 }
 0x336   : > { %1222 = vmax.xlane.f32.xlu0 %v7181_v47 }
 0x337   : > { %1224 = vmax.xlane.f32.xlu1 %v7187_v51  ;;  %v5210_v54 = vpop.f32.mrb[36].mxu1 }
 0x338   : > { %v1159_v15 = vpop.f32.mrb[37].mxu1  ;;  %v7195_v23 = vsel %vm1188_vm13, -1e+20, %v5210_v54 }
 0x339   : > { %v5211_v31 = vpop.f32.mrb[38].mxu1  ;;  %v7201_v14 = vsel %vm8420_vm14, -1e+20, %v1159_v15  ;;  %vm1187_vm14 = vcmp.eq.s32.totalorder %v7213_v25, 0  ;;  %v5166_v58 = vpop.f32.mrb[8].mxu0 }
 0x33a   : > { %1234 = vmax.xlane.f32.xlu0 %v7195_v23  ;;  %v1162_v1 = vpop.f32.mrb[39].mxu1  ;;  %v7217_v54 = vsel %vm1189_vm15, -1e+20, %v5211_v31 }
 0x33b   : > { %v7223_v15 = vsel %vm1187_vm14, -1e+20, %v1162_v1 }
 0x33e   : > { %1230 = vmax.xlane.f32.xlu0 %v7201_v14 }
 0x348   : > { %1654 = vrot.lane.b32.xlu1 %v6914_v49, %s6379_s21 }
 0x354   : > { %1652 = vrot.lane.b32.xlu0 %v6904_v44, %s6379_s21  ;;  %v5270_v44 = vpop.f32.mrb[40].mxu1 }
 0x355   : > { %v1722_v49 = vpop.f32.mrb[41].mxu1 }
 0x356   : > { %v5271_v4 = vpop.f32.mrb[42].mxu1 }
 0x357   : > { %v1939_v45 = vpack.c.bf16 %v5271_v4, %v5270_v44  ;;  %v1725_v10 = vpop.f32.mrb[43].mxu1 }
 0x358   : > { %v1938_v17 = vpack.c.bf16 %v1725_v10, %v1722_v49  ;;  %v950_v10 = vpop.f32.mrb[9].mxu0 }
 0x35a   : > { %v1971_v53 = vsel %vm633_vm0, %v1938_v17, 0  ;;  %5660 = vmatprep.subr.msk.bf16.mxu1 %vm633_vm0, %v1938_v17  ;;  %v1974_v17 = vsel %vm633_vm0, %v1939_v45, 0 }
 0x35b   : > { %5305 = vmatpush3.bf16.xpose.msra.mxu1 %v1971_v53 }
 0x35c   : > { %5661 = vmatprep.subr.msk.bf16.mxu1 %vm633_vm0, %v1939_v45 }
 0x363   : > { %5307 = vmatpush3.bf16.xpose.msra.mxu1 %v1974_v17 }
 0x36c   : > { %1236 = vmax.xlane.f32.xlu1 %v7217_v54 }
 0x370   : > { %1232 = vmax.xlane.f32.xlu1 %v7223_v15 }
 0x3ae   : > { %v1211_v41 = vpop.xlane.xlu1 %1210 }
 0x3af   : > { %v1240_v31 = vsub.f32 %v7094_v48, %v1211_v41  ;;  %v1207_v21 = vpop.xlane.xlu0 %1206  ;;  %v5167_v41 = vpop.f32.mrb[10].mxu0 }
 0x3b0   : > { %v1238_v25 = vsub.f32 %v7099_v52, %v1207_v21  ;;  %v1359_v52 = vpack.c.bf16 %v5167_v41, %v5166_v58  ;;  %v953_v53 = vpop.f32.mrb[11].mxu0 }
 0x3b1   : > { %v1258_v1 = vmul.f32 1.442695, %v1240_v31  ;;  %v1358_v21 = vpack.c.bf16 %v953_v53, %v950_v10 }
 0x3b2   : > { %v1254_v11 = vmul.f32 1.442695, %v1238_v25  ;;  %v1213_v6 = vpop.xlane.xlu1 %1212 }
 0x3b3   : > { %5793 = vpow2.f32 %v1258_v1  ;;  %v1241_v44 = vsub.f32 %v7109_v60, %v1213_v6  ;;  %v1209_v49 = vpop.xlane.xlu0 %1208  ;;  %5212 = vmatprep.subr.bf16.mxu0 %v1358_v21 }
 0x3b4   : > { %5795 = vpow2.f32 %v1254_v11  ;;  %v1239_v48 = vsub.f32 %v7117_v2, %v1209_v49  ;;  %5213 = vmatpush3.bf16.msra.mxu0 %v1358_v21 }
 0x3b5   : > { %v1260_v4 = vmul.f32 1.442695, %v1241_v44  ;;  %5214 = vmatprep.subr.bf16.mxu0 %v1359_v52 }
 0x3b6   : > { %v1256_v31 = vmul.f32 1.442695, %v1239_v48 }
 0x3b7   : > { %5797 = vpow2.f32 %v1260_v4  ;;  %v1219_v25 = vpop.xlane.xlu0 %1218 }
 0x3b8   : > { %v1244_v9 = vsub.f32 %v7127_v0, %v1219_v25  ;;  %v1221_v1 = vpop.xlane.xlu1 %1220  ;;  %5799 = vpow2.f32 %v1256_v31  ;;  %5215 = vmatpush3.bf16.msra.mxu0 %v1359_v52 }
 0x3b9   : > { %v1245_v2 = vsub.f32 %v7135_v32, %v1221_v1 }
 0x3ba   : > { %v1266_v60 = vmul.f32 1.442695, %v1244_v9 }
 0x3bb   : > { %v1215_v11 = vpop.xlane.xlu0 %1214  ;;  %v1268_v9 = vmul.f32 1.442695, %v1245_v2 }
 0x3bc   : > { %5801 = vpow2.f32 %v1266_v60  ;;  %v1242_v58 = vsub.f32 %v7148_v61, %v1215_v11  ;;  %v1217_v6 = vpop.xlane.xlu1 %1216 }
 0x3bd   : > { %v7237_v45 = vpop.eup %5793  ;;  %v1243_v44 = vsub.f32 %v7154_v62, %v1217_v6 }
 0x3be   : > { %v7240_v0 = vpop.eup %5795  ;;  %v1262_v49 = vmul.f32 1.442695, %v1242_v58  ;;  %1290 = vadd.xlane.f32.xlu1 %v7237_v45 }
 0x3bf   : > { %v1264_v10 = vmul.f32 1.442695, %v1243_v44  ;;  %v1227_v48 = vpop.xlane.xlu0 %1226  ;;  %1286 = vadd.xlane.f32.xlu0 %v7240_v0 }
 0x3c0   : > { %5803 = vpow2.f32 %v1262_v49  ;;  %v1248_v32 = vsub.f32 %v7163_v16, %v1227_v48  ;;  %v1229_v61 = vpop.xlane.xlu1 %1228 }
 0x3c1   : > { %v7245_v41 = vpop.eup %5797  ;;  %5805 = vpow2.f32 %v1264_v10  ;;  %v1249_v62 = vsub.f32 %v7171_v30, %v1229_v61  ;;  %v5170_v30 = vpop.f32.mrb[12].mxu0 }
 0x3c2   : > { %v1274_v4 = vmul.f32 1.442695, %v1248_v32  ;;  %1292 = vadd.xlane.f32.xlu1 %v7245_v41  ;;  %5807 = vpow2.f32 %v1268_v9  ;;  %v7250_v21 = vpop.eup %5799  ;;  %v966_v2 = vpop.f32.mrb[13].mxu0 }
 0x3c3   : > { %v1223_v17 = vpop.xlane.xlu0 %1222  ;;  %v1276_v31 = vmul.f32 1.442695, %v1249_v62 }
 0x3c4   : > { %5809 = vpow2.f32 %v1274_v4  ;;  %v1246_v52 = vsub.f32 %v7181_v47, %v1223_v17  ;;  %v1225_v53 = vpop.xlane.xlu1 %1224  ;;  %v5171_v47 = vpop.f32.mrb[14].mxu0 }
 0x3c5   : > { %v1247_v16 = vsub.f32 %v7187_v51, %v1225_v53  ;;  %v1361_v6 = vpack.c.bf16 %v5171_v47, %v5170_v30  ;;  %v969_v44 = vpop.f32.mrb[15].mxu0 }
 0x3c6   : > { %v7253_v25 = vpop.eup %5801  ;;  %v1270_v1 = vmul.f32 1.442695, %v1246_v52  ;;  %1288 = vadd.xlane.f32.xlu1 %v7250_v21  ;;  %v1360_v9 = vpack.c.bf16 %v969_v44, %v966_v2  ;;  %v5174_v4 = vpop.f32.mrb[16].mxu0 }
 0x3c7   : > { %v1235_v60 = vpop.xlane.xlu0 %1234  ;;  %1298 = vadd.xlane.f32.xlu0 %v7253_v25  ;;  %v1272_v58 = vmul.f32 1.442695, %v1247_v16  ;;  %v982_v52 = vpop.f32.mrb[17].mxu0 }
 0x3c8   : > { %5811 = vpow2.f32 %v1270_v1  ;;  %v1252_v11 = vsub.f32 %v7195_v23, %v1235_v60  ;;  %5216 = vmatprep.subr.bf16.mxu0 %v1360_v9  ;;  %v1655_v53 = vpop.permute.xlu1 %1654 }
 0x3c9   : > { %5813 = vpow2.f32 %v1276_v31  ;;  %5217 = vmatpush3.bf16.msra.mxu0 %v1360_v9 }
 0x3ca   : > { %v7258_v49 = vpop.eup %5803  ;;  %v1282_v51 = vmul.f32 1.442695, %v1252_v11  ;;  %5218 = vmatprep.subr.bf16.mxu0 %v1361_v6 }
 0x3cb   : > { %v7260_v10 = vpop.eup %5805  ;;  %1294 = vadd.xlane.f32.xlu0 %v7258_v49  ;;  %v1231_v48 = vpop.xlane.xlu0 %1230 }
 0x3cc   : > { %5815 = vpow2.f32 %v1282_v51  ;;  %v1250_v32 = vsub.f32 %v7201_v14, %v1231_v48  ;;  %1296 = vadd.xlane.f32.xlu1 %v7260_v10  ;;  %v7265_v23 = vpop.eup %5807  ;;  %v5175_v14 = vpop.f32.mrb[18].mxu0 }
 0x3cd   : > { %5817 = vpow2.f32 %v1272_v58  ;;  %v985_v31 = vpop.f32.mrb[19].mxu0  ;;  %5219 = vmatpush3.bf16.msra.mxu0 %v1361_v6  ;;  %v1363_v2 = vpack.c.bf16 %v5175_v14, %v5174_v4 }
 0x3ce   : > { %v7267_v61 = vpop.eup %5809  ;;  %v1278_v62 = vmul.f32 1.442695, %v1250_v32  ;;  %v1362_v1 = vpack.c.bf16 %v985_v31, %v982_v52  ;;  %v5178_v11 = vpop.f32.mrb[20].mxu0 }
 0x3cf   : > { %1300 = vadd.xlane.f32.xlu0 %v7265_v23  ;;  %v1653_v17 = vpop.permute.xlu0 %1652  ;;  %v998_v58 = vpop.f32.mrb[21].mxu0 }
 0x3d0   : > { %5819 = vpow2.f32 %v1278_v62  ;;  %5272 = vmatprep.mubr.msk.bf16.mxu1 %vm633_vm0, %v1653_v17  ;;  %1306 = vadd.xlane.f32.xlu1 %v7267_v61  ;;  %v5179_v6 = vpop.f32.mrb[22].mxu0 }
 0x3d1   : > { %5273 = vmatmul.mubr.msk.bf16.gmra.mrb[44].mxu1 %vm633_vm0, %v1655_v53  ;;  %5220 = vmatprep.subr.bf16.mxu0 %v1362_v1  ;;  %v1001_v44 = vpop.f32.mrb[23].mxu0  ;;  %v1365_v48 = vpack.c.bf16 %v5179_v6, %v5178_v11 }
 0x3d2   : > { %v7273_v16 = vpop.eup %5811  ;;  %5221 = vmatpush3.bf16.msra.mxu0 %v1362_v1  ;;  %v1364_v9 = vpack.c.bf16 %v1001_v44, %v998_v58 }
 0x3d3   : > { %v7275_v30 = vpop.eup %5813  ;;  %1302 = vadd.xlane.f32.xlu0 %v7273_v16  ;;  %5222 = vmatprep.subr.bf16.mxu0 %v1363_v2 }
 0x3d4   : > { %1308 = vadd.xlane.f32.xlu1 %v7275_v30 }
 0x3d6   : > { %v7279_v60 = vpop.eup %5815  ;;  %5223 = vmatpush3.bf16.msra.mxu0 %v1363_v2 }
 0x3d7   : > { %v7281_v47 = vpop.eup %5817  ;;  %1314 = vadd.xlane.f32.xlu0 %v7279_v60  ;;  %5224 = vmatprep.subr.bf16.mxu0 %v1364_v9 }
 0x3d8   : > { %1304 = vadd.xlane.f32.xlu1 %v7281_v47 }
 0x3da   : > { %v7285_v51 = vpop.eup %5819  ;;  %5225 = vmatpush3.bf16.msra.mxu0 %v1364_v9 }
 0x3db   : > { %1310 = vadd.xlane.f32.xlu0 %v7285_v51  ;;  %5226 = vmatprep.subr.bf16.mxu0 %v1365_v48 }
 0x3de   : > { %5227 = vmatpush3.bf16.msra.mxu0 %v1365_v48 }
 0x3df   : > { %5244 = vmatprep.subr.bf16.mxu0 %v6824_v3 }
 0x3e9   : > { %1658 = vrot.lane.b32.xlu1 %v6926_v55, %s6379_s21 }
 0x3ed   : > { %1660 = vrot.lane.b32.xlu1 %v6928_v56, %s6379_s21 }
 0x3f9   : > { %v1237_v32 = vpop.xlane.xlu1 %1236 }
 0x3fa   : > { %v1253_v62 = vsub.f32 %v7217_v54, %v1237_v32 }
 0x3fc   : > { %v1284_v4 = vmul.f32 1.442695, %v1253_v62 }
 0x3fd   : > { %v1233_v17 = vpop.xlane.xlu1 %1232 }
 0x3fe   : > { %5821 = vpow2.f32 %v1284_v4  ;;  %v1251_v52 = vsub.f32 %v7223_v15, %v1233_v17 }
 0x400   : > { %v1280_v53 = vmul.f32 1.442695, %v1251_v52 }
 0x402   : > { %5823 = vpow2.f32 %v1280_v53 }
 0x408   : > { %v7295_v14 = vpop.eup %5821 }
 0x409   : > { %1316 = vadd.xlane.f32.xlu0 %v7295_v14 }
 0x40c   : > { %v7298_v31 = vpop.eup %5823 }
 0x411   : > { %1312 = vadd.xlane.f32.xlu1 %v7298_v31 }
 0x41f   : > { %1656 = vrot.lane.b32.xlu0 %v6916_v50, %s6379_s21 }
 0x422   : > { %1662 = vrot.lane.b32.xlu1 %v6936_v59, %s6379_s21 }
 0x423   : > { %1487 = vrot.lane.b32.xlu0 %v6866_v27, %s6379_s21 }
 0x426   : > { %1489 = vrot.lane.b32.xlu1 %v6868_v28, %s6379_s21 }
 0x427   : > { %1491 = vrot.lane.b32.xlu0 %v6875_v33, %s6379_s21 }
 0x42a   : > { %1493 = vrot.lane.b32.xlu1 %v6892_v38, %s6379_s21 }
 0x42b   : > { %1495 = vrot.lane.b32.xlu0 %v6830_v8, %s6379_s21 }
 0x42e   : > { %1497 = vrot.lane.b32.xlu1 %v6846_v18, %s6379_s21 }
 0x42f   : > { %1499 = vrot.lane.b32.xlu0 %v6849_v19, %s6379_s21 }
 0x432   : > { %1501 = vrot.lane.b32.xlu1 %v6879_v34, %s6379_s21 }
 0x433   : > { %1793 = vrot.lane.b32.xlu0 %v7028_v29, %s6379_s21 }
 0x436   : > { %1795 = vrot.lane.b32.xlu1 %v7037_v37, %s6379_s21 }
 0x437   : > { %1797 = vrot.lane.b32.xlu0 %v7044_v57, %s6379_s21 }
 0x43a   : > { %1799 = vrot.lane.b32.xlu1 %v7049_v5, %s6379_s21 }
 0x43b   : > { %1801 = vrot.lane.b32.xlu0 %v7054_v12, %s6379_s21 }
 0x43e   : > { %1803 = vrot.lane.b32.xlu1 %v7064_v22, %s6379_s21 }
 0x43f   : > { %1805 = vrot.lane.b32.xlu0 %v7066_v24, %s6379_s21 }
 0x442   : > { %1807 = vrot.lane.b32.xlu1 %v7074_v36, %s6379_s21 }
 0x443   : > { %2598 = vrot.lane.b32.xlu0 %v6884_v35, %s6380_s28 }
 0x446   : > { %2600 = vrot.lane.b32.xlu1 %v6900_v43, %s6380_s28 }
 0x44b   : > { %v1291_v54 = vpop.xlane.xlu1 %1290 }
 0x44c   : > { %v1287_v15 = vpop.xlane.xlu0 %1286 }
 0x44f   : > { %v1293_v1 = vpop.xlane.xlu1 %1292 }
 0x450   : > { %5825 = vrcp.f32 %v1293_v1 }
 0x451   : > { %5827 = vrcp.f32 %v1287_v15 }
 0x452   : > { %5829 = vrcp.f32 %v1291_v54 }
 0x453   : > { %v1289_v2 = vpop.xlane.xlu1 %1288 }
 0x454   : > { %5831 = vrcp.f32 %v1289_v2  ;;  %v1299_v11 = vpop.xlane.xlu0 %1298 }
 0x458   : > { %v1295_v58 = vpop.xlane.xlu0 %1294 }
 0x459   : > { %5833 = vrcp.f32 %v1295_v58  ;;  %v1297_v6 = vpop.xlane.xlu1 %1296 }
 0x45a   : > { %5835 = vrcp.f32 %v1297_v6  ;;  %v5826_v44 = vpop.eup %5825 }
 0x45b   : > { %5837 = vrcp.f32 %v1299_v11  ;;  %v5828_v9 = vpop.eup %5827  ;;  %v1337_v17 = vmul.f32 %v5826_v44, %v7245_v41 }
 0x45c   : > { %v1301_v48 = vpop.xlane.xlu0 %1300  ;;  %v5830_v32 = vpop.eup %5829  ;;  %v1334_v52 = vmul.f32 %v5828_v9, %v7240_v0 }
 0x45d   : > { %5839 = vrcp.f32 %v1301_v48  ;;  %v1307_v62 = vpop.xlane.xlu1 %1306  ;;  %v1336_v54 = vmul.f32 %v5830_v32, %v7237_v45 }
 0x45e   : > { %v5832_v4 = vpop.eup %5831 }
 0x45f   : > { %v1335_v53 = vmul.f32 %v5832_v4, %v7250_v21  ;;  %v1351_v58 = vpack.c.bf16 %v1337_v17, %v1336_v54 }
 0x460   : > { %v1303_v15 = vpop.xlane.xlu0 %1302 }
 0x461   : > { %v1309_v1 = vpop.xlane.xlu1 %1308  ;;  %v1350_v2 = vpack.c.bf16 %v1335_v53, %v1334_v52 }
 0x462   : > { %5841 = vrcp.f32 %v1309_v1 }
 0x463   : > { %v5834_v6 = vpop.eup %5833  ;;  %5228 = vmatprep.mubr.bf16.mxu0 %v1350_v2  ;;  %5843 = vrcp.f32 %v1303_v15 }
 0x464   : > { %v5836_v11 = vpop.eup %5835  ;;  %5229 = vmatmul.mubr.bf16.vlgmr.msra.gmra.mrb[24].mxu0 %v1351_v58  ;;  %v1338_v48 = vmul.f32 %v5834_v6, %v7258_v49  ;;  %5845 = vrcp.f32 %v1307_v62  ;;  %v1315_v54 = vpop.xlane.xlu0 %1314 }
 0x465   : > { %v5838_v36 = vpop.eup %5837  ;;  %v1305_v41 = vpop.xlane.xlu1 %1304  ;;  %v1339_v0 = vmul.f32 %v5836_v11, %v7260_v10  ;;  %5245 = vmatpush3.bf16.msra.mxu0 %v6824_v3 }
 0x466   : > { %5847 = vrcp.f32 %v1305_v41  ;;  %5246 = vmatprep.subr.bf16.mxu0 %v6828_v7  ;;  %v1340_v44 = vmul.f32 %v5838_v36, %v7253_v25 }
 0x467   : > { %v5840_v45 = vpop.eup %5839  ;;  %v1352_v21 = vpack.c.bf16 %v1339_v0, %v1338_v48 }
 0x468   : > { %v1341_v9 = vmul.f32 %v5840_v45, %v7265_v23  ;;  %v1311_v15 = vpop.xlane.xlu0 %1310 }
 0x469   : > { %5232 = vmatprep.mubr.bf16.mxu0 %v1352_v21  ;;  %5247 = vmatpush3.bf16.msra.mxu0 %v6828_v7  ;;  %v1659_v1 = vpop.permute.xlu1 %1658 }
 0x46a   : > { %v1353_v49 = vpack.c.bf16 %v1341_v9, %v1340_v44  ;;  %5284 = vmatprep.subr.bf16.mxu0 %v7020_v63 }
 0x46c   : > { %5233 = vmatmul.mubr.bf16.gmra.mrb[28].mxu0 %v1353_v49  ;;  %v5842_v32 = vpop.eup %5841 }
 0x46d   : > { %v5844_v10 = vpop.eup %5843  ;;  %v1345_v17 = vmul.f32 %v5842_v32, %v7275_v30  ;;  %v1661_v58 = vpop.permute.xlu1 %1660 }
 0x46e   : > { %v5846_v62 = vpop.eup %5845  ;;  %v1342_v52 = vmul.f32 %v5844_v10, %v7273_v16 }
 0x46f   : > { %v1344_v36 = vmul.f32 %v5846_v62, %v7267_v61 }
 0x470   : > { %v5848_v4 = vpop.eup %5847 }
 0x471   : > { %v1343_v53 = vmul.f32 %v5848_v4, %v7281_v47  ;;  %v1355_v23 = vpack.c.bf16 %v1345_v17, %v1344_v36 }
 0x473   : > { %v1354_v25 = vpack.c.bf16 %v1343_v53, %v1342_v52 }
 0x475   : > { %5236 = vmatprep.mubr.bf16.mxu0 %v1354_v25 }
 0x476   : > { %5237 = vmatmul.mubr.bf16.gmra.mrb[32].mxu0 %v1355_v23 }
 0x496   : > { %v1317_v2 = vpop.xlane.xlu0 %1316 }
 0x497   : > { %5849 = vrcp.f32 %v1317_v2 }
 0x498   : > { %5851 = vrcp.f32 %v1311_v15 }
 0x499   : > { %5853 = vrcp.f32 %v1315_v54 }
 0x49a   : > { %v1657_v6 = vpop.permute.xlu0 %1656 }
 0x49b   : > { %5276 = vmatprep.mubr.msk.bf16.mxu1 %vm633_vm0, %v1657_v6 }
 0x49c   : > { %5277 = vmatmul.mubr.msk.bf16.gmra.mrb[48].mxu1 %vm633_vm0, %v1659_v1 }
 0x49d   : > { %5280 = vmatprep.mubr.msk.bf16.mxu1 %vm633_vm0, %v1661_v58 }
 0x49e   : > { %v1313_v61 = vpop.xlane.xlu1 %1312  ;;  %v1488_v53 = vpop.permute.xlu0 %1487 }
 0x49f   : > { %5855 = vrcp.f32 %v1313_v61 }
 0x4a1   : > { %v5850_v11 = vpop.eup %5849 }
 0x4a2   : > { %v1663_v16 = vpop.permute.xlu1 %1662  ;;  %v5852_v41 = vpop.eup %5851  ;;  %v1349_v49 = vmul.f32 %v5850_v11, %v7295_v14 }
 0x4a3   : > { %v5854_v21 = vpop.eup %5853  ;;  %v1346_v10 = vmul.f32 %v5852_v41, %v7285_v51  ;;  %v1492_v25 = vpop.permute.xlu0 %1491 }
 0x4a4   : > { %v5274_v30 = vpop.f32.mrb[44].mxu1  ;;  %5281 = vmatmul.mubr.msk.bf16.gmra.mrb[52].mxu1 %vm633_vm0, %v1663_v16  ;;  %v1348_v4 = vmul.f32 %v5854_v21, %v7279_v60 }
 0x4a5   : > { %v1738_v47 = vpop.f32.mrb[45].mxu1 }
 0x4a6   : > { %v5275_v48 = vpop.f32.mrb[46].mxu1  ;;  %v1357_v52 = vpack.c.bf16 %v1349_v49, %v1348_v4  ;;  %v1490_v36 = vpop.permute.xlu1 %1489 }
 0x4a7   : > { %v1941_v0 = vpack.c.bf16 %v5275_v48, %v5274_v30  ;;  %v1741_v45 = vpop.f32.mrb[47].mxu1  ;;  %v1496_v51 = vpop.permute.xlu0 %1495 }
 0x4a8   : > { %v1940_v44 = vpack.c.bf16 %v1741_v45, %v1738_v47 }
 0x4a9   : > { %v5856_v9 = vpop.eup %5855  ;;  %v1980_v14 = vsel %vm633_vm0, %v1941_v0, 0 }
 0x4aa   : > { %v1977_v32 = vsel %vm633_vm0, %v1940_v44, 0  ;;  %5662 = vmatprep.subr.msk.bf16.mxu1 %vm633_vm0, %v1940_v44  ;;  %v1347_v62 = vmul.f32 %v5856_v9, %v7298_v31  ;;  %v1494_v60 = vpop.permute.xlu1 %1493 }
 0x4ab   : > { %5309 = vmatpush3.bf16.xpose.msra.mxu1 %v1977_v32  ;;  %v1500_v23 = vpop.permute.xlu0 %1499 }
 0x4ac   : > { %5663 = vmatprep.subr.msk.bf16.mxu1 %vm633_vm0, %v1941_v0  ;;  %v1356_v17 = vpack.c.bf16 %v1347_v62, %v1346_v10 }
 0x4ae   : > { %5240 = vmatprep.mubr.bf16.mxu0 %v1356_v17  ;;  %v1498_v31 = vpop.permute.xlu1 %1497 }
 0x4af   : > { %5241 = vmatmul.mubr.bf16.gmra.mrb[36].mxu0 %v1357_v52 }
 0x4b0   : > { %5248 = vmatprep.mubr.msk.bf16.mxu0 %vm633_vm0, %v1488_v53 }
 0x4b2   : > { %v1502_v54 = vpop.permute.xlu1 %1501 }
 0x4b3   : > { %5311 = vmatpush3.bf16.xpose.msra.mxu1 %v1980_v14 }
 0x4b7   : > { %5249 = vmatmul.mubr.msk.bf16.vlgmr.msra.gmra.mrb[40].mxu0 %vm633_vm0, %v1490_v36 }
 0x4b8   : > { %5252 = vmatprep.mubr.msk.bf16.mxu0 %vm633_vm0, %v1492_v25  ;;  %5285 = vmatpush3.bf16.msra.mxu0 %v7020_v63 }
 0x4b9   : > { %5286 = vmatprep.subr.bf16.mxu0 %v7025_v26 }
 0x4bc   : > { %5287 = vmatpush3.bf16.msra.mxu0 %v7025_v26 }
 0x4bf   : > { %5253 = vmatmul.mubr.msk.bf16.gmra.mrb[44].mxu0 %vm633_vm0, %v1494_v60 }
 0x4c0   : > { %5256 = vmatprep.mubr.msk.bf16.mxu0 %vm633_vm0, %v1496_v51 }
 0x4c7   : > { %5257 = vmatmul.mubr.msk.bf16.gmra.mrb[48].mxu0 %vm633_vm0, %v1498_v31 }
 0x4c8   : > { %5260 = vmatprep.mubr.msk.bf16.mxu0 %vm633_vm0, %v1500_v23 }
 0x4cf   : > { %5261 = vmatmul.mubr.msk.bf16.gmra.mrb[52].mxu0 %vm633_vm0, %v1502_v54 }
 0x537   : > { %v5230_v15 = vpop.f32.mrb[24].mxu0 }
 0x538   : > { %1465 = vst.msk [vmem:[#allocation2 + $0x10] sm:$0xff] %vm633_vm0, %v5230_v15  ;;  %v1400_v1 = vpop.f32.mrb[25].mxu0 }
 0x539   : > { %1463 = vst.msk [vmem:[#allocation2] sm:$0xff] %vm633_vm0, %v1400_v1  ;;  %v5231_v2 = vpop.f32.mrb[26].mxu0 }
 0x53a   : > { %1466 = vst.msk [vmem:[#allocation2 + $0x18] sm:$0xff] %vm633_vm0, %v5231_v2  ;;  %v1403_v58 = vpop.f32.mrb[27].mxu0 }
 0x53b   : > { %1464 = vst.msk [vmem:[#allocation2 + $0x8] sm:$0xff] %vm633_vm0, %v1403_v58 }
 0x53f   : > { %v5234_v6 = vpop.f32.mrb[28].mxu0 }
 0x540   : > { %1469 = vst.msk [vmem:[#allocation2 + $0x30] sm:$0xff] %vm633_vm0, %v5234_v6  ;;  %v1416_v61 = vpop.f32.mrb[29].mxu0 }
 0x541   : > { %1467 = vst.msk [vmem:[#allocation2 + $0x20] sm:$0xff] %vm633_vm0, %v1416_v61  ;;  %v5235_v16 = vpop.f32.mrb[30].mxu0 }
 0x542   : > { %1470 = vst.msk [vmem:[#allocation2 + $0x38] sm:$0xff] %vm633_vm0, %v5235_v16  ;;  %v1419_v30 = vpop.f32.mrb[31].mxu0 }
 0x543   : > { %1468 = vst.msk [vmem:[#allocation2 + $0x28] sm:$0xff] %vm633_vm0, %v1419_v30 }
 0x549   : > { %v5238_v47 = vpop.f32.mrb[32].mxu0 }
 0x54a   : > { %1473 = vst.msk [vmem:[#allocation2 + $0x50] sm:$0xff] %vm633_vm0, %v5238_v47  ;;  %v1432_v11 = vpop.f32.mrb[33].mxu0 }
 0x54b   : > { %1471 = vst.msk [vmem:[#allocation2 + $0x40] sm:$0xff] %vm633_vm0, %v1432_v11  ;;  %v5239_v48 = vpop.f32.mrb[34].mxu0 }
 0x54c   : > { %1474 = vst.msk [vmem:[#allocation2 + $0x58] sm:$0xff] %vm633_vm0, %v5239_v48  ;;  %v1435_v41 = vpop.f32.mrb[35].mxu0 }
 0x54d   : > { %1472 = vst.msk [vmem:[#allocation2 + $0x48] sm:$0xff] %vm633_vm0, %v1435_v41 }
 0x56f   : > { %v5278_v0 = vpop.f32.mrb[48].mxu1 }
 0x570   : > { %v1754_v45 = vpop.f32.mrb[49].mxu1 }
 0x571   : > { %v5279_v21 = vpop.f32.mrb[50].mxu1 }
 0x572   : > { %v1943_v44 = vpack.c.bf16 %v5279_v21, %v5278_v0  ;;  %v1757_v9 = vpop.f32.mrb[51].mxu1 }
 0x573   : > { %v1942_v49 = vpack.c.bf16 %v1757_v9, %v1754_v45 }
 0x574   : > { %v1986_v14 = vsel %vm633_vm0, %v1943_v44, 0 }
 0x575   : > { %v1983_v32 = vsel %vm633_vm0, %v1942_v49, 0  ;;  %5664 = vmatprep.subr.msk.bf16.mxu1 %vm633_vm0, %v1942_v49 }
 0x576   : > { %5313 = vmatpush3.bf16.xpose.msra.mxu1 %v1983_v32 }
 0x577   : > { %5665 = vmatprep.subr.msk.bf16.mxu1 %vm633_vm0, %v1943_v44  ;;  %v5282_v10 = vpop.f32.mrb[52].mxu1 }
 0x578   : > { %v1770_v62 = vpop.f32.mrb[53].mxu1 }
 0x579   : > { %v5283_v4 = vpop.f32.mrb[54].mxu1 }
 0x57a   : > { %v1945_v17 = vpack.c.bf16 %v5283_v4, %v5282_v10  ;;  %v1773_v52 = vpop.f32.mrb[55].mxu1 }
 0x57b   : > { %v1944_v53 = vpack.c.bf16 %v1773_v52, %v1770_v62 }
 0x57c   : > { %v1992_v58 = vsel %vm633_vm0, %v1945_v17, 0 }
 0x57d   : > { %v1989_v51 = vsel %vm633_vm0, %v1944_v53, 0 }
 0x57e   : > { %5315 = vmatpush3.bf16.xpose.msra.mxu1 %v1986_v14 }
 0x57f   : > { %5666 = vmatprep.subr.msk.bf16.mxu1 %vm633_vm0, %v1944_v53 }
 0x582   : > { %v5242_v36 = vpop.f32.mrb[36].mxu0 }
 0x583   : > { %1477 = vst.msk [vmem:[#allocation2 + $0x70] sm:$0xff] %vm633_vm0, %v5242_v36  ;;  %v1448_v25 = vpop.f32.mrb[37].mxu0 }
 0x584   : > { %1475 = vst.msk [vmem:[#allocation2 + $0x60] sm:$0xff] %vm633_vm0, %v1448_v25  ;;  %v5243_v60 = vpop.f32.mrb[38].mxu0 }
 0x585   : > { %1478 = vst.msk [vmem:[#allocation2 + $0x78] sm:$0xff] %vm633_vm0, %v5243_v60  ;;  %v1451_v31 = vpop.f32.mrb[39].mxu0 }
 0x586   : > { %1476 = vst.msk [vmem:[#allocation2 + $0x68] sm:$0xff] %vm633_vm0, %v1451_v31  ;;  %5317 = vmatpush3.bf16.xpose.msra.mxu1 %v1989_v51 }
 0x587   : > { %5667 = vmatprep.subr.msk.bf16.mxu1 %vm633_vm0, %v1945_v17 }
 0x58a   : > { %v5250_v23 = vpop.f32.mrb[40].mxu0 }
 0x58b   : > { %v1626_v54 = vmul.f32 0.088388346, %v5250_v23  ;;  %v1561_v15 = vpop.f32.mrb[41].mxu0 }
 0x58c   : > { %v1624_v1 = vmul.f32 0.088388346, %v1561_v15  ;;  %v5251_v2 = vpop.f32.mrb[42].mxu0 }
 0x58d   : > { %v1627_v6 = vmul.f32 0.088388346, %v5251_v2  ;;  %v1564_v61 = vpop.f32.mrb[43].mxu0 }
 0x58e   : > { %v1625_v16 = vmul.f32 0.088388346, %v1564_v61  ;;  %5319 = vmatpush3.bf16.xpose.msra.mxu1 %v1992_v58 }
 0x58f   : > { %v1931_v30 = vpack.c.bf16 %v1627_v6, %v1626_v54  ;;  %5388 = vmatprep.subr.bf16.mxu1 %v6840_v13 }
 0x590   : > { %v1930_v47 = vpack.c.bf16 %v1625_v16, %v1624_v1  ;;  %v1794_v16 = vpop.permute.xlu0 %1793 }
 0x591   : > { %5288 = vmatprep.mubr.msk.bf16.mxu0 %vm633_vm0, %v1794_v16 }
 0x592   : > { %v5254_v11 = vpop.f32.mrb[44].mxu0  ;;  %5320 = vmatprep.mubr.msk.bf16.mxu1 %vm633_vm0, %v1930_v47 }
 0x593   : > { %v1630_v48 = vmul.f32 0.088388346, %v5254_v11  ;;  %v1577_v41 = vpop.f32.mrb[45].mxu0 }
 0x594   : > { %v1628_v0 = vmul.f32 0.088388346, %v1577_v41  ;;  %v5255_v45 = vpop.f32.mrb[46].mxu0  ;;  %v1798_v47 = vpop.permute.xlu0 %1797 }
 0x595   : > { %v1631_v21 = vmul.f32 0.088388346, %v5255_v45  ;;  %v1580_v44 = vpop.f32.mrb[47].mxu0  ;;  %5321 = vmatmul.mubr.msk.bf16.vlgmr.msra.gmra.mrb[56].mxu1 %vm633_vm0, %v1931_v30  ;;  %v1796_v30 = vpop.permute.xlu1 %1795 }
 0x596   : > { %v1629_v9 = vmul.f32 0.088388346, %v1580_v44  ;;  %5389 = vmatpush3.bf16.msra.mxu1 %v6840_v13  ;;  %5289 = vmatmul.mubr.msk.bf16.vlgmr.msra.gmra.mrb[56].mxu0 %vm633_vm0, %v1796_v30 }
 0x597   : > { %v1933_v49 = vpack.c.bf16 %v1631_v21, %v1630_v48  ;;  %5390 = vmatprep.subr.bf16.mxu1 %v6852_v20  ;;  %5292 = vmatprep.mubr.msk.bf16.mxu0 %vm633_vm0, %v1798_v47 }
 0x598   : > { %v1932_v32 = vpack.c.bf16 %v1629_v9, %v1628_v0  ;;  %v1802_v48 = vpop.permute.xlu0 %1801 }
 0x599   : > { %v1800_v11 = vpop.permute.xlu1 %1799 }
 0x59a   : > { %v5258_v10 = vpop.f32.mrb[48].mxu0  ;;  %5324 = vmatprep.mubr.msk.bf16.mxu1 %vm633_vm0, %v1932_v32  ;;  %5391 = vmatpush3.bf16.msra.mxu1 %v6852_v20 }
 0x59b   : > { %v1634_v62 = vmul.f32 0.088388346, %v5258_v10  ;;  %v1593_v4 = vpop.f32.mrb[49].mxu0 }
 0x59c   : > { %v1632_v17 = vmul.f32 0.088388346, %v1593_v4  ;;  %v5259_v52 = vpop.f32.mrb[50].mxu0  ;;  %v1806_v0 = vpop.permute.xlu0 %1805 }
 0x59d   : > { %v1635_v53 = vmul.f32 0.088388346, %v5259_v52  ;;  %v1596_v14 = vpop.f32.mrb[51].mxu0  ;;  %5325 = vmatmul.mubr.msk.bf16.gmra.mrb[60].mxu1 %vm633_vm0, %v1933_v49  ;;  %v1804_v41 = vpop.permute.xlu1 %1803 }
 0x59e   : > { %v1633_v36 = vmul.f32 0.088388346, %v1596_v14  ;;  %5293 = vmatmul.mubr.msk.bf16.gmra.mrb[60].mxu0 %vm633_vm0, %v1800_v11 }
 0x59f   : > { %v1935_v25 = vpack.c.bf16 %v1635_v53, %v1634_v62  ;;  %5296 = vmatprep.mubr.msk.bf16.mxu0 %vm633_vm0, %v1802_v48 }
 0x5a0   : > { %v1934_v60 = vpack.c.bf16 %v1633_v36, %v1632_v17  ;;  %v2599_v21 = vpop.permute.xlu0 %2598 }
 0x5a1   : > { %v1808_v45 = vpop.permute.xlu1 %1807 }
 0x5a2   : > { %5328 = vmatprep.mubr.msk.bf16.mxu1 %vm633_vm0, %v1934_v60  ;;  %v5262_v51 = vpop.f32.mrb[52].mxu0 }
 0x5a3   : > { %v1638_v31 = vmul.f32 0.088388346, %v5262_v51  ;;  %v1609_v23 = vpop.f32.mrb[53].mxu0 }
 0x5a4   : > { %v1636_v54 = vmul.f32 0.088388346, %v1609_v23  ;;  %v5263_v15 = vpop.f32.mrb[54].mxu0 }
 0x5a5   : > { %5329 = vmatmul.mubr.msk.bf16.gmra.mrb[64].mxu1 %vm633_vm0, %v1935_v25  ;;  %v1639_v1 = vmul.f32 0.088388346, %v5263_v15  ;;  %v1612_v2 = vpop.f32.mrb[55].mxu0  ;;  %v2601_v44 = vpop.permute.xlu1 %2600 }
 0x5a6   : > { %v1637_v58 = vmul.f32 0.088388346, %v1612_v2  ;;  %5297 = vmatmul.mubr.msk.bf16.gmra.mrb[64].mxu0 %vm633_vm0, %v1804_v41 }
 0x5a7   : > { %v1937_v6 = vpack.c.bf16 %v1639_v1, %v1638_v31  ;;  %5300 = vmatprep.mubr.msk.bf16.mxu0 %vm633_vm0, %v1806_v0 }
 0x5a8   : > { %v1936_v61 = vpack.c.bf16 %v1637_v58, %v1636_v54 }
 0x5aa   : > { %5332 = vmatprep.mubr.msk.bf16.mxu1 %vm633_vm0, %v1936_v61 }
 0x5ad   : > { %5333 = vmatmul.mubr.msk.bf16.gmra.mrb[68].mxu1 %vm633_vm0, %v1937_v6 }
 0x5ae   : > { %5392 = vmatprep.mubr.msk.bf16.mxu1 %vm633_vm0, %v2599_v21  ;;  %5301 = vmatmul.mubr.msk.bf16.gmra.mrb[68].mxu0 %vm633_vm0, %v1808_v45 }
 0x5b5   : > { %5393 = vmatmul.mubr.msk.bf16.vlgmr.msra.gmra.mrb[72].mxu1 %vm633_vm0, %v2601_v44 }
 0x668   : > { %v5322_v9 = vpop.f32.mrb[56].mxu1 }
 0x669   : > { %v2028_v49 = vpop.f32.mrb[57].mxu1  ;;  %v7428_v32 = vsel %vm1176_vm1, -1e+20, %v5322_v9 }
 0x66a   : > { %2111 = vmax.xlane.f32.xlu0 %v7428_v32  ;;  %v5323_v10 = vpop.f32.mrb[58].mxu1  ;;  %v7438_v17 = vsel %vm1174_vm2, -1e+20, %v2028_v49 }
 0x66b   : > { %v2031_v62 = vpop.f32.mrb[59].mxu1  ;;  %v7443_v14 = vsel %vm1177_vm3, -1e+20, %v5323_v10 }
 0x66c   : > { %v7433_v4 = vsel %vm1175_vm4, -1e+20, %v2031_v62 }
 0x66d   : > { %2109 = vmax.xlane.f32.xlu1 %v7433_v4 }
 0x66e   : > { %2107 = vmax.xlane.f32.xlu0 %v7438_v17 }
 0x670   : > { %v5326_v52 = vpop.f32.mrb[60].mxu1 }
 0x671   : > { %v2044_v53 = vpop.f32.mrb[61].mxu1  ;;  %v7453_v23 = vsel %vm1180_vm5, -1e+20, %v5326_v52 }
 0x672   : > { %2113 = vmax.xlane.f32.xlu0 %v7443_v14  ;;  %v5327_v36 = vpop.f32.mrb[62].mxu1  ;;  %v7463_v6 = vsel %vm1178_vm7, -1e+20, %v2044_v53  ;;  %v8527_v53 = vld [vmem:[#allocation47_spill] sm:$0xff] }
 0x673   : > { %v2047_v25 = vpop.f32.mrb[63].mxu1  ;;  %v7448_v51 = vsel %vm1181_vm6, -1e+20, %v5327_v36 }
 0x674   : > { %2121 = vmax.xlane.f32.xlu1 %v7448_v51  ;;  %v7458_v15 = vsel %vm1179_vm8, -1e+20, %v2047_v25  ;;  %v8529_v25 = vld [vmem:[#allocation33_spill] sm:$0xff] }
 0x676   : > { %2119 = vmax.xlane.f32.xlu0 %v7453_v23 }
 0x678   : > { %2117 = vmax.xlane.f32.xlu1 %v7458_v15  ;;  %v5330_v1 = vpop.f32.mrb[64].mxu1 }
 0x679   : > { %v2060_v2 = vpop.f32.mrb[65].mxu1  ;;  %v7473_v48 = vsel %vm1184_vm9, -1e+20, %v5330_v1  ;;  %v8530_v1 = vld [vmem:[#allocation32_spill] sm:$0xff] }
 0x67a   : > { %2115 = vmax.xlane.f32.xlu0 %v7463_v6  ;;  %v5331_v61 = vpop.f32.mrb[66].mxu1  ;;  %v7483_v44 = vsel %vm1182_vm11, -1e+20, %v2060_v2 }
 0x67b   : > { %v2063_v16 = vpop.f32.mrb[67].mxu1  ;;  %v7468_v47 = vsel %vm1185_vm10, -1e+20, %v5331_v61 }
 0x67c   : > { %2129 = vmax.xlane.f32.xlu1 %v7468_v47  ;;  %v7478_v0 = vsel %vm8451_vm12, -1e+20, %v2063_v16  ;;  %vm8528_vm12 = vcmp.eq.s32.totalorder %v8527_v53, 0 }
 0x67e   : > { %2127 = vmax.xlane.f32.xlu0 %v7473_v48 }
 0x680   : > { %2125 = vmax.xlane.f32.xlu1 %v7478_v0  ;;  %v5334_v45 = vpop.f32.mrb[68].mxu1 }
 0x681   : > { %v2076_v9 = vpop.f32.mrb[69].mxu1  ;;  %v7488_v62 = vsel %vm1188_vm13, -1e+20, %v5334_v45 }
 0x682   : > { %2123 = vmax.xlane.f32.xlu0 %v7483_v44  ;;  %v5335_v49 = vpop.f32.mrb[70].mxu1  ;;  %v7493_v36 = vsel %vm8528_vm12, -1e+20, %v2076_v9  ;;  %v5290_v9 = vpop.f32.mrb[56].mxu0 }
 0x683   : > { %v2079_v52 = vpop.f32.mrb[71].mxu1  ;;  %v7502_v61 = vsel %vm1189_vm15, -1e+20, %v5335_v49  ;;  %v1867_v53 = vpop.f32.mrb[57].mxu0 }
 0x684   : > { %v7507_v45 = vsel %vm1187_vm14, -1e+20, %v2079_v52  ;;  %v5291_v10 = vpop.f32.mrb[58].mxu0 }
 0x685   : > { %v2260_v21 = vpack.c.bf16 %v5291_v10, %v5290_v9 }
 0x686   : > { %2135 = vmax.xlane.f32.xlu0 %v7488_v62 }
 0x68a   : > { %2131 = vmax.xlane.f32.xlu0 %v7493_v36 }
 0x691   : > { %2604 = vrot.lane.b32.xlu1 %v8529_v25, %s6380_s28  ;;  %v1870_v25 = vpop.f32.mrb[59].mxu0 }
 0x692   : > { %v2259_v41 = vpack.c.bf16 %v1870_v25, %v1867_v53 }
 0x694   : > { %5336 = vmatprep.subr.bf16.mxu0 %v2259_v41 }
 0x695   : > { %5337 = vmatpush3.bf16.msra.mxu0 %v2259_v41 }
 0x696   : > { %5338 = vmatprep.subr.bf16.mxu0 %v2260_v21 }
 0x699   : > { %5339 = vmatpush3.bf16.msra.mxu0 %v2260_v21 }
 0x6a0   : > { %2602 = vrot.lane.b32.xlu0 %v8530_v1, %s6380_s28  ;;  %v5294_v1 = vpop.f32.mrb[60].mxu0 }
 0x6a1   : > { %v1883_v49 = vpop.f32.mrb[61].mxu0 }
 0x6a2   : > { %v5295_v2 = vpop.f32.mrb[62].mxu0 }
 0x6a3   : > { %v2262_v11 = vpack.c.bf16 %v5295_v2, %v5294_v1  ;;  %v1886_v30 = vpop.f32.mrb[63].mxu0 }
 0x6a4   : > { %v2261_v16 = vpack.c.bf16 %v1886_v30, %v1883_v49  ;;  %v5298_v52 = vpop.f32.mrb[64].mxu0  ;;  %v5394_v30 = vpop.f32.mrb[72].mxu1 }
 0x6a5   : > { %v1899_v54 = vpop.f32.mrb[65].mxu0  ;;  %v2672_v49 = vpop.f32.mrb[73].mxu1 }
 0x6a6   : > { %5340 = vmatprep.subr.bf16.mxu0 %v2261_v16  ;;  %v5299_v9 = vpop.f32.mrb[66].mxu0 }
 0x6a7   : > { %5341 = vmatpush3.bf16.msra.mxu0 %v2261_v16  ;;  %v2264_v53 = vpack.c.bf16 %v5299_v9, %v5298_v52  ;;  %v1902_v25 = vpop.f32.mrb[67].mxu0 }
 0x6a8   : > { %5342 = vmatprep.subr.bf16.mxu0 %v2262_v11  ;;  %v2263_v31 = vpack.c.bf16 %v1902_v25, %v1899_v54  ;;  %v5302_v16 = vpop.f32.mrb[68].mxu0 }
 0x6a9   : > { %v1915_v52 = vpop.f32.mrb[69].mxu0 }
 0x6aa   : > { %v5303_v54 = vpop.f32.mrb[70].mxu0 }
 0x6ab   : > { %5343 = vmatpush3.bf16.msra.mxu0 %v2262_v11  ;;  %v2266_v25 = vpack.c.bf16 %v5303_v54, %v5302_v16 }
 0x6ac   : > { %5344 = vmatprep.subr.bf16.mxu0 %v2263_v31 }
 0x6af   : > { %5345 = vmatpush3.bf16.msra.mxu0 %v2263_v31 }
 0x6b0   : > { %5346 = vmatprep.subr.bf16.mxu0 %v2264_v53 }
 0x6b3   : > { %5347 = vmatpush3.bf16.msra.mxu0 %v2264_v53 }
 0x6b5   : > { %2137 = vmax.xlane.f32.xlu1 %v7502_v61 }
 0x6b9   : > { %2133 = vmax.xlane.f32.xlu1 %v7507_v45 }
 0x6f7   : > { %v2112_v58 = vpop.xlane.xlu0 %2111 }
 0x6f8   : > { %v2141_v10 = vsub.f32 %v7428_v32, %v2112_v58 }
 0x6fa   : > { %v2159_v41 = vmul.f32 1.442695, %v2141_v10  ;;  %v2110_v1 = vpop.xlane.xlu1 %2109  ;;  %v5395_v10 = vpop.f32.mrb[74].mxu1 }
 0x6fb   : > { %v2108_v60 = vpop.xlane.xlu0 %2107  ;;  %v2140_v32 = vsub.f32 %v7433_v4, %v2110_v1 }
 0x6fc   : > { %5857 = vpow2.f32 %v2159_v41  ;;  %v2139_v21 = vsub.f32 %v7438_v17, %v2108_v60  ;;  %v1918_v41 = vpop.f32.mrb[71].mxu0  ;;  %v2881_v17 = vpack.c.bf16 %v5395_v10, %v5394_v30 }
 0x6fd   : > { %v2265_v31 = vpack.c.bf16 %v1918_v41, %v1915_v52  ;;  %v2157_v42 = vmul.f32 1.442695, %v2140_v32 }
 0x6fe   : > { %v2155_v2 = vmul.f32 1.442695, %v2139_v21  ;;  %v2675_v21 = vpop.f32.mrb[75].mxu1  ;;  %v2916_v52 = vsel %vm633_vm0, %v2881_v17, 0 }
 0x6ff   : > { %v2114_v58 = vpop.xlane.xlu0 %2113  ;;  %v2880_v46 = vpack.c.bf16 %v2675_v21, %v2672_v49  ;;  %5348 = vmatprep.subr.bf16.mxu0 %v2265_v31 }
 0x700   : > { %5859 = vpow2.f32 %v2155_v2  ;;  %v2142_v11 = vsub.f32 %v7443_v14, %v2114_v58  ;;  %5349 = vmatpush3.bf16.msra.mxu0 %v2265_v31 }
 0x701   : > { %v2122_v9 = vpop.xlane.xlu1 %2121  ;;  %v2913_v14 = vsel %vm633_vm0, %v2880_v46, 0  ;;  %5668 = vmatprep.subr.msk.bf16.mxu1 %vm633_vm0, %v2880_v46  ;;  %5350 = vmatprep.subr.bf16.mxu0 %v2266_v25 }
 0x702   : > { %v2161_v60 = vmul.f32 1.442695, %v2142_v11  ;;  %5429 = vmatpush3.bf16.xpose.msra.mxu1 %v2913_v14  ;;  %v2146_v16 = vsub.f32 %v7448_v51, %v2122_v9 }
 0x703   : > { %v2120_v40 = vpop.xlane.xlu0 %2119  ;;  %5669 = vmatprep.subr.msk.bf16.mxu1 %vm633_vm0, %v2881_v17 }
 0x704   : > { %5861 = vpow2.f32 %v2161_v60  ;;  %v2145_v4 = vsub.f32 %v7453_v23, %v2120_v40  ;;  %5351 = vmatpush3.bf16.msra.mxu0 %v2266_v25 }
 0x705   : > { %v2118_v1 = vpop.xlane.xlu1 %2117  ;;  %5863 = vpow2.f32 %v2157_v42  ;;  %5368 = vmatprep.subr.bf16.mxu0 %v6824_v3 }
 0x706   : > { %v7517_v2 = vpop.eup %5857  ;;  %v2167_v53 = vmul.f32 1.442695, %v2145_v4  ;;  %v2144_v30 = vsub.f32 %v7458_v15, %v2118_v1  ;;  %v2169_v15 = vmul.f32 1.442695, %v2146_v16 }
 0x707   : > { %v2116_v49 = vpop.xlane.xlu0 %2115  ;;  %2191 = vadd.xlane.f32.xlu1 %v7517_v2 }
 0x708   : > { %5865 = vpow2.f32 %v2167_v53  ;;  %v2165_v40 = vmul.f32 1.442695, %v2144_v30  ;;  %v2143_v23 = vsub.f32 %v7463_v6, %v2116_v49 }
 0x709   : > { %v2130_v46 = vpop.xlane.xlu1 %2129 }
 0x70a   : > { %v7524_v32 = vpop.eup %5859  ;;  %v2163_v58 = vmul.f32 1.442695, %v2143_v23  ;;  %5867 = vpow2.f32 %v2165_v40  ;;  %v2150_v42 = vsub.f32 %v7468_v47, %v2130_v46  ;;  %5431 = vmatpush3.bf16.xpose.msra.mxu1 %v2916_v52 }
 0x70b   : > { %v2128_v51 = vpop.xlane.xlu0 %2127  ;;  %2187 = vadd.xlane.f32.xlu0 %v7524_v32 }
 0x70c   : > { %5869 = vpow2.f32 %v2163_v58  ;;  %v2149_v11 = vsub.f32 %v7473_v48, %v2128_v51  ;;  %v2177_v9 = vmul.f32 1.442695, %v2150_v42 }
 0x70d   : > { %v2126_v6 = vpop.xlane.xlu1 %2125  ;;  %5871 = vpow2.f32 %v2169_v15 }
 0x70e   : > { %v7531_v54 = vpop.eup %5861  ;;  %v2175_v10 = vmul.f32 1.442695, %v2149_v11  ;;  %v2148_v25 = vsub.f32 %v7478_v0, %v2126_v6 }
 0x70f   : > { %v2124_v41 = vpop.xlane.xlu0 %2123  ;;  %2193 = vadd.xlane.f32.xlu1 %v7531_v54  ;;  %v7536_v60 = vpop.eup %5863 }
 0x710   : > { %5873 = vpow2.f32 %v2175_v10  ;;  %v2147_v47 = vsub.f32 %v7483_v44, %v2124_v41  ;;  %v2173_v31 = vmul.f32 1.442695, %v2148_v25 }
 0x711   : > { %5875 = vpow2.f32 %v2177_v9  ;;  %v2605_v40 = vpop.permute.xlu1 %2604 }
 0x712   : > { %v7538_v17 = vpop.eup %5865  ;;  %v2171_v48 = vmul.f32 1.442695, %v2147_v47 }
 0x713   : > { %v2136_v21 = vpop.xlane.xlu0 %2135  ;;  %2199 = vadd.xlane.f32.xlu0 %v7538_v17  ;;  %2189 = vadd.xlane.f32.xlu1 %v7536_v60 }
 0x714   : > { %5877 = vpow2.f32 %v2171_v48  ;;  %v2153_v0 = vsub.f32 %v7488_v62, %v2136_v21  ;;  %v7543_v4 = vpop.eup %5867 }
 0x715   : > { %5879 = vpow2.f32 %v2173_v31 }
 0x716   : > { %v7545_v1 = vpop.eup %5869  ;;  %v2183_v44 = vmul.f32 1.442695, %v2153_v0 }
 0x717   : > { %2195 = vadd.xlane.f32.xlu0 %v7545_v1  ;;  %v2132_v14 = vpop.xlane.xlu0 %2131  ;;  %2197 = vadd.xlane.f32.xlu1 %v7543_v4  ;;  %v7550_v30 = vpop.eup %5871 }
 0x718   : > { %5881 = vpow2.f32 %v2183_v44  ;;  %v2151_v53 = vsub.f32 %v7493_v36, %v2132_v14 }
 0x71a   : > { %v7552_v16 = vpop.eup %5873  ;;  %v2179_v49 = vmul.f32 1.442695, %v2151_v53 }
 0x71b   : > { %v2603_v62 = vpop.permute.xlu0 %2602  ;;  %2201 = vadd.xlane.f32.xlu0 %v7550_v30  ;;  %2207 = vadd.xlane.f32.xlu1 %v7552_v16  ;;  %v7557_v23 = vpop.eup %5875 }
 0x71c   : > { %5883 = vpow2.f32 %v2179_v49  ;;  %5396 = vmatprep.mubr.msk.bf16.mxu1 %vm633_vm0, %v2603_v62 }
 0x71d   : > { %5397 = vmatmul.mubr.msk.bf16.gmra.mrb[76].mxu1 %vm633_vm0, %v2605_v40 }
 0x71e   : > { %v7560_v46 = vpop.eup %5877 }
 0x71f   : > { %2203 = vadd.xlane.f32.xlu0 %v7560_v46  ;;  %2209 = vadd.xlane.f32.xlu1 %v7557_v23  ;;  %v7564_v36 = vpop.eup %5879 }
 0x722   : > { %v7566_v58 = vpop.eup %5881 }
 0x723   : > { %2215 = vadd.xlane.f32.xlu0 %v7566_v58  ;;  %2205 = vadd.xlane.f32.xlu1 %v7564_v36 }
 0x726   : > { %v7570_v15 = vpop.eup %5883 }
 0x727   : > { %2211 = vadd.xlane.f32.xlu0 %v7570_v15 }
 0x734   : > { %2608 = vrot.lane.b32.xlu1 %v6926_v55, %s6380_s28 }
 0x738   : > { %2610 = vrot.lane.b32.xlu1 %v6928_v56, %s6380_s28 }
 0x742   : > { %v2138_v42 = vpop.xlane.xlu1 %2137 }
 0x743   : > { %v2154_v51 = vsub.f32 %v7502_v61, %v2138_v42  ;;  %v8533_v61 = vld [vmem:[#allocation34_spill] sm:$0xff] }
 0x745   : > { %v2185_v52 = vmul.f32 1.442695, %v2154_v51 }
 0x746   : > { %v2134_v11 = vpop.xlane.xlu1 %2133 }
 0x747   : > { %5885 = vpow2.f32 %v2185_v52  ;;  %v2152_v6 = vsub.f32 %v7507_v45, %v2134_v11 }
 0x749   : > { %v2181_v10 = vmul.f32 1.442695, %v2152_v6 }
 0x74b   : > { %5887 = vpow2.f32 %v2181_v10 }
 0x751   : > { %v7579_v9 = vpop.eup %5885 }
 0x752   : > { %2217 = vadd.xlane.f32.xlu0 %v7579_v9 }
 0x755   : > { %v7582_v25 = vpop.eup %5887 }
 0x75c   : > { %2213 = vadd.xlane.f32.xlu1 %v7582_v25 }
 0x768   : > { %2606 = vrot.lane.b32.xlu0 %v6916_v50, %s6380_s28 }
 0x76c   : > { %2445 = vrot.lane.b32.xlu0 %v6866_v27, %s6380_s28 }
 0x76d   : > { %2612 = vrot.lane.b32.xlu1 %v6936_v59, %s6380_s28 }
 0x770   : > { %2449 = vrot.lane.b32.xlu0 %v6875_v33, %s6380_s28 }
 0x771   : > { %2447 = vrot.lane.b32.xlu1 %v6868_v28, %s6380_s28 }
 0x774   : > { %2453 = vrot.lane.b32.xlu0 %v6830_v8, %s6380_s28 }
 0x775   : > { %2451 = vrot.lane.b32.xlu1 %v6892_v38, %s6380_s28 }
 0x778   : > { %2457 = vrot.lane.b32.xlu0 %v6849_v19, %s6380_s28 }
 0x779   : > { %2455 = vrot.lane.b32.xlu1 %v6846_v18, %s6380_s28 }
 0x77c   : > { %2735 = vrot.lane.b32.xlu0 %v7028_v29, %s6380_s28 }
 0x77d   : > { %2459 = vrot.lane.b32.xlu1 %v6879_v34, %s6380_s28 }
 0x780   : > { %2739 = vrot.lane.b32.xlu0 %v7044_v57, %s6380_s28 }
 0x781   : > { %2737 = vrot.lane.b32.xlu1 %v7037_v37, %s6380_s28 }
 0x784   : > { %2743 = vrot.lane.b32.xlu0 %v7054_v12, %s6380_s28 }
 0x785   : > { %2741 = vrot.lane.b32.xlu1 %v7049_v5, %s6380_s28 }
 0x788   : > { %2747 = vrot.lane.b32.xlu0 %v7066_v24, %s6380_s28 }
 0x789   : > { %2745 = vrot.lane.b32.xlu1 %v7064_v22, %s6380_s28 }
 0x78c   : > { %3540 = vrot.lane.b32.xlu0 %v6884_v35, %s6381_s8 }
 0x78d   : > { %2749 = vrot.lane.b32.xlu1 %v8533_v61, %s6380_s28 }
 0x791   : > { %3542 = vrot.lane.b32.xlu1 %v6900_v43, %s6381_s8 }
 0x794   : > { %v2192_v45 = vpop.xlane.xlu1 %2191 }
 0x798   : > { %v2188_v41 = vpop.xlane.xlu0 %2187 }
 0x79c   : > { %v2194_v47 = vpop.xlane.xlu1 %2193 }
 0x79d   : > { %5889 = vrcp.f32 %v2194_v47 }
 0x79e   : > { %5891 = vrcp.f32 %v2188_v41 }
 0x79f   : > { %5893 = vrcp.f32 %v2192_v45 }
 0x7a0   : > { %v2200_v48 = vpop.xlane.xlu0 %2199  ;;  %v2190_v31 = vpop.xlane.xlu1 %2189 }
 0x7a1   : > { %5895 = vrcp.f32 %v2190_v31 }
 0x7a4   : > { %v2196_v21 = vpop.xlane.xlu0 %2195  ;;  %v2198_v0 = vpop.xlane.xlu1 %2197 }
 0x7a5   : > { %5897 = vrcp.f32 %v2196_v21 }
 0x7a6   : > { %5899 = vrcp.f32 %v2198_v0 }
 0x7a7   : > { %5901 = vrcp.f32 %v2200_v48  ;;  %v5890_v53 = vpop.eup %5889 }
 0x7a8   : > { %v2202_v44 = vpop.xlane.xlu0 %2201  ;;  %v2208_v14 = vpop.xlane.xlu1 %2207  ;;  %v2238_v42 = vmul.f32 %v5890_v53, %v7531_v54 }
 0x7a9   : > { %5903 = vrcp.f32 %v2202_v44  ;;  %v5892_v49 = vpop.eup %5891 }
 0x7aa   : > { %v5894_v62 = vpop.eup %5893  ;;  %v2235_v11 = vmul.f32 %v5892_v49, %v7524_v32 }
 0x7ab   : > { %v5896_v40 = vpop.eup %5895  ;;  %v2237_v10 = vmul.f32 %v5894_v62, %v7517_v2 }
 0x7ac   : > { %v2210_v51 = vpop.xlane.xlu1 %2209  ;;  %v2204_v52 = vpop.xlane.xlu0 %2203  ;;  %v2236_v6 = vmul.f32 %v5896_v40, %v7536_v60 }
 0x7ad   : > { %5905 = vrcp.f32 %v2210_v51  ;;  %v2252_v31 = vpack.c.bf16 %v2238_v42, %v2237_v10 }
 0x7ae   : > { %v2251_v41 = vpack.c.bf16 %v2236_v6, %v2235_v11  ;;  %5907 = vrcp.f32 %v2204_v52 }
 0x7af   : > { %v5898_v45 = vpop.eup %5897  ;;  %5909 = vrcp.f32 %v2208_v14 }
 0x7b0   : > { %v5900_v47 = vpop.eup %5899  ;;  %v2206_v48 = vpop.xlane.xlu1 %2205  ;;  %v2239_v21 = vmul.f32 %v5898_v45, %v7545_v1  ;;  %5352 = vmatprep.mubr.bf16.mxu0 %v2251_v41 }
 0x7b1   : > { %v5902_v0 = vpop.eup %5901  ;;  %v2240_v54 = vmul.f32 %v5900_v47, %v7543_v4  ;;  %5911 = vrcp.f32 %v2206_v48  ;;  %5353 = vmatmul.mubr.bf16.vlgmr.msra.gmra.mrb[72].mxu0 %v2252_v31  ;;  %v2216_v52 = vpop.xlane.xlu0 %2215 }
 0x7b2   : > { %5369 = vmatpush3.bf16.msra.mxu0 %v6824_v3  ;;  %v2241_v2 = vmul.f32 %v5902_v0, %v7538_v17 }
 0x7b3   : > { %v5904_v32 = vpop.eup %5903  ;;  %v2253_v60 = vpack.c.bf16 %v2240_v54, %v2239_v21  ;;  %5370 = vmatprep.subr.bf16.mxu0 %v6828_v7 }
 0x7b4   : > { %v2242_v44 = vmul.f32 %v5904_v32, %v7550_v30  ;;  %v2609_v6 = vpop.permute.xlu1 %2608 }
 0x7b5   : > { %5356 = vmatprep.mubr.bf16.mxu0 %v2253_v60  ;;  %v2212_v11 = vpop.xlane.xlu0 %2211 }
 0x7b6   : > { %v2254_v53 = vpack.c.bf16 %v2242_v44, %v2241_v2  ;;  %5371 = vmatpush3.bf16.msra.mxu0 %v6828_v7 }
 0x7b7   : > { %5408 = vmatprep.subr.bf16.mxu0 %v7020_v63  ;;  %v5906_v1 = vpop.eup %5905 }
 0x7b8   : > { %v5908_v4 = vpop.eup %5907  ;;  %v2246_v62 = vmul.f32 %v5906_v1, %v7557_v23  ;;  %v2611_v41 = vpop.permute.xlu1 %2610 }
 0x7b9   : > { %5357 = vmatmul.mubr.bf16.gmra.mrb[76].mxu0 %v2254_v53  ;;  %v5910_v14 = vpop.eup %5909  ;;  %v2243_v40 = vmul.f32 %v5908_v4, %v7560_v46 }
 0x7ba   : > { %v2245_v30 = vmul.f32 %v5910_v14, %v7552_v16 }
 0x7bb   : > { %v5912_v49 = vpop.eup %5911 }
 0x7bc   : > { %v2244_v17 = vmul.f32 %v5912_v49, %v7564_v36  ;;  %v2256_v51 = vpack.c.bf16 %v2246_v62, %v2245_v30 }
 0x7be   : > { %v2255_v42 = vpack.c.bf16 %v2244_v17, %v2243_v40 }
 0x7c0   : > { %5360 = vmatprep.mubr.bf16.mxu0 %v2255_v42 }
 0x7c1   : > { %5361 = vmatmul.mubr.bf16.gmra.mrb[80].mxu0 %v2256_v51 }
 0x7df   : > { %v2218_v10 = vpop.xlane.xlu0 %2217 }
 0x7e0   : > { %5913 = vrcp.f32 %v2218_v10 }
 0x7e1   : > { %5915 = vrcp.f32 %v2212_v11 }
 0x7e2   : > { %5917 = vrcp.f32 %v2216_v52 }
 0x7e3   : > { %v2607_v45 = vpop.permute.xlu0 %2606 }
 0x7e4   : > { %5400 = vmatprep.mubr.msk.bf16.mxu1 %vm633_vm0, %v2607_v45 }
 0x7e5   : > { %5401 = vmatmul.mubr.msk.bf16.gmra.mrb[80].mxu1 %vm633_vm0, %v2609_v6 }
 0x7e6   : > { %5404 = vmatprep.mubr.msk.bf16.mxu1 %vm633_vm0, %v2611_v41 }
 0x7e7   : > { %v2446_v62 = vpop.permute.xlu0 %2445 }
 0x7e9   : > { %v2214_v16 = vpop.xlane.xlu1 %2213 }
 0x7ea   : > { %5919 = vrcp.f32 %v2214_v16  ;;  %v5914_v36 = vpop.eup %5913 }
 0x7eb   : > { %v5916_v48 = vpop.eup %5915  ;;  %v2250_v2 = vmul.f32 %v5914_v36, %v7579_v9 }
 0x7ec   : > { %v5918_v21 = vpop.eup %5917  ;;  %v2247_v44 = vmul.f32 %v5916_v48, %v7570_v15 }
 0x7ed   : > { %v2613_v23 = vpop.permute.xlu1 %2612  ;;  %v2249_v4 = vmul.f32 %v5918_v21, %v7566_v58 }
 0x7ee   : > { %5405 = vmatmul.mubr.msk.bf16.gmra.mrb[84].mxu1 %vm633_vm0, %v2613_v23 }
 0x7ef   : > { %v2258_v49 = vpack.c.bf16 %v2250_v2, %v2249_v4 }
 0x7f0   : > { %v5398_v46 = vpop.f32.mrb[76].mxu1 }
 0x7f1   : > { %v2688_v47 = vpop.f32.mrb[77].mxu1  ;;  %v2448_v9 = vpop.permute.xlu1 %2447 }
 0x7f2   : > { %v5399_v31 = vpop.f32.mrb[78].mxu1 }
 0x7f3   : > { %v2883_v0 = vpack.c.bf16 %v5399_v31, %v5398_v46  ;;  %v2691_v54 = vpop.f32.mrb[79].mxu1 }
 0x7f4   : > { %v5920_v32 = vpop.eup %5919  ;;  %v2882_v60 = vpack.c.bf16 %v2691_v54, %v2688_v47 }
 0x7f5   : > { %v2248_v53 = vmul.f32 %v5920_v32, %v7582_v25  ;;  %v2922_v15 = vsel %vm633_vm0, %v2883_v0, 0  ;;  %v2450_v25 = vpop.permute.xlu0 %2449  ;;  %v2452_v58 = vpop.permute.xlu1 %2451 }
 0x7f6   : > { %v2919_v1 = vsel %vm633_vm0, %v2882_v60, 0  ;;  %5670 = vmatprep.subr.msk.bf16.mxu1 %vm633_vm0, %v2882_v60 }
 0x7f7   : > { %5433 = vmatpush3.bf16.xpose.msra.mxu1 %v2919_v1  ;;  %v2257_v14 = vpack.c.bf16 %v2248_v53, %v2247_v44 }
 0x7f8   : > { %5671 = vmatprep.subr.msk.bf16.mxu1 %vm633_vm0, %v2883_v0 }
 0x7f9   : > { %5364 = vmatprep.mubr.bf16.mxu0 %v2257_v14  ;;  %v2454_v40 = vpop.permute.xlu0 %2453  ;;  %v2456_v17 = vpop.permute.xlu1 %2455 }
 0x7fa   : > { %5365 = vmatmul.mubr.bf16.gmra.mrb[84].mxu0 %v2258_v49 }
 0x7fb   : > { %5372 = vmatprep.mubr.msk.bf16.mxu0 %vm633_vm0, %v2446_v62 }
 0x7fd   : > { %v2458_v30 = vpop.permute.xlu0 %2457  ;;  %v2460_v42 = vpop.permute.xlu1 %2459 }
 0x7ff   : > { %5435 = vmatpush3.bf16.xpose.msra.mxu1 %v2922_v15 }
 0x802   : > { %5373 = vmatmul.mubr.msk.bf16.vlgmr.msra.gmra.mrb[88].mxu0 %vm633_vm0, %v2448_v9 }
 0x803   : > { %5376 = vmatprep.mubr.msk.bf16.mxu0 %vm633_vm0, %v2450_v25  ;;  %5409 = vmatpush3.bf16.msra.mxu0 %v7020_v63 }
 0x804   : > { %5410 = vmatprep.subr.bf16.mxu0 %v7025_v26 }
 0x807   : > { %5411 = vmatpush3.bf16.msra.mxu0 %v7025_v26 }
 0x80a   : > { %5377 = vmatmul.mubr.msk.bf16.gmra.mrb[92].mxu0 %vm633_vm0, %v2452_v58 }
 0x80b   : > { %5380 = vmatprep.mubr.msk.bf16.mxu0 %vm633_vm0, %v2454_v40 }
 0x812   : > { %5381 = vmatmul.mubr.msk.bf16.gmra.mrb[96].mxu0 %vm633_vm0, %v2456_v17 }
 0x813   : > { %5384 = vmatprep.mubr.msk.bf16.mxu0 %vm633_vm0, %v2458_v30 }
 0x81a   : > { %5385 = vmatmul.mubr.msk.bf16.gmra.mrb[100].mxu0 %vm633_vm0, %v2460_v42 }
 0x884   : > { %v7664_v51 = vpop.f32.mrb[72].mxu0 }
 0x885   : > { %8534 = vst [vmem:[#allocation34_spill] sm:$0xff] %v7664_v51  ;;  %v7666_v52 = vpop.f32.mrb[73].mxu0 }
 0x886   : > { %8535 = vst [vmem:[#allocation50_spill] sm:$0xff] %v7666_v52  ;;  %v7668_v11 = vpop.f32.mrb[74].mxu0 }
 0x887   : > { %8536 = vst [vmem:[#allocation51_spill] sm:$0xff] %v7668_v11  ;;  %v7670_v6 = vpop.f32.mrb[75].mxu0 }
 0x888   : > { %8537 = vst [vmem:[#allocation52_spill] sm:$0xff] %v7670_v6 }
 0x88c   : > { %v7672_v10 = vpop.f32.mrb[76].mxu0 }
 0x88d   : > { %8538 = vst [vmem:[#allocation53_spill] sm:$0xff] %v7672_v10  ;;  %v7674_v45 = vpop.f32.mrb[77].mxu0  ;;  %v8566_v10 = vld [vmem:[#allocation32_spill] sm:$0xff] }
 0x88e   : > { %8539 = vst [vmem:[#allocation54_spill] sm:$0xff] %v7674_v45  ;;  %v7676_v41 = vpop.f32.mrb[78].mxu0 }
 0x88f   : > { %8540 = vst [vmem:[#allocation55_spill] sm:$0xff] %v7676_v41  ;;  %v7678_v16 = vpop.f32.mrb[79].mxu0 }
 0x890   : > { %8541 = vst [vmem:[#allocation56_spill] sm:$0xff] %v7678_v16 }
 0x894   : > { %v7680_v35 = vpop.f32.mrb[80].mxu0 }
 0x895   : > { %8542 = vst [vmem:[#allocation57_spill] sm:$0xff] %v7680_v35  ;;  %v7682_v23 = vpop.f32.mrb[81].mxu0 }
 0x896   : > { %8543 = vst [vmem:[#allocation58_spill] sm:$0xff] %v7682_v23  ;;  %v7684_v43 = vpop.f32.mrb[82].mxu0 }
 0x897   : > { %8544 = vst [vmem:[#allocation59_spill] sm:$0xff] %v7684_v43  ;;  %v7686_v46 = vpop.f32.mrb[83].mxu0 }
 0x898   : > { %8545 = vst [vmem:[#allocation60_spill] sm:$0xff] %v7686_v46 }
 0x8b8   : > { %v5402_v36 = vpop.f32.mrb[80].mxu1 }
 0x8b9   : > { %v2704_v47 = vpop.f32.mrb[81].mxu1 }
 0x8ba   : > { %v5403_v48 = vpop.f32.mrb[82].mxu1 }
 0x8bb   : > { %v2885_v31 = vpack.c.bf16 %v5403_v48, %v5402_v36  ;;  %v2707_v21 = vpop.f32.mrb[83].mxu1 }
 0x8bc   : > { %v2884_v0 = vpack.c.bf16 %v2707_v21, %v2704_v47 }
 0x8bd   : > { %v2928_v4 = vsel %vm633_vm0, %v2885_v31, 0 }
 0x8be   : > { %v2925_v54 = vsel %vm633_vm0, %v2884_v0, 0  ;;  %5672 = vmatprep.subr.msk.bf16.mxu1 %vm633_vm0, %v2884_v0 }
 0x8bf   : > { %5437 = vmatpush3.bf16.xpose.msra.mxu1 %v2925_v54 }
 0x8c0   : > { %5673 = vmatprep.subr.msk.bf16.mxu1 %vm633_vm0, %v2885_v31 }
 0x8c1   : > { %v5406_v32 = vpop.f32.mrb[84].mxu1 }
 0x8c2   : > { %v2720_v60 = vpop.f32.mrb[85].mxu1 }
 0x8c3   : > { %v5407_v2 = vpop.f32.mrb[86].mxu1 }
 0x8c4   : > { %v2887_v44 = vpack.c.bf16 %v5407_v2, %v5406_v32  ;;  %v2723_v53 = vpop.f32.mrb[87].mxu1 }
 0x8c5   : > { %v2886_v1 = vpack.c.bf16 %v2723_v53, %v2720_v60 }
 0x8c6   : > { %v2934_v58 = vsel %vm633_vm0, %v2887_v44, 0 }
 0x8c7   : > { %5439 = vmatpush3.bf16.xpose.msra.mxu1 %v2928_v4  ;;  %v2931_v49 = vsel %vm633_vm0, %v2886_v1, 0 }
 0x8c8   : > { %5674 = vmatprep.subr.msk.bf16.mxu1 %vm633_vm0, %v2886_v1 }
 0x8cd   : > { %v7693_v14 = vpop.f32.mrb[84].mxu0 }
 0x8ce   : > { %8546 = vst [vmem:[#allocation61_spill] sm:$0xff] %v7693_v14  ;;  %v7696_v62 = vpop.f32.mrb[85].mxu0  ;;  %v8559_v14 = vld [vmem:[#allocation45_spill] sm:$0xff] }
 0x8cf   : > { %8547 = vst [vmem:[#allocation62_spill] sm:$0xff] %v7696_v62  ;;  %v7698_v15 = vpop.f32.mrb[86].mxu0  ;;  %5441 = vmatpush3.bf16.xpose.msra.mxu1 %v2931_v49  ;;  %vm8560_vm12 = vcmp.eq.s32.totalorder %v8559_v14, 0 }
 0x8d0   : > { %8548 = vst [vmem:[#allocation63_spill] sm:$0xff] %v7698_v15  ;;  %v7700_v9 = vpop.f32.mrb[87].mxu0  ;;  %5675 = vmatprep.subr.msk.bf16.mxu1 %vm633_vm0, %v2887_v44 }
 0x8d1   : > { %8549 = vst [vmem:[#allocation64_spill] sm:$0xff] %v7700_v9 }
 0x8d5   : > { %v5374_v25 = vpop.f32.mrb[88].mxu0 }
 0x8d6   : > { %v2519_v40 = vpop.f32.mrb[89].mxu0  ;;  %v2584_v30 = vmul.f32 0.088388346, %v5374_v25 }
 0x8d7   : > { %v5375_v17 = vpop.f32.mrb[90].mxu0  ;;  %5443 = vmatpush3.bf16.xpose.msra.mxu1 %v2934_v58  ;;  %v2582_v47 = vmul.f32 0.088388346, %v2519_v40 }
 0x8d8   : > { %v2585_v42 = vmul.f32 0.088388346, %v5375_v17  ;;  %v2522_v36 = vpop.f32.mrb[91].mxu0  ;;  %5512 = vmatprep.subr.bf16.mxu1 %v6840_v13 }
 0x8d9   : > { %v2583_v48 = vmul.f32 0.088388346, %v2522_v36 }
 0x8da   : > { %v2873_v31 = vpack.c.bf16 %v2585_v42, %v2584_v30 }
 0x8db   : > { %v2872_v21 = vpack.c.bf16 %v2583_v48, %v2582_v47 }
 0x8dd   : > { %v5378_v0 = vpop.f32.mrb[92].mxu0  ;;  %5444 = vmatprep.mubr.msk.bf16.mxu1 %vm633_vm0, %v2872_v21 }
 0x8de   : > { %v2535_v54 = vpop.f32.mrb[93].mxu0  ;;  %5445 = vmatmul.mubr.msk.bf16.vlgmr.msra.gmra.mrb[88].mxu1 %vm633_vm0, %v2873_v31  ;;  %v2588_v60 = vmul.f32 0.088388346, %v5378_v0 }
 0x8df   : > { %v5379_v32 = vpop.f32.mrb[94].mxu0  ;;  %5513 = vmatpush3.bf16.msra.mxu1 %v6840_v13  ;;  %v2586_v53 = vmul.f32 0.088388346, %v2535_v54 }
 0x8e0   : > { %v2589_v2 = vmul.f32 0.088388346, %v5379_v32  ;;  %v2538_v44 = vpop.f32.mrb[95].mxu0  ;;  %5514 = vmatprep.subr.bf16.mxu1 %v6852_v20 }
 0x8e1   : > { %v2587_v1 = vmul.f32 0.088388346, %v2538_v44 }
 0x8e2   : > { %v2875_v4 = vpack.c.bf16 %v2589_v2, %v2588_v60 }
 0x8e3   : > { %v2874_v49 = vpack.c.bf16 %v2587_v1, %v2586_v53  ;;  %5515 = vmatpush3.bf16.msra.mxu1 %v6852_v20  ;;  %v2736_v1 = vpop.permute.xlu0 %2735 }
 0x8e4   : > { %5412 = vmatprep.mubr.msk.bf16.mxu0 %vm633_vm0, %v2736_v1 }
 0x8e5   : > { %v5382_v25 = vpop.f32.mrb[96].mxu0  ;;  %5448 = vmatprep.mubr.msk.bf16.mxu1 %vm633_vm0, %v2874_v49 }
 0x8e6   : > { %v2551_v58 = vpop.f32.mrb[97].mxu0  ;;  %5449 = vmatmul.mubr.msk.bf16.gmra.mrb[92].mxu1 %vm633_vm0, %v2875_v4  ;;  %v2592_v17 = vmul.f32 0.088388346, %v5382_v25  ;;  %v2738_v4 = vpop.permute.xlu1 %2737 }
 0x8e7   : > { %v5383_v40 = vpop.f32.mrb[98].mxu0  ;;  %v2590_v42 = vmul.f32 0.088388346, %v2551_v58  ;;  %5413 = vmatmul.mubr.msk.bf16.vlgmr.msra.gmra.mrb[104].mxu0 %vm633_vm0, %v2738_v4  ;;  %v2740_v49 = vpop.permute.xlu0 %2739 }
 0x8e8   : > { %v2593_v13 = vmul.f32 0.088388346, %v5383_v40  ;;  %v2554_v30 = vpop.f32.mrb[99].mxu0  ;;  %5416 = vmatprep.mubr.msk.bf16.mxu0 %vm633_vm0, %v2740_v49 }
 0x8e9   : > { %v2591_v36 = vmul.f32 0.088388346, %v2554_v30 }
 0x8ea   : > { %v2877_v47 = vpack.c.bf16 %v2593_v13, %v2592_v17  ;;  %v2742_v25 = vpop.permute.xlu1 %2741 }
 0x8eb   : > { %v2876_v48 = vpack.c.bf16 %v2591_v36, %v2590_v42  ;;  %v2744_v58 = vpop.permute.xlu0 %2743 }
 0x8ed   : > { %5452 = vmatprep.mubr.msk.bf16.mxu1 %vm633_vm0, %v2876_v48  ;;  %v5386_v31 = vpop.f32.mrb[100].mxu0 }
 0x8ee   : > { %5453 = vmatmul.mubr.msk.bf16.gmra.mrb[96].mxu1 %vm633_vm0, %v2877_v47  ;;  %v2596_v20 = vmul.f32 0.088388346, %v5386_v31  ;;  %v2567_v21 = vpop.f32.mrb[101].mxu0  ;;  %v2746_v40 = vpop.permute.xlu1 %2745 }
 0x8ef   : > { %v2594_v0 = vmul.f32 0.088388346, %v2567_v21  ;;  %v5387_v54 = vpop.f32.mrb[102].mxu0  ;;  %5417 = vmatmul.mubr.msk.bf16.gmra.mrb[108].mxu0 %vm633_vm0, %v2742_v25  ;;  %v2748_v17 = vpop.permute.xlu0 %2747 }
 0x8f0   : > { %v2597_v32 = vmul.f32 0.088388346, %v5387_v54  ;;  %v2570_v60 = vpop.f32.mrb[103].mxu0  ;;  %5420 = vmatprep.mubr.msk.bf16.mxu0 %vm633_vm0, %v2744_v58 }
 0x8f1   : > { %v2595_v2 = vmul.f32 0.088388346, %v2570_v60 }
 0x8f2   : > { %v2879_v44 = vpack.c.bf16 %v2597_v32, %v2596_v20  ;;  %v2750_v13 = vpop.permute.xlu1 %2749 }
 0x8f3   : > { %v2878_v53 = vpack.c.bf16 %v2595_v2, %v2594_v0  ;;  %v3541_v30 = vpop.permute.xlu0 %3540 }
 0x8f5   : > { %5456 = vmatprep.mubr.msk.bf16.mxu1 %vm633_vm0, %v2878_v53 }
 0x8f6   : > { %5457 = vmatmul.mubr.msk.bf16.gmra.mrb[100].mxu1 %vm633_vm0, %v2879_v44  ;;  %v3543_v42 = vpop.permute.xlu1 %3542 }
 0x8f7   : > { %5421 = vmatmul.mubr.msk.bf16.gmra.mrb[112].mxu0 %vm633_vm0, %v2746_v40  ;;  %5516 = vmatprep.mubr.msk.bf16.mxu1 %vm633_vm0, %v3541_v30 }
 0x8f8   : > { %5424 = vmatprep.mubr.msk.bf16.mxu0 %vm633_vm0, %v2748_v17 }
 0x8fe   : > { %5517 = vmatmul.mubr.msk.bf16.vlgmr.msra.gmra.mrb[104].mxu1 %vm633_vm0, %v3543_v42 }
 0x8ff   : > { %5425 = vmatmul.mubr.msk.bf16.gmra.mrb[116].mxu0 %vm633_vm0, %v2750_v13 }
 0x9b1   : > { %v5446_v36 = vpop.f32.mrb[88].mxu1 }
 0x9b2   : > { %v7728_v47 = vsel %vm1176_vm1, -1e+20, %v5446_v36  ;;  %v2970_v48 = vpop.f32.mrb[89].mxu1 }
 0x9b3   : > { %3053 = vmax.xlane.f32.xlu0 %v7728_v47  ;;  %v5447_v31 = vpop.f32.mrb[90].mxu1  ;;  %v7737_v32 = vsel %vm1174_vm2, -1e+20, %v2970_v48 }
 0x9b4   : > { %v2973_v20 = vpop.f32.mrb[91].mxu1  ;;  %v7743_v44 = vsel %vm1177_vm3, -1e+20, %v5447_v31 }
 0x9b5   : > { %v7733_v0 = vsel %vm1175_vm4, -1e+20, %v2973_v20 }
 0x9b6   : > { %3051 = vmax.xlane.f32.xlu1 %v7733_v0 }
 0x9b7   : > { %3049 = vmax.xlane.f32.xlu0 %v7737_v32 }
 0x9b9   : > { %v5450_v60 = vpop.f32.mrb[92].mxu1 }
 0x9ba   : > { %v2986_v53 = vpop.f32.mrb[93].mxu1  ;;  %v7753_v40 = vsel %vm1180_vm5, -1e+20, %v5450_v60 }
 0x9bb   : > { %3055 = vmax.xlane.f32.xlu0 %v7743_v44  ;;  %v5451_v1 = vpop.f32.mrb[94].mxu1  ;;  %v7763_v36 = vsel %vm1178_vm7, -1e+20, %v2986_v53 }
 0x9bc   : > { %v7748_v49 = vsel %vm1181_vm6, -1e+20, %v5451_v1  ;;  %v2989_v25 = vpop.f32.mrb[95].mxu1 }
 0x9bd   : > { %3063 = vmax.xlane.f32.xlu1 %v7748_v49  ;;  %v7758_v13 = vsel %vm1179_vm8, -1e+20, %v2989_v25 }
 0x9bf   : > { %3061 = vmax.xlane.f32.xlu0 %v7753_v40 }
 0x9c1   : > { %3059 = vmax.xlane.f32.xlu1 %v7758_v13  ;;  %v5454_v30 = vpop.f32.mrb[96].mxu1 }
 0x9c2   : > { %v3002_v48 = vpop.f32.mrb[97].mxu1  ;;  %v7773_v15 = vsel %vm1184_vm9, -1e+20, %v5454_v30 }
 0x9c3   : > { %3057 = vmax.xlane.f32.xlu0 %v7763_v36  ;;  %v5455_v31 = vpop.f32.mrb[98].mxu1 }
 0x9c4   : > { %v7768_v60 = vsel %vm1185_vm10, -1e+20, %v5455_v31  ;;  %v3005_v1 = vpop.f32.mrb[99].mxu1  ;;  %v7783_v31 = vsel %vm1182_vm11, -1e+20, %v3002_v48  ;;  %v8565_v48 = vld [vmem:[#allocation33_spill] sm:$0xff] }
 0x9c5   : > { %3071 = vmax.xlane.f32.xlu1 %v7768_v60  ;;  %v7778_v53 = vsel %vm8560_vm12, -1e+20, %v3005_v1  ;;  %v8563_v1 = vld [vmem:[#allocation47_spill] sm:$0xff] }
 0x9c6   : > { %vm8564_vm12 = vcmp.eq.s32.totalorder %v8563_v1, 0 }
 0x9c7   : > { %3069 = vmax.xlane.f32.xlu0 %v7773_v15 }
 0x9c9   : > { %3067 = vmax.xlane.f32.xlu1 %v7778_v53  ;;  %v5458_v9 = vpop.f32.mrb[100].mxu1 }
 0x9ca   : > { %v3018_v43 = vpop.f32.mrb[101].mxu1  ;;  %v7788_v30 = vsel %vm1188_vm13, -1e+20, %v5458_v9 }
 0x9cb   : > { %3065 = vmax.xlane.f32.xlu0 %v7783_v31  ;;  %v5459_v35 = vpop.f32.mrb[102].mxu1  ;;  %v7793_v41 = vsel %vm8564_vm12, -1e+20, %v3018_v43  ;;  %v5414_v43 = vpop.f32.mrb[104].mxu0 }
 0x9cc   : > { %v3021_v23 = vpop.f32.mrb[103].mxu1  ;;  %v7802_v45 = vsel %vm1189_vm15, -1e+20, %v5459_v35  ;;  %v2809_v52 = vpop.f32.mrb[105].mxu0 }
 0x9cd   : > { %v7807_v11 = vsel %vm1187_vm14, -1e+20, %v3021_v23  ;;  %v5415_v51 = vpop.f32.mrb[106].mxu0 }
 0x9ce   : > { %v3202_v6 = vpack.c.bf16 %v5415_v51, %v5414_v43 }
 0x9cf   : > { %3077 = vmax.xlane.f32.xlu0 %v7788_v30 }
 0x9d3   : > { %3073 = vmax.xlane.f32.xlu0 %v7793_v41 }
 0x9da   : > { %3546 = vrot.lane.b32.xlu1 %v8565_v48, %s6381_s8  ;;  %v2812_v48 = vpop.f32.mrb[107].mxu0 }
 0x9db   : > { %v3201_v46 = vpack.c.bf16 %v2812_v48, %v2809_v52 }
 0x9dd   : > { %5460 = vmatprep.subr.bf16.mxu0 %v3201_v46 }
 0x9de   : > { %5461 = vmatpush3.bf16.msra.mxu0 %v3201_v46 }
 0x9df   : > { %5462 = vmatprep.subr.bf16.mxu0 %v3202_v6 }
 0x9e2   : > { %5463 = vmatpush3.bf16.msra.mxu0 %v3202_v6 }
 0x9e9   : > { %3544 = vrot.lane.b32.xlu0 %v8566_v10, %s6381_s8  ;;  %v5418_v10 = vpop.f32.mrb[108].mxu0 }
 0x9ea   : > { %v2825_v35 = vpop.f32.mrb[109].mxu0 }
 0x9eb   : > { %v5419_v16 = vpop.f32.mrb[110].mxu0 }
 0x9ec   : > { %v3204_v1 = vpack.c.bf16 %v5419_v16, %v5418_v10  ;;  %v2828_v25 = vpop.f32.mrb[111].mxu0 }
 0x9ed   : > { %v3203_v9 = vpack.c.bf16 %v2828_v25, %v2825_v35  ;;  %v5422_v23 = vpop.f32.mrb[112].mxu0  ;;  %v5518_v25 = vpop.f32.mrb[104].mxu1 }
 0x9ee   : > { %v2841_v62 = vpop.f32.mrb[113].mxu0  ;;  %v3614_v35 = vpop.f32.mrb[105].mxu1 }
 0x9ef   : > { %5464 = vmatprep.subr.bf16.mxu0 %v3203_v9  ;;  %v5423_v43 = vpop.f32.mrb[114].mxu0 }
 0x9f0   : > { %5465 = vmatpush3.bf16.msra.mxu0 %v3203_v9  ;;  %v3206_v52 = vpack.c.bf16 %v5423_v43, %v5422_v23  ;;  %v2844_v48 = vpop.f32.mrb[115].mxu0 }
 0x9f1   : > { %5466 = vmatprep.subr.bf16.mxu0 %v3204_v1  ;;  %v3205_v14 = vpack.c.bf16 %v2844_v48, %v2841_v62  ;;  %v5426_v10 = vpop.f32.mrb[116].mxu0 }
 0x9f2   : > { %v2857_v23 = vpop.f32.mrb[117].mxu0 }
 0x9f3   : > { %v5427_v62 = vpop.f32.mrb[118].mxu0 }
 0x9f4   : > { %5467 = vmatpush3.bf16.msra.mxu0 %v3204_v1  ;;  %v3208_v48 = vpack.c.bf16 %v5427_v62, %v5426_v10 }
 0x9f5   : > { %5468 = vmatprep.subr.bf16.mxu0 %v3205_v14 }
 0x9f8   : > { %5469 = vmatpush3.bf16.msra.mxu0 %v3205_v14 }
 0x9f9   : > { %5470 = vmatprep.subr.bf16.mxu0 %v3206_v52 }
 0x9fc   : > { %5471 = vmatpush3.bf16.msra.mxu0 %v3206_v52 }
 0x9fe   : > { %3079 = vmax.xlane.f32.xlu1 %v7802_v45 }
 0xa02   : > { %3075 = vmax.xlane.f32.xlu1 %v7807_v11 }
 0xa40   : > { %v3054_v20 = vpop.xlane.xlu0 %3053 }
 0xa41   : > { %v3083_v51 = vsub.f32 %v7728_v47, %v3054_v20 }
 0xa43   : > { %v3101_v46 = vmul.f32 1.442695, %v3083_v51  ;;  %v3052_v16 = vpop.xlane.xlu1 %3051  ;;  %v5519_v51 = vpop.f32.mrb[106].mxu1 }
 0xa44   : > { %v3050_v58 = vpop.xlane.xlu0 %3049  ;;  %v3082_v47 = vsub.f32 %v7733_v0, %v3052_v16 }
 0xa45   : > { %5921 = vpow2.f32 %v3101_v46  ;;  %v3081_v6 = vsub.f32 %v7737_v32, %v3050_v58  ;;  %v2860_v46 = vpop.f32.mrb[119].mxu0  ;;  %v3823_v32 = vpack.c.bf16 %v5519_v51, %v5518_v25 }
 0xa46   : > { %v3207_v58 = vpack.c.bf16 %v2860_v46, %v2857_v23  ;;  %v3099_v4 = vmul.f32 1.442695, %v3082_v47 }
 0xa47   : > { %v3097_v9 = vmul.f32 1.442695, %v3081_v6  ;;  %v3617_v6 = vpop.f32.mrb[107].mxu1  ;;  %v3858_v23 = vsel %vm633_vm0, %v3823_v32, 0 }
 0xa48   : > { %v3056_v20 = vpop.xlane.xlu0 %3055  ;;  %v3822_v17 = vpack.c.bf16 %v3617_v6, %v3614_v35  ;;  %5472 = vmatprep.subr.bf16.mxu0 %v3207_v58 }
 0xa49   : > { %5923 = vpow2.f32 %v3097_v9  ;;  %v3084_v1 = vsub.f32 %v7743_v44, %v3056_v20  ;;  %5473 = vmatpush3.bf16.msra.mxu0 %v3207_v58 }
 0xa4a   : > { %v3064_v43 = vpop.xlane.xlu1 %3063  ;;  %v3855_v44 = vsel %vm633_vm0, %v3822_v17, 0  ;;  %5676 = vmatprep.subr.msk.bf16.mxu1 %vm633_vm0, %v3822_v17  ;;  %5474 = vmatprep.subr.bf16.mxu0 %v3208_v48 }
 0xa4b   : > { %v3103_v14 = vmul.f32 1.442695, %v3084_v1  ;;  %5553 = vmatpush3.bf16.xpose.msra.mxu1 %v3855_v44  ;;  %v3088_v10 = vsub.f32 %v7748_v49, %v3064_v43 }
 0xa4c   : > { %v3062_v42 = vpop.xlane.xlu0 %3061  ;;  %5677 = vmatprep.subr.msk.bf16.mxu1 %vm633_vm0, %v3823_v32 }
 0xa4d   : > { %5925 = vpow2.f32 %v3103_v14  ;;  %v3087_v0 = vsub.f32 %v7753_v40, %v3062_v42  ;;  %5475 = vmatpush3.bf16.msra.mxu0 %v3208_v48 }
 0xa4e   : > { %v3060_v16 = vpop.xlane.xlu1 %3059  ;;  %5927 = vpow2.f32 %v3099_v4  ;;  %5492 = vmatprep.subr.bf16.mxu0 %v6824_v3 }
 0xa4f   : > { %v7817_v9 = vpop.eup %5921  ;;  %v3109_v52 = vmul.f32 1.442695, %v3087_v0  ;;  %v3086_v25 = vsub.f32 %v7758_v13, %v3060_v16  ;;  %v3111_v13 = vmul.f32 1.442695, %v3088_v10 }
 0xa50   : > { %v3058_v35 = vpop.xlane.xlu0 %3057  ;;  %3133 = vadd.xlane.f32.xlu1 %v7817_v9 }
 0xa51   : > { %5929 = vpow2.f32 %v3109_v52  ;;  %v3107_v40 = vmul.f32 1.442695, %v3086_v25  ;;  %v3085_v42 = vsub.f32 %v7763_v36, %v3058_v35 }
 0xa52   : > { %v3072_v17 = vpop.xlane.xlu1 %3071 }
 0xa53   : > { %v7824_v47 = vpop.eup %5923  ;;  %v3105_v20 = vmul.f32 1.442695, %v3085_v42  ;;  %5931 = vpow2.f32 %v3107_v40  ;;  %v3092_v4 = vsub.f32 %v7768_v60, %v3072_v17  ;;  %5555 = vmatpush3.bf16.xpose.msra.mxu1 %v3858_v23 }
 0xa54   : > { %v3070_v49 = vpop.xlane.xlu0 %3069  ;;  %3129 = vadd.xlane.f32.xlu0 %v7824_v47 }
 0xa55   : > { %5933 = vpow2.f32 %v3105_v20  ;;  %v3091_v1 = vsub.f32 %v7773_v15, %v3070_v49  ;;  %v3119_v43 = vmul.f32 1.442695, %v3092_v4 }
 0xa56   : > { %v3068_v36 = vpop.xlane.xlu1 %3067  ;;  %5935 = vpow2.f32 %v3111_v13 }
 0xa57   : > { %v7831_v62 = vpop.eup %5925  ;;  %v3117_v51 = vmul.f32 1.442695, %v3091_v1  ;;  %v3090_v48 = vsub.f32 %v7778_v53, %v3068_v36 }
 0xa58   : > { %v3066_v46 = vpop.xlane.xlu0 %3065  ;;  %3135 = vadd.xlane.f32.xlu1 %v7831_v62  ;;  %v7836_v14 = vpop.eup %5927 }
 0xa59   : > { %5937 = vpow2.f32 %v3117_v51  ;;  %v3089_v60 = vsub.f32 %v7783_v31, %v3066_v46  ;;  %v3115_v58 = vmul.f32 1.442695, %v3090_v48 }
 0xa5a   : > { %5939 = vpow2.f32 %v3119_v43  ;;  %v3547_v40 = vpop.permute.xlu1 %3546 }
 0xa5b   : > { %v7838_v32 = vpop.eup %5929  ;;  %v3113_v15 = vmul.f32 1.442695, %v3089_v60 }
 0xa5c   : > { %v3078_v6 = vpop.xlane.xlu0 %3077  ;;  %3141 = vadd.xlane.f32.xlu0 %v7838_v32  ;;  %3131 = vadd.xlane.f32.xlu1 %v7836_v14 }
 0xa5d   : > { %5941 = vpow2.f32 %v3113_v15  ;;  %v3095_v53 = vsub.f32 %v7788_v30, %v3078_v6  ;;  %v7843_v0 = vpop.eup %5931 }
 0xa5e   : > { %5943 = vpow2.f32 %v3115_v58 }
 0xa5f   : > { %v7845_v16 = vpop.eup %5933  ;;  %v3125_v31 = vmul.f32 1.442695, %v3095_v53 }
 0xa60   : > { %3137 = vadd.xlane.f32.xlu0 %v7845_v16  ;;  %v3074_v44 = vpop.xlane.xlu0 %3073  ;;  %3139 = vadd.xlane.f32.xlu1 %v7843_v0  ;;  %v7850_v25 = vpop.eup %5935 }
 0xa61   : > { %5945 = vpow2.f32 %v3125_v31  ;;  %v3093_v52 = vsub.f32 %v7793_v41, %v3074_v44 }
 0xa63   : > { %v7852_v10 = vpop.eup %5937  ;;  %v3121_v35 = vmul.f32 1.442695, %v3093_v52 }
 0xa64   : > { %v3545_v30 = vpop.permute.xlu0 %3544  ;;  %3143 = vadd.xlane.f32.xlu0 %v7850_v25  ;;  %3149 = vadd.xlane.f32.xlu1 %v7852_v10  ;;  %v7857_v42 = vpop.eup %5939 }
 0xa65   : > { %5947 = vpow2.f32 %v3121_v35  ;;  %5520 = vmatprep.mubr.msk.bf16.mxu1 %vm633_vm0, %v3545_v30 }
 0xa66   : > { %5521 = vmatmul.mubr.msk.bf16.gmra.mrb[108].mxu1 %vm633_vm0, %v3547_v40 }
 0xa67   : > { %v7860_v17 = vpop.eup %5941 }
 0xa68   : > { %3145 = vadd.xlane.f32.xlu0 %v7860_v17  ;;  %3151 = vadd.xlane.f32.xlu1 %v7857_v42  ;;  %v7864_v41 = vpop.eup %5943 }
 0xa6b   : > { %v7866_v20 = vpop.eup %5945 }
 0xa6c   : > { %3157 = vadd.xlane.f32.xlu0 %v7866_v20  ;;  %3147 = vadd.xlane.f32.xlu1 %v7864_v41 }
 0xa6f   : > { %v7870_v13 = vpop.eup %5947 }
 0xa70   : > { %3153 = vadd.xlane.f32.xlu0 %v7870_v13 }
 0xa7d   : > { %3550 = vrot.lane.b32.xlu1 %v6926_v55, %s6381_s8 }
 0xa81   : > { %3552 = vrot.lane.b32.xlu1 %v6928_v56, %s6381_s8 }
 0xa8b   : > { %v3080_v4 = vpop.xlane.xlu1 %3079 }
 0xa8c   : > { %v3096_v49 = vsub.f32 %v7802_v45, %v3080_v4 }
 0xa8e   : > { %v3127_v23 = vmul.f32 1.442695, %v3096_v49 }
 0xa8f   : > { %v3076_v1 = vpop.xlane.xlu1 %3075 }
 0xa90   : > { %5949 = vpow2.f32 %v3127_v23  ;;  %v3094_v36 = vsub.f32 %v7807_v11, %v3076_v1 }
 0xa92   : > { %v3123_v51 = vmul.f32 1.442695, %v3094_v36 }
 0xa94   : > { %5951 = vpow2.f32 %v3123_v51 }
 0xa9a   : > { %v7879_v43 = vpop.eup %5949 }
 0xa9b   : > { %3159 = vadd.xlane.f32.xlu0 %v7879_v43 }
 0xa9e   : > { %v7882_v48 = vpop.eup %5951 }
 0xaa5   : > { %3155 = vadd.xlane.f32.xlu1 %v7882_v48 }
 0xab1   : > { %3548 = vrot.lane.b32.xlu0 %v6916_v50, %s6381_s8 }
 0xab5   : > { %3387 = vrot.lane.b32.xlu0 %v6866_v27, %s6381_s8 }
 0xab6   : > { %3554 = vrot.lane.b32.xlu1 %v6936_v59, %s6381_s8 }
 0xab9   : > { %3391 = vrot.lane.b32.xlu0 %v6875_v33, %s6381_s8 }
 0xaba   : > { %3389 = vrot.lane.b32.xlu1 %v6868_v28, %s6381_s8 }
 0xabd   : > { %3395 = vrot.lane.b32.xlu0 %v6830_v8, %s6381_s8 }
 0xabe   : > { %3393 = vrot.lane.b32.xlu1 %v6892_v38, %s6381_s8 }
 0xac1   : > { %3399 = vrot.lane.b32.xlu0 %v6849_v19, %s6381_s8 }
 0xac2   : > { %3397 = vrot.lane.b32.xlu1 %v6846_v18, %s6381_s8 }
 0xac5   : > { %3677 = vrot.lane.b32.xlu0 %v7028_v29, %s6381_s8 }
 0xac6   : > { %3401 = vrot.lane.b32.xlu1 %v6879_v34, %s6381_s8 }
 0xac9   : > { %3681 = vrot.lane.b32.xlu0 %v7044_v57, %s6381_s8 }
 0xaca   : > { %3679 = vrot.lane.b32.xlu1 %v7037_v37, %s6381_s8 }
 0xacd   : > { %3685 = vrot.lane.b32.xlu0 %v7054_v12, %s6381_s8 }
 0xace   : > { %3683 = vrot.lane.b32.xlu1 %v7049_v5, %s6381_s8 }
 0xad1   : > { %3689 = vrot.lane.b32.xlu0 %v7066_v24, %s6381_s8 }
 0xad2   : > { %3687 = vrot.lane.b32.xlu1 %v7064_v22, %s6381_s8 }
 0xad6   : > { %3691 = vrot.lane.b32.xlu1 %v8533_v61, %s6381_s8 }
 0xadd   : > { %v3134_v8 = vpop.xlane.xlu1 %3133 }
 0xae1   : > { %v3130_v18 = vpop.xlane.xlu0 %3129 }
 0xae5   : > { %v3136_v19 = vpop.xlane.xlu1 %3135 }
 0xae6   : > { %5953 = vrcp.f32 %v3136_v19 }
 0xae7   : > { %5955 = vrcp.f32 %v3130_v18 }
 0xae8   : > { %5957 = vrcp.f32 %v3134_v8 }
 0xae9   : > { %v3142_v27 = vpop.xlane.xlu0 %3141  ;;  %v3132_v28 = vpop.xlane.xlu1 %3131 }
 0xaea   : > { %5959 = vrcp.f32 %v3132_v28 }
 0xaed   : > { %v3138_v33 = vpop.xlane.xlu0 %3137  ;;  %v3140_v34 = vpop.xlane.xlu1 %3139 }
 0xaee   : > { %5961 = vrcp.f32 %v3138_v33 }
 0xaef   : > { %5963 = vrcp.f32 %v3140_v34 }
 0xaf0   : > { %5965 = vrcp.f32 %v3142_v27  ;;  %v5954_v55 = vpop.eup %5953 }
 0xaf1   : > { %v3144_v38 = vpop.xlane.xlu0 %3143  ;;  %v3150_v50 = vpop.xlane.xlu1 %3149  ;;  %v3180_v37 = vmul.f32 %v5954_v55, %v7831_v62 }
 0xaf2   : > { %5967 = vrcp.f32 %v3144_v38  ;;  %v5956_v56 = vpop.eup %5955 }
 0xaf3   : > { %v5958_v59 = vpop.eup %5957  ;;  %v3177_v12 = vmul.f32 %v5956_v56, %v7824_v47 }
 0xaf4   : > { %v5960_v29 = vpop.eup %5959  ;;  %v3179_v24 = vmul.f32 %v5958_v59, %v7817_v9 }
 0xaf5   : > { %v3152_v57 = vpop.xlane.xlu1 %3151  ;;  %v3146_v5 = vpop.xlane.xlu0 %3145  ;;  %v3178_v22 = vmul.f32 %v5960_v29, %v7836_v14 }
 0xaf6   : > { %5969 = vrcp.f32 %v3152_v57  ;;  %v3194_v60 = vpack.c.bf16 %v3180_v37, %v3179_v24 }
 0xaf7   : > { %v3193_v11 = vpack.c.bf16 %v3178_v22, %v3177_v12  ;;  %5971 = vrcp.f32 %v3146_v5 }
 0xaf8   : > { %v5962_v61 = vpop.eup %5961  ;;  %5973 = vrcp.f32 %v3150_v50 }
 0xaf9   : > { %v5964_v45 = vpop.eup %5963  ;;  %v3148_v46 = vpop.xlane.xlu1 %3147  ;;  %v3181_v15 = vmul.f32 %v5962_v61, %v7845_v16  ;;  %5476 = vmatprep.mubr.bf16.mxu0 %v3193_v11 }
 0xafa   : > { %v5966_v58 = vpop.eup %5965  ;;  %v3182_v62 = vmul.f32 %v5964_v45, %v7843_v0  ;;  %5975 = vrcp.f32 %v3148_v46  ;;  %5477 = vmatmul.mubr.bf16.vlgmr.msra.gmra.mrb[120].mxu0 %v3194_v60 }
 0xafb   : > { %5493 = vmatpush3.bf16.msra.mxu0 %v6824_v3  ;;  %v3183_v9 = vmul.f32 %v5966_v58, %v7838_v32 }
 0xafc   : > { %v5968_v47 = vpop.eup %5967  ;;  %v3195_v14 = vpack.c.bf16 %v3182_v62, %v3181_v15  ;;  %5494 = vmatprep.subr.bf16.mxu0 %v6828_v7 }
 0xafd   : > { %v3184_v6 = vmul.f32 %v5968_v47, %v7850_v25  ;;  %v3551_v4 = vpop.permute.xlu1 %3550 }
 0xafe   : > { %5480 = vmatprep.mubr.bf16.mxu0 %v3195_v14 }
 0xaff   : > { %v3196_v53 = vpack.c.bf16 %v3184_v6, %v3183_v9  ;;  %5495 = vmatpush3.bf16.msra.mxu0 %v6828_v7  ;;  %v3158_v7 = vpop.xlane.xlu0 %3157 }
 0xb00   : > { %5532 = vmatprep.subr.bf16.mxu0 %v7020_v63  ;;  %v5970_v16 = vpop.eup %5969 }
 0xb01   : > { %v5972_v0 = vpop.eup %5971  ;;  %v3188_v52 = vmul.f32 %v5970_v16, %v7857_v42  ;;  %v3553_v1 = vpop.permute.xlu1 %3552 }
 0xb02   : > { %5481 = vmatmul.mubr.bf16.gmra.mrb[124].mxu0 %v3196_v53  ;;  %v5974_v31 = vpop.eup %5973  ;;  %v3185_v3 = vmul.f32 %v5972_v0, %v7860_v17 }
 0xb03   : > { %v3187_v25 = vmul.f32 %v5974_v31, %v7852_v10  ;;  %v3154_v40 = vpop.xlane.xlu0 %3153 }
 0xb04   : > { %v5976_v44 = vpop.eup %5975 }
 0xb05   : > { %v3186_v32 = vmul.f32 %v5976_v44, %v7864_v41  ;;  %v3198_v30 = vpack.c.bf16 %v3188_v52, %v3187_v25 }
 0xb07   : > { %v3197_v35 = vpack.c.bf16 %v3186_v32, %v3185_v3 }
 0xb09   : > { %5484 = vmatprep.mubr.bf16.mxu0 %v3197_v35 }
 0xb0a   : > { %5485 = vmatmul.mubr.bf16.gmra.mrb[128].mxu0 %v3198_v30 }
 0xb28   : > { %v3160_v49 = vpop.xlane.xlu0 %3159 }
 0xb29   : > { %5977 = vrcp.f32 %v3160_v49 }
 0xb2a   : > { %5979 = vrcp.f32 %v3154_v40 }
 0xb2b   : > { %5981 = vrcp.f32 %v3158_v7 }
 0xb2c   : > { %v3549_v23 = vpop.permute.xlu0 %3548 }
 0xb2d   : > { %5524 = vmatprep.mubr.msk.bf16.mxu1 %vm633_vm0, %v3549_v23 }
 0xb2e   : > { %5525 = vmatmul.mubr.msk.bf16.gmra.mrb[112].mxu1 %vm633_vm0, %v3551_v4 }
 0xb2f   : > { %5528 = vmatprep.mubr.msk.bf16.mxu1 %vm633_vm0, %v3553_v1 }
 0xb30   : > { %v3388_v37 = vpop.permute.xlu0 %3387 }
 0xb32   : > { %v3156_v10 = vpop.xlane.xlu1 %3155 }
 0xb33   : > { %5983 = vrcp.f32 %v3156_v10  ;;  %v5978_v41 = vpop.eup %5977 }
 0xb34   : > { %v5980_v51 = vpop.eup %5979  ;;  %v3192_v34 = vmul.f32 %v5978_v41, %v7879_v43 }
 0xb35   : > { %v5982_v18 = vpop.eup %5981  ;;  %v3189_v38 = vmul.f32 %v5980_v51, %v7870_v13 }
 0xb36   : > { %v3555_v42 = vpop.permute.xlu1 %3554  ;;  %v3191_v56 = vmul.f32 %v5982_v18, %v7866_v20 }
 0xb37   : > { %5529 = vmatmul.mubr.msk.bf16.gmra.mrb[116].mxu1 %vm633_vm0, %v3555_v42 }
 0xb38   : > { %v3200_v29 = vpack.c.bf16 %v3192_v34, %v3191_v56 }
 0xb39   : > { %v5522_v17 = vpop.f32.mrb[108].mxu1 }
 0xb3a   : > { %v3630_v36 = vpop.f32.mrb[109].mxu1  ;;  %v3390_v43 = vpop.permute.xlu1 %3389 }
 0xb3b   : > { %v5523_v8 = vpop.f32.mrb[110].mxu1 }
 0xb3c   : > { %v3825_v19 = vpack.c.bf16 %v5523_v8, %v5522_v17  ;;  %v3633_v27 = vpop.f32.mrb[111].mxu1 }
 0xb3d   : > { %v5984_v28 = vpop.eup %5983  ;;  %v3824_v33 = vpack.c.bf16 %v3633_v27, %v3630_v36 }
 0xb3e   : > { %v3190_v50 = vmul.f32 %v5984_v28, %v7882_v48  ;;  %v3864_v13 = vsel %vm633_vm0, %v3825_v19, 0  ;;  %v3392_v48 = vpop.permute.xlu0 %3391  ;;  %v3394_v20 = vpop.permute.xlu1 %3393 }
 0xb3f   : > { %v3861_v55 = vsel %vm633_vm0, %v3824_v33, 0  ;;  %5678 = vmatprep.subr.msk.bf16.mxu1 %vm633_vm0, %v3824_v33 }
 0xb40   : > { %5557 = vmatpush3.bf16.xpose.msra.mxu1 %v3861_v55  ;;  %v3199_v59 = vpack.c.bf16 %v3190_v50, %v3189_v38 }
 0xb41   : > { %5679 = vmatprep.subr.msk.bf16.mxu1 %vm633_vm0, %v3825_v19 }
 0xb42   : > { %5488 = vmatprep.mubr.bf16.mxu0 %v3199_v59  ;;  %v3396_v57 = vpop.permute.xlu0 %3395  ;;  %v3398_v5 = vpop.permute.xlu1 %3397 }
 0xb43   : > { %5489 = vmatmul.mubr.bf16.gmra.mrb[132].mxu0 %v3200_v29 }
 0xb44   : > { %5496 = vmatprep.mubr.msk.bf16.mxu0 %vm633_vm0, %v3388_v37 }
 0xb46   : > { %v3400_v12 = vpop.permute.xlu0 %3399  ;;  %v3402_v22 = vpop.permute.xlu1 %3401 }
 0xb48   : > { %5559 = vmatpush3.bf16.xpose.msra.mxu1 %v3864_v13 }
 0xb4b   : > { %5497 = vmatmul.mubr.msk.bf16.vlgmr.msra.gmra.mrb[136].mxu0 %vm633_vm0, %v3390_v43 }
 0xb4c   : > { %5500 = vmatprep.mubr.msk.bf16.mxu0 %vm633_vm0, %v3392_v48  ;;  %5533 = vmatpush3.bf16.msra.mxu0 %v7020_v63 }
 0xb4d   : > { %5534 = vmatprep.subr.bf16.mxu0 %v7025_v26 }
 0xb50   : > { %5535 = vmatpush3.bf16.msra.mxu0 %v7025_v26 }
 0xb53   : > { %5501 = vmatmul.mubr.msk.bf16.gmra.mrb[140].mxu0 %vm633_vm0, %v3394_v20 }
 0xb54   : > { %5504 = vmatprep.mubr.msk.bf16.mxu0 %vm633_vm0, %v3396_v57 }
 0xb5b   : > { %5505 = vmatmul.mubr.msk.bf16.gmra.mrb[144].mxu0 %vm633_vm0, %v3398_v5 }
 0xb5c   : > { %5508 = vmatprep.mubr.msk.bf16.mxu0 %vm633_vm0, %v3400_v12 }
 0xb63   : > { %5509 = vmatmul.mubr.msk.bf16.gmra.mrb[148].mxu0 %vm633_vm0, %v3402_v22 }
 0xbcd   : > { %v7960_v63 = vpop.f32.mrb[120].mxu0 }
 0xbce   : > { %v7962_v24 = vpop.f32.mrb[121].mxu0 }
 0xbcf   : > { %v7964_v61 = vpop.f32.mrb[122].mxu0 }
 0xbd0   : > { %v7966_v26 = vpop.f32.mrb[123].mxu0 }
 0xbd5   : > { %v7968_v11 = vpop.f32.mrb[124].mxu0 }
 0xbd6   : > { %v7970_v45 = vpop.f32.mrb[125].mxu0 }
 0xbd7   : > { %v7972_v46 = vpop.f32.mrb[126].mxu0 }
 0xbd8   : > { %v7974_v60 = vpop.f32.mrb[127].mxu0 }
 0xbdd   : > { %v7976_v15 = vpop.f32.mrb[128].mxu0 }
 0xbde   : > { %v7978_v58 = vpop.f32.mrb[129].mxu0 }
 0xbdf   : > { %v7980_v62 = vpop.f32.mrb[130].mxu0 }
 0xbe0   : > { %v7982_v47 = vpop.f32.mrb[131].mxu0 }
 0xc01   : > { %v5526_v14 = vpop.f32.mrb[112].mxu1 }
 0xc02   : > { %v3646_v9 = vpop.f32.mrb[113].mxu1 }
 0xc03   : > { %v5527_v6 = vpop.f32.mrb[114].mxu1 }
 0xc04   : > { %v3827_v53 = vpack.c.bf16 %v5527_v6, %v5526_v14  ;;  %v3649_v16 = vpop.f32.mrb[115].mxu1 }
 0xc05   : > { %v3826_v0 = vpack.c.bf16 %v3649_v16, %v3646_v9 }
 0xc06   : > { %v3870_v30 = vsel %vm633_vm0, %v3827_v53, 0 }
 0xc07   : > { %v3867_v31 = vsel %vm633_vm0, %v3826_v0, 0  ;;  %5680 = vmatprep.subr.msk.bf16.mxu1 %vm633_vm0, %v3826_v0 }
 0xc08   : > { %5561 = vmatpush3.bf16.xpose.msra.mxu1 %v3867_v31 }
 0xc09   : > { %5681 = vmatprep.subr.msk.bf16.mxu1 %vm633_vm0, %v3827_v53 }
 0xc0a   : > { %v5530_v44 = vpop.f32.mrb[116].mxu1 }
 0xc0b   : > { %v3662_v52 = vpop.f32.mrb[117].mxu1 }
 0xc0c   : > { %v5531_v3 = vpop.f32.mrb[118].mxu1 }
 0xc0d   : > { %v3829_v32 = vpack.c.bf16 %v5531_v3, %v5530_v44  ;;  %v3665_v25 = vpop.f32.mrb[119].mxu1 }
 0xc0e   : > { %v3828_v35 = vpack.c.bf16 %v3665_v25, %v3662_v52 }
 0xc0f   : > { %v3876_v10 = vsel %vm633_vm0, %v3829_v32, 0 }
 0xc10   : > { %5563 = vmatpush3.bf16.xpose.msra.mxu1 %v3870_v30  ;;  %v3873_v40 = vsel %vm633_vm0, %v3828_v35, 0  ;;  %v3680_v30 = vpop.permute.xlu1 %3679 }
 0xc11   : > { %5682 = vmatprep.subr.msk.bf16.mxu1 %vm633_vm0, %v3828_v35  ;;  %v3678_v35 = vpop.permute.xlu0 %3677 }
 0xc12   : > { %5536 = vmatprep.mubr.msk.bf16.mxu0 %vm633_vm0, %v3678_v35 }
 0xc13   : > { %5537 = vmatmul.mubr.msk.bf16.vlgmr.msra.gmra.mrb[152].mxu0 %vm633_vm0, %v3680_v30 }
 0xc16   : > { %v7989_v7 = vpop.f32.mrb[132].mxu0 }
 0xc17   : > { %v7992_v4 = vpop.f32.mrb[133].mxu0 }
 0xc18   : > { %v7994_v49 = vpop.f32.mrb[134].mxu0  ;;  %5565 = vmatpush3.bf16.xpose.msra.mxu1 %v3873_v40  ;;  %v3682_v40 = vpop.permute.xlu0 %3681 }
 0xc19   : > { %v7996_v23 = vpop.f32.mrb[135].mxu0  ;;  %5683 = vmatprep.subr.msk.bf16.mxu1 %vm633_vm0, %v3829_v32  ;;  %5540 = vmatprep.mubr.msk.bf16.mxu0 %vm633_vm0, %v3682_v40 }
 0xc1e   : > { %v5498_v1 = vpop.f32.mrb[136].mxu0 }
 0xc1f   : > { %v3461_v42 = vpop.f32.mrb[137].mxu0  ;;  %v3526_v41 = vmul.f32 0.088388346, %v5498_v1  ;;  %v3684_v1 = vpop.permute.xlu1 %3683 }
 0xc20   : > { %v5499_v17 = vpop.f32.mrb[138].mxu0  ;;  %5567 = vmatpush3.bf16.xpose.msra.mxu1 %v3876_v10  ;;  %v3524_v8 = vmul.f32 0.088388346, %v3461_v42  ;;  %v3686_v10 = vpop.permute.xlu0 %3685  ;;  %5541 = vmatmul.mubr.msk.bf16.gmra.mrb[156].mxu0 %vm633_vm0, %v3684_v1 }
 0xc21   : > { %v3527_v36 = vmul.f32 0.088388346, %v5499_v17  ;;  %v3464_v51 = vpop.f32.mrb[139].mxu0  ;;  %5544 = vmatprep.mubr.msk.bf16.mxu0 %vm633_vm0, %v3686_v10 }
 0xc22   : > { %v3525_v18 = vmul.f32 0.088388346, %v3464_v51 }
 0xc23   : > { %v3815_v19 = vpack.c.bf16 %v3527_v36, %v3526_v41  ;;  %v3688_v42 = vpop.permute.xlu1 %3687 }
 0xc24   : > { %v3814_v27 = vpack.c.bf16 %v3525_v18, %v3524_v8  ;;  %v3690_v17 = vpop.permute.xlu0 %3689 }
 0xc26   : > { %v5502_v28 = vpop.f32.mrb[140].mxu0  ;;  %5568 = vmatprep.mubr.msk.bf16.mxu1 %vm633_vm0, %v3814_v27 }
 0xc27   : > { %v3530_v33 = vmul.f32 0.088388346, %v5502_v28  ;;  %v3477_v34 = vpop.f32.mrb[141].mxu0  ;;  %5569 = vmatmul.mubr.msk.bf16.vlgmr.msra.gmra.mrb[120].mxu1 %vm633_vm0, %v3815_v19  ;;  %v3692_v41 = vpop.permute.xlu1 %3691 }
 0xc28   : > { %v3528_v38 = vmul.f32 0.088388346, %v3477_v34  ;;  %v5503_v50 = vpop.f32.mrb[142].mxu0  ;;  %5545 = vmatmul.mubr.msk.bf16.gmra.mrb[160].mxu0 %vm633_vm0, %v3688_v42 }
 0xc29   : > { %v3531_v55 = vmul.f32 0.088388346, %v5503_v50  ;;  %v3480_v56 = vpop.f32.mrb[143].mxu0  ;;  %5548 = vmatprep.mubr.msk.bf16.mxu0 %vm633_vm0, %v3690_v17 }
 0xc2a   : > { %v3529_v59 = vmul.f32 0.088388346, %v3480_v56 }
 0xc2b   : > { %v3817_v29 = vpack.c.bf16 %v3531_v55, %v3530_v33 }
 0xc2c   : > { %v3816_v37 = vpack.c.bf16 %v3529_v59, %v3528_v38 }
 0xc2e   : > { %v5506_v13 = vpop.f32.mrb[144].mxu0  ;;  %5572 = vmatprep.mubr.msk.bf16.mxu1 %vm633_vm0, %v3816_v37 }
 0xc2f   : > { %v3534_v43 = vmul.f32 0.088388346, %v5506_v13  ;;  %v3493_v48 = vpop.f32.mrb[145].mxu0  ;;  %5573 = vmatmul.mubr.msk.bf16.gmra.mrb[124].mxu1 %vm633_vm0, %v3817_v29 }
 0xc30   : > { %v3532_v20 = vmul.f32 0.088388346, %v3493_v48  ;;  %v5507_v57 = vpop.f32.mrb[146].mxu0  ;;  %5549 = vmatmul.mubr.msk.bf16.gmra.mrb[164].mxu0 %vm633_vm0, %v3692_v41 }
 0xc31   : > { %v3535_v5 = vmul.f32 0.088388346, %v5507_v57  ;;  %v3496_v12 = vpop.f32.mrb[147].mxu0  ;;  %v8573_v57 = vld [vmem:[#allocation45_spill] sm:$0xff] }
 0xc32   : > { %v3533_v22 = vmul.f32 0.088388346, %v3496_v12 }
 0xc33   : > { %v3819_v14 = vpack.c.bf16 %v3535_v5, %v3534_v43 }
 0xc34   : > { %v3818_v9 = vpack.c.bf16 %v3533_v22, %v3532_v20 }
 0xc36   : > { %v5510_v6 = vpop.f32.mrb[148].mxu0  ;;  %5576 = vmatprep.mubr.msk.bf16.mxu1 %vm633_vm0, %v3818_v9 }
 0xc37   : > { %v3538_v53 = vmul.f32 0.088388346, %v5510_v6  ;;  %v3509_v16 = vpop.f32.mrb[149].mxu0  ;;  %5577 = vmatmul.mubr.msk.bf16.gmra.mrb[128].mxu1 %vm633_vm0, %v3819_v14 }
 0xc38   : > { %v3536_v0 = vmul.f32 0.088388346, %v3509_v16  ;;  %v5511_v31 = vpop.f32.mrb[150].mxu0 }
 0xc39   : > { %v3539_v44 = vmul.f32 0.088388346, %v5511_v31  ;;  %v3512_v52 = vpop.f32.mrb[151].mxu0 }
 0xc3a   : > { %v3537_v3 = vmul.f32 0.088388346, %v3512_v52 }
 0xc3b   : > { %v3821_v32 = vpack.c.bf16 %v3539_v44, %v3538_v53 }
 0xc3c   : > { %v3820_v25 = vpack.c.bf16 %v3537_v3, %v3536_v0 }
 0xc3e   : > { %5580 = vmatprep.mubr.msk.bf16.mxu1 %vm633_vm0, %v3820_v25 }
 0xc3f   : > { %5581 = vmatmul.mubr.msk.bf16.gmra.mrb[132].mxu1 %vm633_vm0, %v3821_v32  ;;  %vm8574_vm0 = vcmp.eq.s32.totalorder %v8573_v57, 0 }
 0xce6   : > { %v5538_v10 = vpop.f32.mrb[152].mxu0 }
 0xce7   : > { %v3751_v42 = vpop.f32.mrb[153].mxu0 }
 0xce8   : > { %v5539_v17 = vpop.f32.mrb[154].mxu0 }
 0xce9   : > { %v4144_v41 = vpack.c.bf16 %v5539_v17, %v5538_v10 }
 0xcfa   : > { %v5570_v36 = vpop.f32.mrb[120].mxu1 }
 0xcfb   : > { %v3912_v51 = vpop.f32.mrb[121].mxu1  ;;  %v8028_v28 = vsel %vm1176_vm1, -1e+20, %v5570_v36  ;;  %vm8580_vm1 = vmmov %vm8564_vm12  ;;  %v3754_v36 = vpop.f32.mrb[155].mxu0 }
 0xcfc   : > { %v8018_v8 = vsel %vm1174_vm2, -1e+20, %v3912_v51  ;;  %v5571_v18 = vpop.f32.mrb[122].mxu1  ;;  %v4143_v51 = vpack.c.bf16 %v3754_v36, %v3751_v42  ;;  %vm2428_vm2 = vcmask 523520  }
 0xcfd   : > { %3991 = vmax.xlane.f32.xlu0 %v8018_v8  ;;  %v3915_v19 = vpop.f32.mrb[123].mxu1  ;;  %v8033_v34 = vsel %vm1177_vm3, -1e+20, %v5571_v18  ;;  %v5542_v18 = vpop.f32.mrb[156].mxu0  ;;  %vm3370_vm3 = vcmask 785920  }
 0xcfe   : > { %v8023_v27 = vsel %vm1175_vm4, -1e+20, %v3915_v19  ;;  %v3767_v19 = vpop.f32.mrb[157].mxu0  ;;  %5584 = vmatprep.subr.bf16.mxu0 %v4143_v51  ;;  %vm4312_vm4 = vcmask 1048320  }
 0xcff   : > { %3993 = vmax.xlane.f32.xlu1 %v8023_v27  ;;  %5585 = vmatpush3.bf16.msra.mxu0 %v4143_v51 }
 0xd00   : > { %5586 = vmatprep.subr.bf16.mxu0 %v4144_v41 }
 0xd01   : > { %3995 = vmax.xlane.f32.xlu0 %v8028_v28 }
 0xd02   : > { %v5574_v33 = vpop.f32.mrb[124].mxu1 }
 0xd03   : > { %v3928_v54 = vpop.f32.mrb[125].mxu1  ;;  %v8053_v43 = vsel %vm1180_vm5, -1e+20, %v5574_v33  ;;  %5587 = vmatpush3.bf16.msra.mxu0 %v4144_v41 }
 0xd04   : > { %v5575_v38 = vpop.f32.mrb[126].mxu1  ;;  %v8043_v56 = vsel %vm1178_vm7, -1e+20, %v3928_v54  ;;  %v5543_v54 = vpop.f32.mrb[158].mxu0 }
 0xd05   : > { %3997 = vmax.xlane.f32.xlu0 %v8033_v34  ;;  %v3931_v21 = vpop.f32.mrb[127].mxu1  ;;  %v8048_v2 = vsel %vm1181_vm6, -1e+20, %v5575_v38  ;;  %v3770_v50 = vpop.f32.mrb[159].mxu0 }
 0xd06   : > { %v8038_v55 = vsel %vm1179_vm8, -1e+20, %v3931_v21  ;;  %v4146_v21 = vpack.c.bf16 %v5543_v54, %v5542_v18  ;;  %v4145_v59 = vpack.c.bf16 %v3770_v50, %v3767_v19 }
 0xd07   : > { %4001 = vmax.xlane.f32.xlu1 %v8038_v55 }
 0xd08   : > { %5588 = vmatprep.subr.bf16.mxu0 %v4145_v59 }
 0xd09   : > { %3999 = vmax.xlane.f32.xlu0 %v8043_v56  ;;  %5589 = vmatpush3.bf16.msra.mxu0 %v4145_v59 }
 0xd0a   : > { %v5578_v29 = vpop.f32.mrb[128].mxu1  ;;  %5590 = vmatprep.subr.bf16.mxu0 %v4146_v21 }
 0xd0b   : > { %4005 = vmax.xlane.f32.xlu1 %v8048_v2  ;;  %v3944_v37 = vpop.f32.mrb[129].mxu1  ;;  %v8073_v0 = vsel %vm1184_vm9, -1e+20, %v5578_v29  ;;  %v5546_v29 = vpop.f32.mrb[160].mxu0 }
 0xd0c   : > { %v5579_v48 = vpop.f32.mrb[130].mxu1  ;;  %v8063_v22 = vsel %vm1182_vm11, -1e+20, %v3944_v37 }
 0xd0d   : > { %4003 = vmax.xlane.f32.xlu0 %v8053_v43  ;;  %v3947_v20 = vpop.f32.mrb[131].mxu1  ;;  %v8068_v9 = vsel %vm1185_vm10, -1e+20, %v5579_v48  ;;  %v3783_v48 = vpop.f32.mrb[161].mxu0  ;;  %5591 = vmatpush3.bf16.msra.mxu0 %v4146_v21 }
 0xd0e   : > { %v8058_v5 = vsel %vm8574_vm0, -1e+20, %v3947_v20  ;;  %v5547_v57 = vpop.f32.mrb[162].mxu0 }
 0xd0f   : > { %4009 = vmax.xlane.f32.xlu1 %v8058_v5 }
 0xd11   : > { %4007 = vmax.xlane.f32.xlu0 %v8063_v22 }
 0xd12   : > { %v5582_v6 = vpop.f32.mrb[132].mxu1 }
 0xd13   : > { %4013 = vmax.xlane.f32.xlu1 %v8068_v9  ;;  %v3960_v53 = vpop.f32.mrb[133].mxu1  ;;  %v8093_v1 = vsel %vm1188_vm13, -1e+20, %v5582_v6  ;;  %v4148_v6 = vpack.c.bf16 %v5547_v57, %v5546_v29 }
 0xd14   : > { %v5583_v31 = vpop.f32.mrb[134].mxu1  ;;  %v8083_v25 = vsel %vm8580_vm1, -1e+20, %v3960_v53 }
 0xd15   : > { %4011 = vmax.xlane.f32.xlu0 %v8073_v0  ;;  %v3963_v44 = vpop.f32.mrb[135].mxu1  ;;  %v8088_v30 = vsel %vm1189_vm15, -1e+20, %v5583_v31 }
 0xd16   : > { %v8078_v3 = vsel %vm1187_vm14, -1e+20, %v3963_v44 }
 0xd17   : > { %4017 = vmax.xlane.f32.xlu1 %v8078_v3 }
 0xd19   : > { %4015 = vmax.xlane.f32.xlu0 %v8083_v25 }
 0xd1b   : > { %4021 = vmax.xlane.f32.xlu1 %v8088_v30 }
 0xd1d   : > { %4019 = vmax.xlane.f32.xlu0 %v8093_v1 }
 0xd8a   : > { %v3992_v33 = vpop.xlane.xlu0 %3991 }
 0xd8b   : > { %v4023_v38 = vsub.f32 %v8018_v8, %v3992_v33  ;;  %v3786_v8 = vpop.f32.mrb[163].mxu0 }
 0xd8c   : > { %v3994_v39 = vpop.xlane.xlu1 %3993  ;;  %v4147_v53 = vpack.c.bf16 %v3786_v8, %v3783_v48  ;;  %v5550_v16 = vpop.f32.mrb[164].mxu0 }
 0xd8d   : > { %v4039_v37 = vmul.f32 1.442695, %v4023_v38  ;;  %v4024_v13 = vsub.f32 %v8023_v27, %v3994_v39  ;;  %v3799_v44 = vpop.f32.mrb[165].mxu0 }
 0xd8e   : > { %v3996_v20 = vpop.xlane.xlu0 %3995  ;;  %v5551_v32 = vpop.f32.mrb[166].mxu0  ;;  %5592 = vmatprep.subr.bf16.mxu0 %v4147_v53 }
 0xd8f   : > { %5985 = vpow2.f32 %v4039_v37  ;;  %v4041_v12 = vmul.f32 1.442695, %v4024_v13  ;;  %v4025_v14 = vsub.f32 %v8028_v28, %v3996_v20  ;;  %v8100_v35 = vpack.c.bf16 %v5551_v32, %v5550_v16  ;;  %v3802_v40 = vpop.f32.mrb[167].mxu0  ;;  %5593 = vmatpush3.bf16.msra.mxu0 %v4147_v53 }
 0xd90   : > { %v4149_v28 = vpack.c.bf16 %v3802_v40, %v3799_v44  ;;  %5594 = vmatprep.subr.bf16.mxu0 %v4148_v6 }
 0xd91   : > { %5987 = vpow2.f32 %v4041_v12  ;;  %v4043_v31 = vmul.f32 1.442695, %v4025_v14 }
 0xd92   : > { %v3998_v52 = vpop.xlane.xlu0 %3997 }
 0xd93   : > { %5989 = vpow2.f32 %v4043_v31  ;;  %v4026_v27 = vsub.f32 %v8033_v34, %v3998_v52  ;;  %5595 = vmatpush3.bf16.msra.mxu0 %v4148_v6 }
 0xd94   : > { %v4002_v10 = vpop.xlane.xlu1 %4001  ;;  %5596 = vmatprep.subr.bf16.mxu0 %v4149_v28 }
 0xd95   : > { %v4045_v42 = vmul.f32 1.442695, %v4026_v27  ;;  %v4028_v17 = vsub.f32 %v8038_v55, %v4002_v10 }
 0xd96   : > { %v4000_v41 = vpop.xlane.xlu0 %3999 }
 0xd97   : > { %5991 = vpow2.f32 %v4045_v42  ;;  %v4049_v36 = vmul.f32 1.442695, %v4028_v17  ;;  %v4027_v51 = vsub.f32 %v8043_v56, %v4000_v41  ;;  %5597 = vmatpush3.bf16.msra.mxu0 %v4149_v28 }
 0xd98   : > { %v4006_v18 = vpop.xlane.xlu1 %4005  ;;  %5598 = vmatprep.subr.bf16.mxu0 %v8100_v35 }
 0xd99   : > { %v8104_v19 = vpop.eup %5985  ;;  %v4047_v34 = vmul.f32 1.442695, %v4027_v51  ;;  %v4030_v33 = vsub.f32 %v8048_v2, %v4006_v18  ;;  %5993 = vpow2.f32 %v4049_v36  ;;  %v8583_v51 = vld [vmem:[#allocation52_spill] sm:$0xff]  ;;  %v8584_v18 = vld [vmem:[#allocation34_spill] sm:$0xff] }
 0xd9a   : > { %v4004_v54 = vpop.xlane.xlu0 %4003  ;;  %4071 = vadd.xlane.f32.xlu0 %v8104_v19 }
 0xd9b   : > { %v8108_v38 = vpop.eup %5987  ;;  %5995 = vpow2.f32 %v4047_v34  ;;  %v4053_v55 = vmul.f32 1.442695, %v4030_v33  ;;  %v4029_v50 = vsub.f32 %v8053_v43, %v4004_v54  ;;  %5599 = vmatpush3.bf16.msra.mxu0 %v8100_v35  ;;  %v8585_v34 = vld [vmem:[#allocation50_spill] sm:$0xff]  ;;  %v8586_v33 = vld [vmem:[#allocation51_spill] sm:$0xff] }
 0xd9c   : > { %4073 = vadd.xlane.f32.xlu1 %v8108_v38  ;;  %v4010_v56 = vpop.xlane.xlu1 %4009  ;;  %v8587_v54 = vld [vmem:[#allocation54_spill] sm:$0xff] }
 0xd9d   : > { %v8112_v21 = vpop.eup %5989  ;;  %v4051_v39 = vmul.f32 1.442695, %v4029_v50  ;;  %v4032_v2 = vsub.f32 %v8058_v5, %v4010_v56  ;;  %5997 = vpow2.f32 %v4053_v55  ;;  %v8588_v55 = vld [vmem:[#allocation56_spill] sm:$0xff]  ;;  %v8589_v50 = vld [vmem:[#allocation53_spill] sm:$0xff] }
 0xd9e   : > { %v4008_v59 = vpop.xlane.xlu0 %4007  ;;  %4075 = vadd.xlane.f32.xlu0 %v8112_v21 }
 0xd9f   : > { %5999 = vpow2.f32 %v4051_v39  ;;  %v4057_v29 = vmul.f32 1.442695, %v4032_v2  ;;  %v4031_v37 = vsub.f32 %v8063_v22, %v4008_v59 }
 0xda0   : > { %v4014_v43 = vpop.xlane.xlu1 %4013 }
 0xda1   : > { %v8117_v13 = vpop.eup %5991  ;;  %v4055_v48 = vmul.f32 1.442695, %v4031_v37  ;;  %v4034_v20 = vsub.f32 %v8068_v9, %v4014_v43  ;;  %6001 = vpow2.f32 %v4057_v29 }
 0xda2   : > { %v4012_v57 = vpop.xlane.xlu0 %4011  ;;  %4077 = vadd.xlane.f32.xlu1 %v8117_v13 }
 0xda3   : > { %6003 = vpow2.f32 %v4055_v48  ;;  %v4061_v5 = vmul.f32 1.442695, %v4034_v20  ;;  %v4033_v12 = vsub.f32 %v8073_v0, %v4012_v57  ;;  %v8122_v14 = vpop.eup %5993 }
 0xda4   : > { %v4018_v22 = vpop.xlane.xlu1 %4017 }
 0xda5   : > { %v8125_v6 = vpop.eup %5995  ;;  %v4059_v8 = vmul.f32 1.442695, %v4033_v12  ;;  %v4036_v53 = vsub.f32 %v8078_v3, %v4018_v22  ;;  %6005 = vpow2.f32 %v4061_v5 }
 0xda6   : > { %4079 = vadd.xlane.f32.xlu0 %v8125_v6  ;;  %v4016_v9 = vpop.xlane.xlu0 %4015  ;;  %4081 = vadd.xlane.f32.xlu1 %v8122_v14 }
 0xda7   : > { %6007 = vpow2.f32 %v4059_v8  ;;  %v4065_v16 = vmul.f32 1.442695, %v4036_v53  ;;  %v4035_v0 = vsub.f32 %v8083_v25, %v4016_v9  ;;  %v8132_v31 = vpop.eup %5997 }
 0xda8   : > { %v4022_v44 = vpop.xlane.xlu1 %4021 }
 0xda9   : > { %v8134_v52 = vpop.eup %5999  ;;  %v4063_v32 = vmul.f32 1.442695, %v4035_v0  ;;  %v4038_v3 = vsub.f32 %v8088_v30, %v4022_v44  ;;  %6009 = vpow2.f32 %v4065_v16 }
 0xdaa   : > { %4083 = vadd.xlane.f32.xlu0 %v8134_v52  ;;  %v4020_v27 = vpop.xlane.xlu0 %4019  ;;  %4085 = vadd.xlane.f32.xlu1 %v8132_v31 }
 0xdab   : > { %6011 = vpow2.f32 %v4063_v32  ;;  %v4069_v40 = vmul.f32 1.442695, %v4038_v3  ;;  %v4037_v25 = vsub.f32 %v8093_v1, %v4020_v27  ;;  %v8140_v10 = vpop.eup %6001 }
 0xdad   : > { %v8142_v35 = vpop.eup %6003  ;;  %v4067_v28 = vmul.f32 1.442695, %v4037_v25  ;;  %6013 = vpow2.f32 %v4069_v40 }
 0xdae   : > { %4087 = vadd.xlane.f32.xlu0 %v8142_v35  ;;  %4089 = vadd.xlane.f32.xlu1 %v8140_v10 }
 0xdaf   : > { %6015 = vpow2.f32 %v4067_v28  ;;  %v8146_v30 = vpop.eup %6005 }
 0xdb1   : > { %v8148_v42 = vpop.eup %6007 }
 0xdb2   : > { %4091 = vadd.xlane.f32.xlu0 %v8148_v42  ;;  %4093 = vadd.xlane.f32.xlu1 %v8146_v30 }
 0xdb3   : > { %v8152_v1 = vpop.eup %6009 }
 0xdb5   : > { %v8154_v17 = vpop.eup %6011 }
 0xdb6   : > { %4095 = vadd.xlane.f32.xlu0 %v8154_v17  ;;  %4097 = vadd.xlane.f32.xlu1 %v8152_v1 }
 0xdb7   : > { %v8158_v41 = vpop.eup %6013 }
 0xdb9   : > { %v8160_v36 = vpop.eup %6015 }
 0xdba   : > { %4099 = vadd.xlane.f32.xlu0 %v8160_v36  ;;  %4101 = vadd.xlane.f32.xlu1 %v8158_v41 }
 0xdcb   : > { %2382 = vrot.lane.b32.xlu1 %v8583_v51, %s6381_s8 }
 0xdcf   : > { %2384 = vrot.lane.b32.xlu1 %v8584_v18, %s6381_s8 }
 0xdd0   : > { %2380 = vrot.lane.b32.xlu0 %v8585_v34, %s6381_s8 }
 0xdd3   : > { %2386 = vrot.lane.b32.xlu1 %v8586_v33, %s6381_s8 }
 0xdd4   : > { %3322 = vrot.lane.b32.xlu0 %v7962_v24, %s6380_s28  ;;  %v8590_v24 = vld [vmem:[#allocation55_spill] sm:$0xff] }
 0xdd7   : > { %3324 = vrot.lane.b32.xlu1 %v7966_v26, %s6380_s28  ;;  %v8593_v26 = vld [vmem:[#allocation57_spill] sm:$0xff] }
 0xdd8   : > { %3326 = vrot.lane.b32.xlu0 %v7960_v63, %s6380_s28  ;;  %v8591_v63 = vld [vmem:[#allocation58_spill] sm:$0xff] }
 0xddb   : > { %3328 = vrot.lane.b32.xlu1 %v7964_v61, %s6380_s28  ;;  %v8592_v61 = vld [vmem:[#allocation60_spill] sm:$0xff] }
 0xddc   : > { %2388 = vrot.lane.b32.xlu0 %v8587_v54, %s6381_s8 }
 0xddf   : > { %2390 = vrot.lane.b32.xlu1 %v8588_v55, %s6381_s8 }
 0xde0   : > { %2392 = vrot.lane.b32.xlu0 %v8589_v50, %s6381_s8 }
 0xde3   : > { %2394 = vrot.lane.b32.xlu1 %v8590_v24, %s6381_s8 }
 0xde4   : > { %3330 = vrot.lane.b32.xlu0 %v7970_v45, %s6380_s28  ;;  %v8594_v45 = vld [vmem:[#allocation59_spill] sm:$0xff] }
 0xde7   : > { %3332 = vrot.lane.b32.xlu1 %v7974_v60, %s6380_s28  ;;  %v8597_v60 = vld [vmem:[#allocation61_spill] sm:$0xff] }
 0xde8   : > { %3334 = vrot.lane.b32.xlu0 %v7968_v11, %s6380_s28  ;;  %v8595_v11 = vld [vmem:[#allocation62_spill] sm:$0xff] }
 0xdeb   : > { %3336 = vrot.lane.b32.xlu1 %v7972_v46, %s6380_s28  ;;  %v8596_v46 = vld [vmem:[#allocation64_spill] sm:$0xff] }
 0xdec   : > { %2396 = vrot.lane.b32.xlu0 %v8591_v63, %s6381_s8 }
 0xdef   : > { %2398 = vrot.lane.b32.xlu1 %v8592_v61, %s6381_s8 }
 0xdf0   : > { %2400 = vrot.lane.b32.xlu0 %v8593_v26, %s6381_s8 }
 0xdf3   : > { %2402 = vrot.lane.b32.xlu1 %v8594_v45, %s6381_s8 }
 0xdf4   : > { %3338 = vrot.lane.b32.xlu0 %v7978_v58, %s6380_s28  ;;  %v8598_v58 = vld [vmem:[#allocation63_spill] sm:$0xff] }
 0xdf7   : > { %3340 = vrot.lane.b32.xlu1 %v7982_v47, %s6380_s28 }
 0xdf8   : > { %3342 = vrot.lane.b32.xlu0 %v7976_v15, %s6380_s28 }
 0xdfb   : > { %3344 = vrot.lane.b32.xlu1 %v7980_v62, %s6380_s28 }
 0xdfc   : > { %2404 = vrot.lane.b32.xlu0 %v8595_v11, %s6381_s8 }
 0xdff   : > { %2406 = vrot.lane.b32.xlu1 %v8596_v46, %s6381_s8 }
 0xe00   : > { %2408 = vrot.lane.b32.xlu0 %v8597_v60, %s6381_s8 }
 0xe03   : > { %2410 = vrot.lane.b32.xlu1 %v8598_v58, %s6381_s8 }
 0xe04   : > { %3346 = vrot.lane.b32.xlu0 %v7992_v4, %s6380_s28 }
 0xe07   : > { %3348 = vrot.lane.b32.xlu1 %v7996_v23, %s6380_s28 }
 0xe27   : > { %v4072_v15 = vpop.xlane.xlu0 %4071 }
 0xe28   : > { %6017 = vrcp.f32 %v4072_v15 }
 0xe29   : > { %v4074_v62 = vpop.xlane.xlu1 %4073 }
 0xe2a   : > { %6019 = vrcp.f32 %v4074_v62 }
 0xe2b   : > { %v4076_v47 = vpop.xlane.xlu0 %4075 }
 0xe2c   : > { %6021 = vrcp.f32 %v4076_v47 }
 0xe2f   : > { %v4078_v56 = vpop.xlane.xlu1 %4077 }
 0xe30   : > { %6023 = vrcp.f32 %v4078_v56 }
 0xe32   : > { %v6018_v39 = vpop.eup %6017 }
 0xe33   : > { %v4080_v2 = vpop.xlane.xlu0 %4079  ;;  %v4082_v59 = vpop.xlane.xlu1 %4081  ;;  %v4119_v37 = vmul.f32 %v6018_v39, %v8104_v19 }
 0xe34   : > { %v6020_v29 = vpop.eup %6019  ;;  %6025 = vrcp.f32 %v4080_v2 }
 0xe35   : > { %6027 = vrcp.f32 %v4082_v59  ;;  %v4120_v4 = vmul.f32 %v6020_v29, %v8108_v38 }
 0xe36   : > { %v6022_v20 = vpop.eup %6021 }
 0xe37   : > { %v4084_v43 = vpop.xlane.xlu0 %4083  ;;  %v4086_v23 = vpop.xlane.xlu1 %4085  ;;  %v4135_v48 = vpack.c.bf16 %v4120_v4, %v4119_v37  ;;  %v4121_v5 = vmul.f32 %v6022_v20, %v8112_v21 }
 0xe38   : > { %6029 = vrcp.f32 %v4084_v43 }
 0xe39   : > { %6031 = vrcp.f32 %v4086_v23  ;;  %5600 = vmatprep.mubr.bf16.mxu0 %v4135_v48 }
 0xe3a   : > { %v6024_v57 = vpop.eup %6023 }
 0xe3b   : > { %v4122_v12 = vmul.f32 %v6024_v57, %v8117_v13  ;;  %v4088_v22 = vpop.xlane.xlu0 %4087  ;;  %v4090_v8 = vpop.xlane.xlu1 %4089 }
 0xe3c   : > { %6033 = vrcp.f32 %v4088_v22 }
 0xe3d   : > { %6035 = vrcp.f32 %v4090_v8  ;;  %v4136_v53 = vpack.c.bf16 %v4122_v12, %v4121_v5 }
 0xe3e   : > { %v6026_v19 = vpop.eup %6025 }
 0xe3f   : > { %v6028_v9 = vpop.eup %6027  ;;  %v4092_v38 = vpop.xlane.xlu0 %4091  ;;  %5601 = vmatmul.mubr.bf16.vlgmr.msra.gmra.mrb[168].mxu0 %v4136_v53  ;;  %v4123_v0 = vmul.f32 %v6026_v19, %v8125_v6 }
 0xe40   : > { %v4094_v16 = vpop.xlane.xlu1 %4093  ;;  %6037 = vrcp.f32 %v4092_v38  ;;  %v4124_v44 = vmul.f32 %v6028_v9, %v8122_v14 }
 0xe41   : > { %6039 = vrcp.f32 %v4094_v16 }
 0xe42   : > { %v6030_v32 = vpop.eup %6029  ;;  %v4137_v21 = vpack.c.bf16 %v4124_v44, %v4123_v0  ;;  %v4353_v0 = vld [vmem:[#allocation15] sm:$0xff]  ;;  %v4354_v44 = vld [vmem:[#allocation15 + $0x8] sm:$0xff] }
 0xe43   : > { %v6032_v3 = vpop.eup %6031  ;;  %v4096_v13 = vpop.xlane.xlu0 %4095  ;;  %v4125_v40 = vmul.f32 %v6030_v32, %v8134_v52  ;;  %v4355_v32 = vld [vmem:[#allocation15 + $0x10] sm:$0xff] }
 0xe44   : > { %v4098_v27 = vpop.xlane.xlu1 %4097  ;;  %6041 = vrcp.f32 %v4096_v13  ;;  %5604 = vmatprep.mubr.bf16.mxu0 %v4137_v21  ;;  %v4126_v25 = vmul.f32 %v6032_v3, %v8132_v31  ;;  %v4369_v21 = vpack.c.bf16 %v4354_v44, %v4353_v0  ;;  %v4356_v3 = vld [vmem:[#allocation15 + $0x18] sm:$0xff] }
 0xe45   : > { %6043 = vrcp.f32 %v4098_v27  ;;  %v4370_v13 = vpack.c.bf16 %v4356_v3, %v4355_v32  ;;  %v4357_v27 = vld [vmem:[#allocation15 + $0x20] sm:$0xff] }
 0xe46   : > { %v6034_v28 = vpop.eup %6033  ;;  %v4138_v51 = vpack.c.bf16 %v4126_v25, %v4125_v40  ;;  %v4358_v40 = vld [vmem:[#allocation15 + $0x28] sm:$0xff]  ;;  %5616 = vmatprep.subr.bf16.mxu0 %v4369_v21 }
 0xe47   : > { %v6036_v18 = vpop.eup %6035  ;;  %v4100_v6 = vpop.xlane.xlu0 %4099  ;;  %v4127_v14 = vmul.f32 %v6034_v28, %v8142_v35  ;;  %5617 = vmatpush3.bf16.msra.mxu0 %v4369_v21  ;;  %v4371_v25 = vpack.c.bf16 %v4358_v40, %v4357_v27  ;;  %v4359_v28 = vld [vmem:[#allocation15 + $0x30] sm:$0xff] }
 0xe48   : > { %v4102_v34 = vpop.xlane.xlu1 %4101  ;;  %6045 = vrcp.f32 %v4100_v6  ;;  %5605 = vmatmul.mubr.bf16.gmra.mrb[172].mxu0 %v4138_v51  ;;  %v4128_v33 = vmul.f32 %v6036_v18, %v8140_v10  ;;  %5618 = vmatprep.subr.bf16.mxu0 %v4370_v13  ;;  %v4360_v51 = vld [vmem:[#allocation15 + $0x38] sm:$0xff]  ;;  %v4361_v6 = vld [vmem:[#allocation15 + $0x40] sm:$0xff] }
 0xe49   : > { %6047 = vrcp.f32 %v4102_v34  ;;  %v4372_v18 = vpack.c.bf16 %v4360_v51, %v4359_v28  ;;  %v4362_v34 = vld [vmem:[#allocation15 + $0x48] sm:$0xff] }
 0xe4a   : > { %v6038_v54 = vpop.eup %6037  ;;  %v4139_v52 = vpack.c.bf16 %v4128_v33, %v4127_v14  ;;  %v4373_v14 = vpack.c.bf16 %v4362_v34, %v4361_v6  ;;  %v4363_v33 = vld [vmem:[#allocation15 + $0x50] sm:$0xff] }
 0xe4b   : > { %v6040_v55 = vpop.eup %6039  ;;  %v2381_v50 = vpop.permute.xlu0 %2380  ;;  %v4129_v31 = vmul.f32 %v6038_v54, %v8148_v42  ;;  %5619 = vmatpush3.bf16.msra.mxu0 %v4370_v13  ;;  %v4364_v54 = vld [vmem:[#allocation15 + $0x58] sm:$0xff] }
 0xe4c   : > { %v2383_v24 = vpop.permute.xlu1 %2382  ;;  %2429 = vst.msk [vmem:[#allocation2] sm:$0xff] %vm2428_vm2, %v2381_v50  ;;  %5608 = vmatprep.mubr.bf16.mxu0 %v4139_v52  ;;  %v4130_v35 = vmul.f32 %v6040_v55, %v8146_v30  ;;  %5620 = vmatprep.subr.bf16.mxu0 %v4371_v25  ;;  %v4374_v52 = vpack.c.bf16 %v4364_v54, %v4363_v33  ;;  %v4365_v55 = vld [vmem:[#allocation15 + $0x60] sm:$0xff]  ;;  %v4366_v50 = vld [vmem:[#allocation15 + $0x68] sm:$0xff] }
 0xe4d   : > { %2430 = vst.msk [vmem:[#allocation2 + $0x8] sm:$0xff] %vm2428_vm2, %v2383_v24  ;;  %v4375_v24 = vpack.c.bf16 %v4366_v50, %v4365_v55  ;;  %v4845_v55 = vld [vmem:[%s8599_s13] ss:$0 sm:$0xff] }
 0xe4e   : > { %v6042_v63 = vpop.eup %6041  ;;  %v4140_v61 = vpack.c.bf16 %v4130_v35, %v4129_v31  ;;  %v4367_v31 = vld [vmem:[#allocation15 + $0x70] sm:$0xff]  ;;  %v4368_v35 = vld [vmem:[#allocation15 + $0x78] sm:$0xff] }
 0xe4f   : > { %v6044_v10 = vpop.eup %6043  ;;  %v3323_v26 = vpop.permute.xlu0 %3322  ;;  %v4131_v11 = vmul.f32 %v6042_v63, %v8154_v17  ;;  %5621 = vmatpush3.bf16.msra.mxu0 %v4371_v25 }
 0xe50   : > { %v2385_v45 = vpop.permute.xlu1 %2384  ;;  %3371 = vst.msk [vmem:[#allocation2] sm:$0xff] %vm3370_vm3, %v3323_v26  ;;  %5609 = vmatmul.mubr.bf16.gmra.mrb[176].mxu0 %v4140_v61  ;;  %v4132_v42 = vmul.f32 %v6044_v10, %v8152_v1  ;;  %5622 = vmatprep.subr.bf16.mxu0 %v4372_v18  ;;  %v4376_v61 = vpack.c.bf16 %v4368_v35, %v4367_v31 }
 0xe51   : > { %2431 = vst.msk [vmem:[#allocation2 + $0x10] sm:$0xff] %vm2428_vm2, %v2385_v45 }
 0xe52   : > { %v6046_v46 = vpop.eup %6045  ;;  %v4141_v60 = vpack.c.bf16 %v4132_v42, %v4131_v11 }
 0xe53   : > { %v6048_v58 = vpop.eup %6047  ;;  %v3327_v15 = vpop.permute.xlu0 %3326  ;;  %v4133_v62 = vmul.f32 %v6046_v46, %v8160_v36  ;;  %5623 = vmatpush3.bf16.msra.mxu0 %v4372_v18 }
 0xe54   : > { %v2387_v30 = vpop.permute.xlu1 %2386  ;;  %3373 = vst.msk [vmem:[#allocation2 + $0x10] sm:$0xff] %vm3370_vm3, %v3327_v15  ;;  %5612 = vmatprep.mubr.bf16.mxu0 %v4141_v60  ;;  %v4134_v17 = vmul.f32 %v6048_v58, %v8158_v41  ;;  %5624 = vmatprep.subr.bf16.mxu0 %v4373_v14 }
 0xe55   : > { %2432 = vst.msk [vmem:[#allocation2 + $0x18] sm:$0xff] %vm2428_vm2, %v2387_v30 }
 0xe56   : > { %v4142_v47 = vpack.c.bf16 %v4134_v17, %v4133_v62 }
 0xe57   : > { %v2389_v56 = vpop.permute.xlu0 %2388  ;;  %5625 = vmatpush3.bf16.msra.mxu0 %v4373_v14 }
 0xe58   : > { %v3325_v39 = vpop.permute.xlu1 %3324  ;;  %2433 = vst.msk [vmem:[#allocation2 + $0x20] sm:$0xff] %vm2428_vm2, %v2389_v56  ;;  %5613 = vmatmul.mubr.bf16.gmra.mrb[180].mxu0 %v4142_v47  ;;  %5626 = vmatprep.subr.bf16.mxu0 %v4374_v52 }
 0xe59   : > { %3372 = vst.msk [vmem:[#allocation2 + $0x8] sm:$0xff] %vm3370_vm3, %v3325_v39 }
 0xe5b   : > { %v2393_v1 = vpop.permute.xlu0 %2392  ;;  %5627 = vmatpush3.bf16.msra.mxu0 %v4374_v52 }
 0xe5c   : > { %v3329_v2 = vpop.permute.xlu1 %3328  ;;  %2435 = vst.msk [vmem:[#allocation2 + $0x30] sm:$0xff] %vm2428_vm2, %v2393_v1  ;;  %5628 = vmatprep.subr.bf16.mxu0 %v4375_v24 }
 0xe5d   : > { %3374 = vst.msk [vmem:[#allocation2 + $0x18] sm:$0xff] %vm3370_vm3, %v3329_v2 }
 0xe5f   : > { %v3331_v36 = vpop.permute.xlu0 %3330  ;;  %5629 = vmatpush3.bf16.msra.mxu0 %v4375_v24 }
 0xe60   : > { %v2391_v59 = vpop.permute.xlu1 %2390  ;;  %3375 = vst.msk [vmem:[#allocation2 + $0x20] sm:$0xff] %vm3370_vm3, %v3331_v36  ;;  %5630 = vmatprep.subr.bf16.mxu0 %v4376_v61 }
 0xe61   : > { %2434 = vst.msk [vmem:[#allocation2 + $0x28] sm:$0xff] %vm2428_vm2, %v2391_v59 }
 0xe63   : > { %v3335_v41 = vpop.permute.xlu0 %3334  ;;  %5631 = vmatpush3.bf16.msra.mxu0 %v4376_v61 }
 0xe64   : > { %v2395_v29 = vpop.permute.xlu1 %2394  ;;  %3377 = vst.msk [vmem:[#allocation2 + $0x30] sm:$0xff] %vm3370_vm3, %v3335_v41 }
 0xe65   : > { %2436 = vst.msk [vmem:[#allocation2 + $0x38] sm:$0xff] %vm2428_vm2, %v2395_v29 }
 0xe67   : > { %v2397_v37 = vpop.permute.xlu0 %2396 }
 0xe68   : > { %v3333_v4 = vpop.permute.xlu1 %3332  ;;  %2437 = vst.msk [vmem:[#allocation2 + $0x40] sm:$0xff] %vm2428_vm2, %v2397_v37 }
 0xe69   : > { %3376 = vst.msk [vmem:[#allocation2 + $0x28] sm:$0xff] %vm3370_vm3, %v3333_v4 }
 0xe6b   : > { %v2401_v43 = vpop.permute.xlu0 %2400 }
 0xe6c   : > { %v3337_v23 = vpop.permute.xlu1 %3336  ;;  %2439 = vst.msk [vmem:[#allocation2 + $0x50] sm:$0xff] %vm2428_vm2, %v2401_v43 }
 0xe6d   : > { %3378 = vst.msk [vmem:[#allocation2 + $0x38] sm:$0xff] %vm3370_vm3, %v3337_v23 }
 0xe6f   : > { %v3339_v48 = vpop.permute.xlu0 %3338 }
 0xe70   : > { %v2399_v20 = vpop.permute.xlu1 %2398  ;;  %3379 = vst.msk [vmem:[#allocation2 + $0x40] sm:$0xff] %vm3370_vm3, %v3339_v48 }
 0xe71   : > { %2438 = vst.msk [vmem:[#allocation2 + $0x48] sm:$0xff] %vm2428_vm2, %v2399_v20 }
 0xe73   : > { %v3343_v57 = vpop.permute.xlu0 %3342 }
 0xe74   : > { %v2403_v5 = vpop.permute.xlu1 %2402  ;;  %3381 = vst.msk [vmem:[#allocation2 + $0x50] sm:$0xff] %vm3370_vm3, %v3343_v57 }
 0xe75   : > { %2440 = vst.msk [vmem:[#allocation2 + $0x58] sm:$0xff] %vm2428_vm2, %v2403_v5 }
 0xe77   : > { %v2405_v12 = vpop.permute.xlu0 %2404 }
 0xe78   : > { %v3341_v22 = vpop.permute.xlu1 %3340  ;;  %2441 = vst.msk [vmem:[#allocation2 + $0x60] sm:$0xff] %vm2428_vm2, %v2405_v12 }
 0xe79   : > { %3380 = vst.msk [vmem:[#allocation2 + $0x48] sm:$0xff] %vm3370_vm3, %v3341_v22 }
 0xe7b   : > { %v2409_v8 = vpop.permute.xlu0 %2408 }
 0xe7c   : > { %v3345_v53 = vpop.permute.xlu1 %3344  ;;  %2443 = vst.msk [vmem:[#allocation2 + $0x70] sm:$0xff] %vm2428_vm2, %v2409_v8 }
 0xe7d   : > { %3382 = vst.msk [vmem:[#allocation2 + $0x58] sm:$0xff] %vm3370_vm3, %v3345_v53 }
 0xe7f   : > { %v3347_v19 = vpop.permute.xlu0 %3346 }
 0xe80   : > { %v2407_v9 = vpop.permute.xlu1 %2406  ;;  %3383 = vst.msk [vmem:[#allocation2 + $0x60] sm:$0xff] %vm3370_vm3, %v3347_v19 }
 0xe81   : > { %2442 = vst.msk [vmem:[#allocation2 + $0x68] sm:$0xff] %vm2428_vm2, %v2407_v9 }
 0xe84   : > { %v2411_v38 = vpop.permute.xlu1 %2410 }
 0xe85   : > { %2444 = vst.msk [vmem:[#allocation2 + $0x78] sm:$0xff] %vm2428_vm2, %v2411_v38 }
 0xe88   : > { %v3349_v16 = vpop.permute.xlu1 %3348 }
 0xe89   : > { %3384 = vst.msk [vmem:[#allocation2 + $0x68] sm:$0xff] %vm3370_vm3, %v3349_v16 }
 0xf12   : > { %v5602_v63 = vpop.f32.mrb[168].mxu0 }
 0xf13   : > { %4268 = vrot.lane.b32.xlu0 %v5602_v63, %s6379_s21  ;;  %v4185_v10 = vpop.f32.mrb[169].mxu0 }
 0xf14   : > { %v5603_v26 = vpop.f32.mrb[170].mxu0 }
 0xf15   : > { %4270 = vrot.lane.b32.xlu1 %v5603_v26, %s6379_s21  ;;  %v4188_v45 = vpop.f32.mrb[171].mxu0 }
 0xf17   : > { %4264 = vrot.lane.b32.xlu0 %v4185_v10, %s6379_s21 }
 0xf19   : > { %4266 = vrot.lane.b32.xlu1 %v4188_v45, %s6379_s21 }
 0xf1b   : > { %v5606_v11 = vpop.f32.mrb[172].mxu0 }
 0xf1c   : > { %4276 = vrot.lane.b32.xlu0 %v5606_v11, %s6379_s21  ;;  %v4201_v42 = vpop.f32.mrb[173].mxu0 }
 0xf1d   : > { %v5607_v46 = vpop.f32.mrb[174].mxu0 }
 0xf1e   : > { %4278 = vrot.lane.b32.xlu1 %v5607_v46, %s6379_s21  ;;  %v4204_v60 = vpop.f32.mrb[175].mxu0 }
 0xf20   : > { %4272 = vrot.lane.b32.xlu0 %v4201_v42, %s6379_s21 }
 0xf22   : > { %4274 = vrot.lane.b32.xlu1 %v4204_v60, %s6379_s21 }
 0xf23   : > { %v5610_v58 = vpop.f32.mrb[176].mxu0 }
 0xf24   : > { %4284 = vrot.lane.b32.xlu0 %v5610_v58, %s6379_s21  ;;  %v4217_v15 = vpop.f32.mrb[177].mxu0 }
 0xf25   : > { %v5611_v30 = vpop.f32.mrb[178].mxu0 }
 0xf26   : > { %4286 = vrot.lane.b32.xlu1 %v5611_v30, %s6379_s21  ;;  %v4220_v62 = vpop.f32.mrb[179].mxu0 }
 0xf28   : > { %4280 = vrot.lane.b32.xlu0 %v4217_v15, %s6379_s21 }
 0xf2a   : > { %4282 = vrot.lane.b32.xlu1 %v4220_v62, %s6379_s21 }
 0xf2b   : > { %v5614_v17 = vpop.f32.mrb[180].mxu0 }
 0xf2c   : > { %3350 = vrot.lane.b32.xlu0 %v7989_v7, %s6380_s28  ;;  %v4233_v47 = vpop.f32.mrb[181].mxu0 }
 0xf2d   : > { %v5615_v56 = vpop.f32.mrb[182].mxu0 }
 0xf2e   : > { %3352 = vrot.lane.b32.xlu1 %v7994_v49, %s6380_s28  ;;  %v4236_v39 = vpop.f32.mrb[183].mxu0 }
 0xf30   : > { %4288 = vrot.lane.b32.xlu0 %v4233_v47, %s6379_s21 }
 0xf32   : > { %4290 = vrot.lane.b32.xlu1 %v4236_v39, %s6379_s21 }
 0xf34   : > { %4292 = vrot.lane.b32.xlu0 %v5614_v17, %s6379_s21 }
 0xf36   : > { %4294 = vrot.lane.b32.xlu1 %v5615_v56, %s6379_s21 }
 0xf85   : > { %v4269_v1 = vpop.permute.xlu0 %4268 }
 0xf86   : > { %4315 = vst.msk [vmem:[#allocation2 + $0x10] sm:$0xff] %vm4312_vm4, %v4269_v1 }
 0xf87   : > { %v4271_v2 = vpop.permute.xlu1 %4270 }
 0xf88   : > { %4316 = vst.msk [vmem:[#allocation2 + $0x18] sm:$0xff] %vm4312_vm4, %v4271_v2 }
 0xf89   : > { %v4265_v7 = vpop.permute.xlu0 %4264 }
 0xf8a   : > { %4313 = vst.msk [vmem:[#allocation2] sm:$0xff] %vm4312_vm4, %v4265_v7 }
 0xf8b   : > { %v4267_v49 = vpop.permute.xlu1 %4266 }
 0xf8c   : > { %4314 = vst.msk [vmem:[#allocation2 + $0x8] sm:$0xff] %vm4312_vm4, %v4267_v49 }
 0xf8d   : > { %v4331_v48 = vld [vmem:[#allocation2 + $0x10] sm:$0xff] }
 0xf8e   : > { %v4277_v36 = vpop.permute.xlu0 %4276 }
 0xf8f   : > { %4319 = vst.msk [vmem:[#allocation2 + $0x30] sm:$0xff] %vm4312_vm4, %v4277_v36  ;;  %v4332_v29 = vld [vmem:[#allocation2 + $0x18] sm:$0xff] }
 0xf90   : > { %v4279_v59 = vpop.permute.xlu1 %4278  ;;  %v4346_v20 = vpack.c.bf16 %v4332_v29, %v4331_v48 }
 0xf91   : > { %4320 = vst.msk [vmem:[#allocation2 + $0x38] sm:$0xff] %vm4312_vm4, %v4279_v59  ;;  %v4329_v37 = vld [vmem:[#allocation2] sm:$0xff] }
 0xf92   : > { %v4273_v41 = vpop.permute.xlu0 %4272 }
 0xf93   : > { %4317 = vst.msk [vmem:[#allocation2 + $0x20] sm:$0xff] %vm4312_vm4, %v4273_v41  ;;  %v4330_v4 = vld [vmem:[#allocation2 + $0x8] sm:$0xff] }
 0xf94   : > { %v4275_v43 = vpop.permute.xlu1 %4274  ;;  %v4345_v23 = vpack.c.bf16 %v4330_v4, %v4329_v37 }
 0xf95   : > { %4318 = vst.msk [vmem:[#allocation2 + $0x28] sm:$0xff] %vm4312_vm4, %v4275_v43 }
 0xf96   : > { %v4285_v57 = vpop.permute.xlu0 %4284  ;;  %5632 = vmatprep.mubr.bf16.mxu0 %v4345_v23  ;;  %v4335_v38 = vld [vmem:[#allocation2 + $0x30] sm:$0xff] }
 0xf97   : > { %4323 = vst.msk [vmem:[#allocation2 + $0x50] sm:$0xff] %vm4312_vm4, %v4285_v57  ;;  %5633 = vmatmul.mubr.bf16.vlgmr.msra.gmra.mrb[184].mxu0 %v4346_v20 }
 0xf98   : > { %v4287_v5 = vpop.permute.xlu1 %4286  ;;  %v4336_v22 = vld [vmem:[#allocation2 + $0x38] sm:$0xff] }
 0xf99   : > { %4324 = vst.msk [vmem:[#allocation2 + $0x58] sm:$0xff] %vm4312_vm4, %v4287_v5  ;;  %v4348_v0 = vpack.c.bf16 %v4336_v22, %v4335_v38 }
 0xf9a   : > { %v4281_v12 = vpop.permute.xlu0 %4280  ;;  %v4333_v53 = vld [vmem:[#allocation2 + $0x20] sm:$0xff] }
 0xf9b   : > { %4321 = vst.msk [vmem:[#allocation2 + $0x40] sm:$0xff] %vm4312_vm4, %v4281_v12 }
 0xf9c   : > { %v4283_v8 = vpop.permute.xlu1 %4282  ;;  %v4334_v19 = vld [vmem:[#allocation2 + $0x28] sm:$0xff] }
 0xf9d   : > { %4322 = vst.msk [vmem:[#allocation2 + $0x48] sm:$0xff] %vm4312_vm4, %v4283_v8  ;;  %v4347_v9 = vpack.c.bf16 %v4334_v19, %v4333_v53 }
 0xf9e   : > { %v3351_v16 = vpop.permute.xlu0 %3350  ;;  %v4339_v25 = vld [vmem:[#allocation2 + $0x50] sm:$0xff] }
 0xf9f   : > { %3385 = vst.msk [vmem:[#allocation2 + $0x70] sm:$0xff] %vm3370_vm3, %v3351_v16  ;;  %5636 = vmatprep.mubr.bf16.mxu0 %v4347_v9 }
 0xfa0   : > { %5637 = vmatmul.mubr.bf16.gmra.mrb[188].mxu0 %v4348_v0  ;;  %v3353_v44 = vpop.permute.xlu1 %3352  ;;  %v4340_v21 = vld [vmem:[#allocation2 + $0x58] sm:$0xff] }
 0xfa1   : > { %3386 = vst.msk [vmem:[#allocation2 + $0x78] sm:$0xff] %vm3370_vm3, %v3353_v44  ;;  %v4350_v51 = vpack.c.bf16 %v4340_v21, %v4339_v25 }
 0xfa2   : > { %v4289_v32 = vpop.permute.xlu0 %4288  ;;  %v4337_v13 = vld [vmem:[#allocation2 + $0x40] sm:$0xff] }
 0xfa3   : > { %4325 = vst.msk [vmem:[#allocation2 + $0x60] sm:$0xff] %vm4312_vm4, %v4289_v32 }
 0xfa4   : > { %v4291_v3 = vpop.permute.xlu1 %4290  ;;  %v4338_v27 = vld [vmem:[#allocation2 + $0x48] sm:$0xff] }
 0xfa5   : > { %4326 = vst.msk [vmem:[#allocation2 + $0x68] sm:$0xff] %vm4312_vm4, %v4291_v3  ;;  %v4349_v40 = vpack.c.bf16 %v4338_v27, %v4337_v13 }
 0xfa6   : > { %v4293_v28 = vpop.permute.xlu0 %4292 }
 0xfa7   : > { %4327 = vst.msk [vmem:[#allocation2 + $0x70] sm:$0xff] %vm4312_vm4, %v4293_v28  ;;  %5640 = vmatprep.mubr.bf16.mxu0 %v4349_v40 }
 0xfa8   : > { %5641 = vmatmul.mubr.bf16.gmra.mrb[192].mxu0 %v4350_v51  ;;  %v4295_v18 = vpop.permute.xlu1 %4294 }
 0xfa9   : > { %4328 = vst.msk [vmem:[#allocation2 + $0x78] sm:$0xff] %vm4312_vm4, %v4295_v18 }
 0xfaa   : > { %v4341_v6 = vld [vmem:[#allocation2 + $0x60] sm:$0xff] }
 0xfac   : > { %v4342_v34 = vld [vmem:[#allocation2 + $0x68] sm:$0xff] }
 0xfad   : > { %v4351_v14 = vpack.c.bf16 %v4342_v34, %v4341_v6 }
 0xfae   : > { %v4343_v33 = vld [vmem:[#allocation2 + $0x70] sm:$0xff] }
 0xfaf   : > { %5644 = vmatprep.mubr.bf16.mxu0 %v4351_v14 }
 0xfb0   : > { %v4344_v54 = vld [vmem:[#allocation2 + $0x78] sm:$0xff] }
 0xfb1   : > { %v4352_v52 = vpack.c.bf16 %v4344_v54, %v4343_v33 }
 0xfb3   : > { %5645 = vmatmul.mubr.bf16.gmra.mrb[196].mxu0 %v4352_v52 }
0x106a   : > { %v5634_v50 = vpop.f32.mrb[184].mxu0 }
0x106b   : > { %v4427_v24 = vadd.f32 %v5634_v50, %v4845_v55  ;;  %v4418_v31 = vpop.f32.mrb[185].mxu0 }
0x106c   : > { %v4419_v35 = vadd.f32 %v4845_v55, %v4418_v31  ;;  %v5635_v63 = vpop.f32.mrb[186].mxu0 }
0x106d   : > { %4483 = vst [vmem:[%s8312_s18 + $0x10] sm:$0xff] %v4427_v24  ;;  %v4430_v61 = vadd.f32 %v5635_v63, %v4845_v55  ;;  %v4421_v10 = vpop.f32.mrb[187].mxu0 }
0x106e   : > { %4481 = vst [vmem:[%s8312_s18] sm:$0xff] %v4419_v35  ;;  %v4422_v26 = vadd.f32 %v4845_v55, %v4421_v10 }
0x106f   : > { %4484 = vst [vmem:[%s8312_s18 + $0x18] sm:$0xff] %v4430_v61 }
0x1070   : > { %4482 = vst [vmem:[%s8312_s18 + $0x8] sm:$0xff] %v4422_v26 }
0x1073   : > { %v5638_v45 = vpop.f32.mrb[188].mxu0 }
0x1074   : > { %v4443_v11 = vadd.f32 %v5638_v45, %v4845_v55  ;;  %v4434_v42 = vpop.f32.mrb[189].mxu0 }
0x1075   : > { %v4435_v46 = vadd.f32 %v4845_v55, %v4434_v42  ;;  %v5639_v60 = vpop.f32.mrb[190].mxu0 }
0x1076   : > { %4487 = vst [vmem:[%s8312_s18 + $0x30] sm:$0xff] %v4443_v11  ;;  %v4446_v58 = vadd.f32 %v5639_v60, %v4845_v55  ;;  %v4437_v15 = vpop.f32.mrb[191].mxu0 }
0x1077   : > { %4485 = vst [vmem:[%s8312_s18 + $0x20] sm:$0xff] %v4435_v46  ;;  %v4438_v30 = vadd.f32 %v4845_v55, %v4437_v15 }
0x1078   : > { %4488 = vst [vmem:[%s8312_s18 + $0x38] sm:$0xff] %v4446_v58 }
0x1079   : > { %4486 = vst [vmem:[%s8312_s18 + $0x28] sm:$0xff] %v4438_v30 }
0x107b   : > { %v5642_v62 = vpop.f32.mrb[192].mxu0 }
0x107c   : > { %v4459_v17 = vadd.f32 %v5642_v62, %v4845_v55  ;;  %v4450_v47 = vpop.f32.mrb[193].mxu0 }
0x107d   : > { %v4451_v56 = vadd.f32 %v4845_v55, %v4450_v47  ;;  %v5643_v39 = vpop.f32.mrb[194].mxu0 }
0x107e   : > { %4491 = vst [vmem:[%s8312_s18 + $0x50] sm:$0xff] %v4459_v17  ;;  %v4462_v1 = vadd.f32 %v5643_v39, %v4845_v55  ;;  %v4453_v2 = vpop.f32.mrb[195].mxu0 }
0x107f   : > { %4489 = vst [vmem:[%s8312_s18 + $0x40] sm:$0xff] %v4451_v56  ;;  %v4454_v7 = vadd.f32 %v4845_v55, %v4453_v2 }
0x1080   : > { %4492 = vst [vmem:[%s8312_s18 + $0x58] sm:$0xff] %v4462_v1 }
0x1081   : > { %4490 = vst [vmem:[%s8312_s18 + $0x48] sm:$0xff] %v4454_v7 }
0x1086   : > { %v5646_v49 = vpop.f32.mrb[196].mxu0 }
0x1087   : > { %v4475_v36 = vadd.f32 %v5646_v49, %v4845_v55  ;;  %v4466_v59 = vpop.f32.mrb[197].mxu0 }
0x1088   : > { %v4467_v41 = vadd.f32 %v4845_v55, %v4466_v59  ;;  %v5647_v29 = vpop.f32.mrb[198].mxu0 }
0x1089   : > { %4495 = vst [vmem:[%s8312_s18 + $0x70] sm:$0xff] %v4475_v36  ;;  %v4478_v37 = vadd.f32 %v5647_v29, %v4845_v55  ;;  %v4469_v4 = vpop.f32.mrb[199].mxu0 }
0x108a   : > { %4493 = vst [vmem:[%s8312_s18 + $0x60] sm:$0xff] %v4467_v41  ;;  %v4470_v43 = vadd.f32 %v4845_v55, %v4469_v4 }
0x108b   : > { %4496 = vst [vmem:[%s8312_s18 + $0x78] sm:$0xff] %v4478_v37 }
0x108c   : > { %4494 = vst [vmem:[%s8312_s18 + $0x68] sm:$0xff] %v4470_v43 }
0x108d   : > { %6294 = shalt.err (!%p6291_p6)
}
0x108e   : > { %s6295_s16 = scalar_lea.hbm %s8332_s19, 2048  ;;  %s6299_s21 = scalar_lea.hbm %s8601_s9, 4096 }
0x108f   : > { %p6296_p11 = scmp.ne.s32.totalorder %s8332_s19, %s6295_s16  ;;  %p6300_p0 = scmp.lt.u32.totalorder %s8332_s19, %s8601_s9 }
0x1090   : > { %p6301_p13 = scmp.lt.u32.totalorder %s6299_s21, %s6295_s16  ;;  %p6303_p9 = scmp.lt.u32.totalorder %s6295_s16, %s8332_s19 }
0x1091   : > { %p6297_p2 = pnand %p6296_p11, %p8602_p12 }
0x1092   : > { %p6302_p7 = por %p6301_p13, %p6300_p0 }
0x1093   : > { %p6298_p4 = pneg %p6297_p2 }
0x1094   : > { %p6304_p10 = por %p6303_p9, %p6302_p7 }
0x1096   : > { %p6305_p1 = pnand %p6304_p10, %p6298_p4 }
0x1098   : > { %6308 = shalt.err (!%p6305_p1)
}
0x1099   : > { %s6383_s20 = smov 128   ;;  %s6384_s27 = smov 8  }
0x109a   : > { %5708 = dma.vmem_to_hbm [thread:$0]  (%p8602_p12), %s8334_s22, 2048, %s8332_s19, %s4498_s25, %s6383_s20, %s6383_s20, %s6384_s27  }
0x109b PF: > { %s8603_s13 = sld [smem:[#allocation25_spill]]  ;;  %s8604_s18 = sld [smem:[#allocation28_spill]] }
0x109c   : > { %p8606_p5 = scmp.ge.s32.totalorder %s6367_s12, 2 }
0x10a1   : > { %s4526_s23 = sand.u32 1, %s8603_s13   ;;  %p8605_p3 = scmp.ne.s32.totalorder %s8604_s18, 0 }
0x10a2   : > { %s4527_s26 = scalar_lea.sflag [#allocation5], %s4526_s23 }
0x10a3   : > { %p5737_p8 = pnand %p8606_p5, %p8605_p3 }
0x10a5   : > { %6350 = dma.done.wait (!%p5737_p8), %s4527_s26, 2048  }
0x10a6   : > { %6352 = vsyncadd (!%p5737_p8), %s4527_s26, 4294965248  ;;  %s8607_s12 = sld [smem:[#allocation29_spill]]  ;;  %s8608_s5 = sld [smem:[#allocation31_spill]] }
0x10a7   : > { %s8609_s30 = smov %s6359_s10  ;;  %s8610_s10 = smov %s6363_s11 }
0x10ac   : > { %p30_p6 = scmp.ge.s32.totalorder %s8607_s12, 4   ;;  %s8611_s11 = smov %s8608_s5 }
0x10ae   :  { %32 = sbr.rel (!%p30_p6) target bundleno = 17 (0x11), region = 154 }
0x10b5   :  { %4532 = vsyncpa [#allocation4], 1 }
0x10b6   :  { %4534 = vsyncpa [#allocation4 + $0x1], 1 }
0x10b7   :  { %4535 = vsyncpa [#allocation7], 1 }
0x10b8   :  { %4537 = vsyncpa [#allocation7 + $0x1], 1 }
0x10b9   :  { %4538 = vsyncpa [#allocation10], 1 }
0x10ba   :  { %4540 = vsyncpa [#allocation10 + $0x1], 1 }
0x10bb   :  { %4541 = vsyncpa [#allocation13], 1 }
0x10bc   :  { %4542 = vsyncpa [#allocation16], 1 }
0x10bd   :  { %4543 = vsyncpa [#allocation5], 1 }
0x10be   :  { %4545 = vsyncpa [#allocation5 + $0x1], 1 }

</bundles_post_ra>
